<compile_context>
chip_gen: v6e
topology: v6e:2x2x1
jax: 0.10.0
libtpu: 0.0.40
codegen_flags: <defaults>
</compile_context>

<pallas_src>
import numpy as np
import jax
import jax.numpy as jnp
from jax.experimental import pallas as pl
from jax.experimental.pallas import tpu as pltpu

EPS = 1e-5      # PyTorch InstanceNorm2d default eps
SLOPE = 0.2     # LeakyReLU negative slope
K = 4           # conv kernel size used by every layer


def _leaky(x):
    return jnp.where(x >= 0, x, SLOPE * x)


def _in_affine_lrelu(y, gamma, beta):
    # y: (C, P) f32, gamma/beta: (C, 1) f32.  Biased variance, eps=1e-5 (PyTorch).
    mean = jnp.mean(y, axis=1, keepdims=True)
    var = jnp.mean(jnp.square(y - mean), axis=1, keepdims=True)
    yn = (y - mean) * jax.lax.rsqrt(var + EPS)
    return _leaky(yn * gamma + beta)


# ---------------- fully fused kernel: layers 1-5 for one sample ----------------

def critic_fused_kernel(p1_ref, m2_ref, w1_ref, b1_ref,
                        w2_ref, gb2_ref, s3_ref,
                        w3_ref, gb3_ref, s4_ref,
                        w4_ref, gb4_ref, w5_ref, b5_ref,
                        o_ref):
    f32 = jnp.float32
    bf16 = jnp.bfloat16
    n_tap = K * K

    # layer 1: conv + bias + LReLU, evaluated at the expanded column set that
    # layer 2's im2col needs; masked columns are layer-2's zero padding.
    y1 = jnp.dot(w1_ref[...], p1_ref[0], preferred_element_type=f32)   # (f, 16*P2)
    y1 = (_leaky(y1 + b1_ref[...]) * m2_ref[...]).astype(bf16)         # == layer-2 patches

    # layer 2: 16-tap accumulated matmuls + InstanceNorm(affine) + LReLU
    c2 = w2_ref.shape[1]
    p2 = y1.shape[1] // n_tap
    acc2 = jnp.zeros((c2, p2), f32)
    for t in range(n_tap):
        acc2 = acc2 + jnp.dot(w2_ref[t], y1[:, t * p2:(t + 1) * p2],
                              preferred_element_type=f32)
    y2 = _in_affine_lrelu(acc2, gb2_ref[0], gb2_ref[1]).astype(bf16)    # (2f, 256)

    # layer 3: in-kernel patch build via constant 0/1 selection matmuls, then conv
    c3 = w3_ref.shape[1]
    p3 = s3_ref.shape[2]
    acc3 = jnp.zeros((c3, p3), f32)
    for t in range(n_tap):
        patches = jnp.dot(y2, s3_ref[t], preferred_element_type=f32).astype(bf16)
        acc3 = acc3 + jnp.dot(w3_ref[t], patches, preferred_element_type=f32)
    y3 = _in_affine_lrelu(acc3, gb3_ref[0], gb3_ref[1]).astype(bf16)    # (4f, 64)

    # layer 4
    c4 = w4_ref.shape[1]
    p4 = s4_ref.shape[2]
    acc4 = jnp.zeros((c4, p4), f32)
    for t in range(n_tap):
        patches = jnp.dot(y3, s4_ref[t], preferred_element_type=f32).astype(bf16)
        acc4 = acc4 + jnp.dot(w4_ref[t], patches, preferred_element_type=f32)
    y4 = _in_affine_lrelu(acc4, gb4_ref[0], gb4_ref[1])                 # (8f, 16) f32

    # layer 5: 4x4 stride-2 pad-0 conv on the 4x4 map == full reduce + bias
    s = jnp.sum(y4 * w5_ref[...], axis=1, keepdims=True)                # (8f, 1)
    s = jnp.sum(s, axis=0, keepdims=True)                               # (1, 1)
    o_ref[0] = (s + b5_ref[...]).astype(o_ref.dtype)


# ---------------- host-side (XLA) prep: layer-1 im2col only ----------------

def extract_patch_taps(x, k, stride, pad):
    """x: (N, C, H, W) -> (N, k*k, C, Ho, Wo); tap index = kh*k + kw."""
    if pad:
        x = jnp.pad(x, ((0, 0), (0, 0), (pad, pad), (pad, pad)))
    N, C, H, W = x.shape
    Ho = (H - k) // stride + 1
    Wo = (W - k) // stride + 1
    taps = []
    for di in range(k):
        for dj in range(k):
            taps.append(x[:, :, di:di + stride * (Ho - 1) + 1:stride,
                          dj:dj + stride * (Wo - 1) + 1:stride])
    return jnp.stack(taps, axis=1), Ho, Wo


def build_layer1_inputs(x_nchw):
    """Raw NCHW image -> (p1_exp, mask2).

    p1_exp: (N, 16*Cin, 16*P2) bf16 -- layer-1 im2col patches whose COLUMN set is
      expanded/reordered to the (layer2-tap, layer2-output-position) list, so the
      kernel's LReLU(W1 @ p1_exp + b1) * mask2 is exactly layer-2's patch matrix.
    mask2:  (1, 16*P2) f32 -- zero at columns lying in layer-2's zero padding.
    """
    x = x_nchw.astype(jnp.bfloat16)
    N = x.shape[0]
    p1, H1, W1 = extract_patch_taps(x, K, 2, 1)                 # (N,16,Cin,32,32)
    k1 = K * K * x.shape[1]
    p1 = p1.reshape(N, k1, H1, W1)                              # rows = (kh, kw, cin)
    p1e, H2, W2 = extract_patch_taps(p1, K, 2, 1)               # (N,16,k1,16,16)
    p1e = jnp.transpose(p1e, (0, 2, 1, 3, 4)).reshape(N, k1, K * K * H2 * W2)
    ones = jnp.ones((1, 1, H1, W1), jnp.float32)
    m2, _, _ = extract_patch_taps(ones, K, 2, 1)                # (1,16,1,16,16)
    m2 = m2.reshape(1, K * K * H2 * W2)
    return p1e, m2


def build_tap_selection(h_in, w_in, k, stride, pad, dtype):
    """0/1 selection matrices (k*k, h_in*w_in, Ho*Wo): Y @ S[t] gathers the tap-t
    patch columns (all-zero columns where the tap reads the zero padding)."""
    ho = (h_in + 2 * pad - k) // stride + 1
    wo = (w_in + 2 * pad - k) // stride + 1
    s = np.zeros((k * k, h_in * w_in, ho * wo), np.float32)
    for di in range(k):
        for dj in range(k):
            t = di * k + dj
            for io in range(ho):
                for jo in range(wo):
                    i = stride * io + di - pad
                    j = stride * jo + dj - pad
                    if 0 <= i < h_in and 0 <= j < w_in:
                        s[t, i * w_in + j, io * wo + jo] = 1.0
    return jnp.asarray(s, dtype)


# ---------------- weight formatting + synthetic init ----------------

def conv_w_flat(w_oihw):
    """(Cout, Cin, k, k) -> (Cout, k*k*Cin), K ordered (kh, kw, cin)."""
    co, ci, kh, kw = w_oihw.shape
    return jnp.transpose(w_oihw, (0, 2, 3, 1)).reshape(co, kh * kw * ci)


def conv_w_taps(w_oihw):
    """(Cout, Cin, k, k) -> (k*k, Cout, Cin), tap = kh*k + kw."""
    co, ci, kh, kw = w_oihw.shape
    return jnp.transpose(w_oihw, (2, 3, 0, 1)).reshape(kh * kw, co, ci)


def init_params(channels_img, features_d, key):
    f = features_d
    ks = jax.random.split(key, 10)
    p = {}
    p["w1"] = conv_w_flat(jax.random.normal(ks[0], (f, channels_img, K, K),
                                            jnp.float32) * 0.05).astype(jnp.bfloat16)
    p["b1"] = jax.random.normal(ks[1], (f, 1), jnp.float32) * 0.05
    chans = [(f, 2 * f), (2 * f, 4 * f), (4 * f, 8 * f)]
    for i, (cin, cout) in enumerate(chans, start=2):
        w = jax.random.normal(ks[2 * i - 2], (cout, cin, K, K), jnp.float32) * 0.05
        p[f"w{i}"] = conv_w_taps(w).astype(jnp.bfloat16)
        gamma = jnp.ones((cout, 1), jnp.float32)     # InstanceNorm affine init
        beta = jnp.zeros((cout, 1), jnp.float32)
        p[f"gb{i}"] = jnp.stack([gamma, beta])       # (2, cout, 1)
    w5 = jax.random.normal(ks[8], (1, 8 * f, K, K), jnp.float32) * 0.05
    p["w5"] = w5[0].reshape(8 * f, K * K)            # (8f, 16), col = kh*4+kw
    p["b5"] = jax.random.normal(ks[9], (1, 1), jnp.float32) * 0.05
    return p


# ---------------- full forward: ONE pallas_call for the whole network ----------------

def critic_forward(x_nchw, params, sel3, sel4):
    N = x_nchw.shape[0]
    p1e, m2 = build_layer1_inputs(x_nchw)

    inputs = [p1e, m2, params["w1"], params["b1"],
              params["w2"], params["gb2"], sel3,
              params["w3"], params["gb3"], sel4,
              params["w4"], params["gb4"], params["w5"], params["b5"]]

    in_specs = [pl.BlockSpec((1,) + p1e.shape[1:], lambda n: (n, 0, 0))]
    for a in inputs[1:]:
        # constants: full-array blocks, same block index every step -> loaded once
        in_specs.append(pl.BlockSpec(a.shape, lambda n, nd=a.ndim: (0,) * nd))

    out = pl.pallas_call(
        critic_fused_kernel,
        out_shape=jax.ShapeDtypeStruct((N, 1, 1), jnp.float32),
        grid_spec=pltpu.PrefetchScalarGridSpec(
            num_scalar_prefetch=0,
            grid=(N,),
            in_specs=in_specs,
            out_specs=pl.BlockSpec((1, 1, 1), lambda n: (n, 0, 0)),
        ),
        compiler_params=pltpu.CompilerParams(
            dimension_semantics=("parallel",),   # independent batch samples
        ),
    )(*inputs)
    return out.reshape(N, 1, 1, 1)               # matches PyTorch (N, 1, 1, 1)


if __name__ == "__main__":
    channels_img = 3
    features_d = 8
    batch = 2
    img = 64   # required so the final 4x4 stride-2 conv reduces to 1x1

    key = jax.random.PRNGKey(0)
    k_param, k_x = jax.random.split(key)
    params = init_params(channels_img, features_d, k_param)
    x = jax.random.normal(k_x, (batch, channels_img, img, img), jnp.float32)

    # constant selection matrices for the layer-3 / layer-4 in-kernel im2col
    sel3 = build_tap_selection(img // 4, img // 4, K, 2, 1, jnp.bfloat16)  # (16, 256, 64)
    sel4 = build_tap_selection(img // 8, img // 8, K, 2, 1, jnp.bfloat16)  # (16, 64, 16)

    fwd = jax.jit(lambda inp: critic_forward(inp, params, sel3, sel4))
    out = fwd(x)
    jax.block_until_ready(out)
    assert out.shape == (batch, 1, 1, 1), out.shape
    print("KERNEL_OK")
</pallas_src>

<mosaic_0001>
module attributes {stable_mosaic.version = 11 : i64} {
  func.func @critic_fused_kernel(%arg0: i32, %arg1: memref<1x48x4096xbf16, #tpu.memory_space<vmem>>, %arg2: memref<1x4096xf32, #tpu.memory_space<vmem>>, %arg3: memref<8x48xbf16, #tpu.memory_space<vmem>>, %arg4: memref<8x1xf32, #tpu.memory_space<vmem>>, %arg5: memref<16x16x8xbf16, #tpu.memory_space<vmem>>, %arg6: memref<2x16x1xf32, #tpu.memory_space<vmem>>, %arg7: memref<16x256x64xbf16, #tpu.memory_space<vmem>>, %arg8: memref<16x32x16xbf16, #tpu.memory_space<vmem>>, %arg9: memref<2x32x1xf32, #tpu.memory_space<vmem>>, %arg10: memref<16x64x16xbf16, #tpu.memory_space<vmem>>, %arg11: memref<16x64x32xbf16, #tpu.memory_space<vmem>>, %arg12: memref<2x64x1xf32, #tpu.memory_space<vmem>>, %arg13: memref<64x16xf32, #tpu.memory_space<vmem>>, %arg14: memref<1x1xf32, #tpu.memory_space<vmem>>, %arg15: memref<1x1x1xf32, #tpu.memory_space<vmem>>) attributes {dimension_semantics = [#tpu.dimension_semantics<parallel>], iteration_bounds = array<i64: 2>, scalar_prefetch = 0 : i64, scratch_operands = 0 : i64, tpu.core_type = #tpu.core_type<tc>, window_params = [{transform_indices = @transform_0, window_bounds = array<i64: 1, 48, 4096>}, {pipeline_mode = #tpu.pipeline_mode<synchronous>, transform_indices = @transform_1, window_bounds = array<i64: 1, 4096>}, {pipeline_mode = #tpu.pipeline_mode<synchronous>, transform_indices = @transform_2, window_bounds = array<i64: 8, 48>}, {pipeline_mode = #tpu.pipeline_mode<synchronous>, transform_indices = @transform_3, window_bounds = array<i64: 8, 1>}, {pipeline_mode = #tpu.pipeline_mode<synchronous>, transform_indices = @transform_4, window_bounds = array<i64: 16, 16, 8>}, {pipeline_mode = #tpu.pipeline_mode<synchronous>, transform_indices = @transform_5, window_bounds = array<i64: 2, 16, 1>}, {pipeline_mode = #tpu.pipeline_mode<synchronous>, transform_indices = @transform_6, window_bounds = array<i64: 16, 256, 64>}, {pipeline_mode = #tpu.pipeline_mode<synchronous>, transform_indices = @transform_7, window_bounds = array<i64: 16, 32, 16>}, {pipeline_mode = #tpu.pipeline_mode<synchronous>, transform_indices = @transform_8, window_bounds = array<i64: 2, 32, 1>}, {pipeline_mode = #tpu.pipeline_mode<synchronous>, transform_indices = @transform_9, window_bounds = array<i64: 16, 64, 16>}, {pipeline_mode = #tpu.pipeline_mode<synchronous>, transform_indices = @transform_10, window_bounds = array<i64: 16, 64, 32>}, {pipeline_mode = #tpu.pipeline_mode<synchronous>, transform_indices = @transform_11, window_bounds = array<i64: 2, 64, 1>}, {pipeline_mode = #tpu.pipeline_mode<synchronous>, transform_indices = @transform_12, window_bounds = array<i64: 64, 16>}, {pipeline_mode = #tpu.pipeline_mode<synchronous>, transform_indices = @transform_13, window_bounds = array<i64: 1, 1>}, {transform_indices = @transform_14, window_bounds = array<i64: 1, 1, 1>}]} {
    %c0 = arith.constant 0 : index
    %c0_0 = arith.constant 0 : index
    %0 = vector.load %arg3[%c0, %c0_0] : memref<8x48xbf16, #tpu.memory_space<vmem>>, vector<8x48xbf16>
    %c0_1 = arith.constant 0 : index
    %c0_2 = arith.constant 0 : index
    %c0_3 = arith.constant 0 : index
    %1 = vector.load %arg1[%c0_1, %c0_2, %c0_3] : memref<1x48x4096xbf16, #tpu.memory_space<vmem>>, vector<1x48x4096xbf16>
    %2 = vector.shape_cast %1 : vector<1x48x4096xbf16> to vector<48x4096xbf16>
    %cst = arith.constant dense<0.000000e+00> : vector<8x4096xf32>
    %3 = tpu.matmul %0, %2, %cst {dimension_numbers = #tpu.dot_dimension_numbers<[1], [0], [0], [1], [0, 0, 1, 1], [], []>} : vector<8x48xbf16>, vector<48x4096xbf16>, vector<8x4096xf32> -> vector<8x4096xf32>
    %c0_4 = arith.constant 0 : index
    %c0_5 = arith.constant 0 : index
    %4 = vector.load %arg4[%c0_4, %c0_5] : memref<8x1xf32, #tpu.memory_space<vmem>>, vector<8x1xf32>
    %5 = vector.broadcast %4 : vector<8x1xf32> to vector<8x4096xf32>
    %6 = arith.addf %3, %5 : vector<8x4096xf32>
    %cst_6 = arith.constant 0.000000e+00 : f32
    %7 = vector.broadcast %cst_6 : f32 to vector<8x4096xf32>
    %8 = arith.cmpf oge, %6, %7 : vector<8x4096xf32>
    %cst_7 = arith.constant 2.000000e-01 : f32
    %9 = vector.broadcast %cst_7 : f32 to vector<8x4096xf32>
    %10 = arith.mulf %9, %6 : vector<8x4096xf32>
    %11 = arith.select %8, %6, %10 : vector<8x4096xi1>, vector<8x4096xf32>
    %c0_8 = arith.constant 0 : index
    %c0_9 = arith.constant 0 : index
    %12 = vector.load %arg2[%c0_8, %c0_9] : memref<1x4096xf32, #tpu.memory_space<vmem>>, vector<1x4096xf32>
    %13 = vector.broadcast %12 : vector<1x4096xf32> to vector<8x4096xf32>
    %14 = arith.mulf %11, %13 : vector<8x4096xf32>
    %15 = arith.truncf %14 : vector<8x4096xf32> to vector<8x4096xbf16>
    %cst_10 = arith.constant 0.000000e+00 : f32
    %16 = vector.broadcast %cst_10 : f32 to vector<16x256xf32>
    %c0_11 = arith.constant 0 : index
    %c0_12 = arith.constant 0 : index
    %c0_13 = arith.constant 0 : index
    %17 = vector.load %arg5[%c0_11, %c0_12, %c0_13] : memref<16x16x8xbf16, #tpu.memory_space<vmem>>, vector<1x16x8xbf16>
    %18 = vector.shape_cast %17 : vector<1x16x8xbf16> to vector<16x8xbf16>
    %19 = vector.extract_strided_slice %15 {offsets = [0, 0], sizes = [8, 256], strides = [1, 1]} : vector<8x4096xbf16> to vector<8x256xbf16>
    %cst_14 = arith.constant dense<0.000000e+00> : vector<16x256xf32>
    %20 = tpu.matmul %18, %19, %cst_14 {dimension_numbers = #tpu.dot_dimension_numbers<[1], [0], [0], [1], [0, 0, 1, 1], [], []>} : vector<16x8xbf16>, vector<8x256xbf16>, vector<16x256xf32> -> vector<16x256xf32>
    %21 = arith.addf %16, %20 : vector<16x256xf32>
    %c1 = arith.constant 1 : index
    %c0_15 = arith.constant 0 : index
    %c0_16 = arith.constant 0 : index
    %22 = vector.load %arg5[%c1, %c0_15, %c0_16] : memref<16x16x8xbf16, #tpu.memory_space<vmem>>, vector<1x16x8xbf16>
    %23 = vector.shape_cast %22 : vector<1x16x8xbf16> to vector<16x8xbf16>
    %24 = vector.extract_strided_slice %15 {offsets = [0, 256], sizes = [8, 256], strides = [1, 1]} : vector<8x4096xbf16> to vector<8x256xbf16>
    %cst_17 = arith.constant dense<0.000000e+00> : vector<16x256xf32>
    %25 = tpu.matmul %23, %24, %cst_17 {dimension_numbers = #tpu.dot_dimension_numbers<[1], [0], [0], [1], [0, 0, 1, 1], [], []>} : vector<16x8xbf16>, vector<8x256xbf16>, vector<16x256xf32> -> vector<16x256xf32>
    %26 = arith.addf %21, %25 : vector<16x256xf32>
    %c2 = arith.constant 2 : index
    %c0_18 = arith.constant 0 : index
    %c0_19 = arith.constant 0 : index
    %27 = vector.load %arg5[%c2, %c0_18, %c0_19] : memref<16x16x8xbf16, #tpu.memory_space<vmem>>, vector<1x16x8xbf16>
    %28 = vector.shape_cast %27 : vector<1x16x8xbf16> to vector<16x8xbf16>
    %29 = vector.extract_strided_slice %15 {offsets = [0, 512], sizes = [8, 256], strides = [1, 1]} : vector<8x4096xbf16> to vector<8x256xbf16>
    %cst_20 = arith.constant dense<0.000000e+00> : vector<16x256xf32>
    %30 = tpu.matmul %28, %29, %cst_20 {dimension_numbers = #tpu.dot_dimension_numbers<[1], [0], [0], [1], [0, 0, 1, 1], [], []>} : vector<16x8xbf16>, vector<8x256xbf16>, vector<16x256xf32> -> vector<16x256xf32>
    %31 = arith.addf %26, %30 : vector<16x256xf32>
    %c3 = arith.constant 3 : index
    %c0_21 = arith.constant 0 : index
    %c0_22 = arith.constant 0 : index
    %32 = vector.load %arg5[%c3, %c0_21, %c0_22] : memref<16x16x8xbf16, #tpu.memory_space<vmem>>, vector<1x16x8xbf16>
    %33 = vector.shape_cast %32 : vector<1x16x8xbf16> to vector<16x8xbf16>
    %34 = vector.extract_strided_slice %15 {offsets = [0, 768], sizes = [8, 256], strides = [1, 1]} : vector<8x4096xbf16> to vector<8x256xbf16>
    %cst_23 = arith.constant dense<0.000000e+00> : vector<16x256xf32>
    %35 = tpu.matmul %33, %34, %cst_23 {dimension_numbers = #tpu.dot_dimension_numbers<[1], [0], [0], [1], [0, 0, 1, 1], [], []>} : vector<16x8xbf16>, vector<8x256xbf16>, vector<16x256xf32> -> vector<16x256xf32>
    %36 = arith.addf %31, %35 : vector<16x256xf32>
    %c4 = arith.constant 4 : index
    %c0_24 = arith.constant 0 : index
    %c0_25 = arith.constant 0 : index
    %37 = vector.load %arg5[%c4, %c0_24, %c0_25] : memref<16x16x8xbf16, #tpu.memory_space<vmem>>, vector<1x16x8xbf16>
    %38 = vector.shape_cast %37 : vector<1x16x8xbf16> to vector<16x8xbf16>
    %39 = vector.extract_strided_slice %15 {offsets = [0, 1024], sizes = [8, 256], strides = [1, 1]} : vector<8x4096xbf16> to vector<8x256xbf16>
    %cst_26 = arith.constant dense<0.000000e+00> : vector<16x256xf32>
    %40 = tpu.matmul %38, %39, %cst_26 {dimension_numbers = #tpu.dot_dimension_numbers<[1], [0], [0], [1], [0, 0, 1, 1], [], []>} : vector<16x8xbf16>, vector<8x256xbf16>, vector<16x256xf32> -> vector<16x256xf32>
    %41 = arith.addf %36, %40 : vector<16x256xf32>
    %c5 = arith.constant 5 : index
    %c0_27 = arith.constant 0 : index
    %c0_28 = arith.constant 0 : index
    %42 = vector.load %arg5[%c5, %c0_27, %c0_28] : memref<16x16x8xbf16, #tpu.memory_space<vmem>>, vector<1x16x8xbf16>
    %43 = vector.shape_cast %42 : vector<1x16x8xbf16> to vector<16x8xbf16>
    %44 = vector.extract_strided_slice %15 {offsets = [0, 1280], sizes = [8, 256], strides = [1, 1]} : vector<8x4096xbf16> to vector<8x256xbf16>
    %cst_29 = arith.constant dense<0.000000e+00> : vector<16x256xf32>
    %45 = tpu.matmul %43, %44, %cst_29 {dimension_numbers = #tpu.dot_dimension_numbers<[1], [0], [0], [1], [0, 0, 1, 1], [], []>} : vector<16x8xbf16>, vector<8x256xbf16>, vector<16x256xf32> -> vector<16x256xf32>
    %46 = arith.addf %41, %45 : vector<16x256xf32>
    %c6 = arith.constant 6 : index
    %c0_30 = arith.constant 0 : index
    %c0_31 = arith.constant 0 : index
    %47 = vector.load %arg5[%c6, %c0_30, %c0_31] : memref<16x16x8xbf16, #tpu.memory_space<vmem>>, vector<1x16x8xbf16>
    %48 = vector.shape_cast %47 : vector<1x16x8xbf16> to vector<16x8xbf16>
    %49 = vector.extract_strided_slice %15 {offsets = [0, 1536], sizes = [8, 256], strides = [1, 1]} : vector<8x4096xbf16> to vector<8x256xbf16>
    %cst_32 = arith.constant dense<0.000000e+00> : vector<16x256xf32>
    %50 = tpu.matmul %48, %49, %cst_32 {dimension_numbers = #tpu.dot_dimension_numbers<[1], [0], [0], [1], [0, 0, 1, 1], [], []>} : vector<16x8xbf16>, vector<8x256xbf16>, vector<16x256xf32> -> vector<16x256xf32>
    %51 = arith.addf %46, %50 : vector<16x256xf32>
    %c7 = arith.constant 7 : index
    %c0_33 = arith.constant 0 : index
    %c0_34 = arith.constant 0 : index
    %52 = vector.load %arg5[%c7, %c0_33, %c0_34] : memref<16x16x8xbf16, #tpu.memory_space<vmem>>, vector<1x16x8xbf16>
    %53 = vector.shape_cast %52 : vector<1x16x8xbf16> to vector<16x8xbf16>
    %54 = vector.extract_strided_slice %15 {offsets = [0, 1792], sizes = [8, 256], strides = [1, 1]} : vector<8x4096xbf16> to vector<8x256xbf16>
    %cst_35 = arith.constant dense<0.000000e+00> : vector<16x256xf32>
    %55 = tpu.matmul %53, %54, %cst_35 {dimension_numbers = #tpu.dot_dimension_numbers<[1], [0], [0], [1], [0, 0, 1, 1], [], []>} : vector<16x8xbf16>, vector<8x256xbf16>, vector<16x256xf32> -> vector<16x256xf32>
    %56 = arith.addf %51, %55 : vector<16x256xf32>
    %c8 = arith.constant 8 : index
    %c0_36 = arith.constant 0 : index
    %c0_37 = arith.constant 0 : index
    %57 = vector.load %arg5[%c8, %c0_36, %c0_37] : memref<16x16x8xbf16, #tpu.memory_space<vmem>>, vector<1x16x8xbf16>
    %58 = vector.shape_cast %57 : vector<1x16x8xbf16> to vector<16x8xbf16>
    %59 = vector.extract_strided_slice %15 {offsets = [0, 2048], sizes = [8, 256], strides = [1, 1]} : vector<8x4096xbf16> to vector<8x256xbf16>
    %cst_38 = arith.constant dense<0.000000e+00> : vector<16x256xf32>
    %60 = tpu.matmul %58, %59, %cst_38 {dimension_numbers = #tpu.dot_dimension_numbers<[1], [0], [0], [1], [0, 0, 1, 1], [], []>} : vector<16x8xbf16>, vector<8x256xbf16>, vector<16x256xf32> -> vector<16x256xf32>
    %61 = arith.addf %56, %60 : vector<16x256xf32>
    %c9 = arith.constant 9 : index
    %c0_39 = arith.constant 0 : index
    %c0_40 = arith.constant 0 : index
    %62 = vector.load %arg5[%c9, %c0_39, %c0_40] : memref<16x16x8xbf16, #tpu.memory_space<vmem>>, vector<1x16x8xbf16>
    %63 = vector.shape_cast %62 : vector<1x16x8xbf16> to vector<16x8xbf16>
    %64 = vector.extract_strided_slice %15 {offsets = [0, 2304], sizes = [8, 256], strides = [1, 1]} : vector<8x4096xbf16> to vector<8x256xbf16>
    %cst_41 = arith.constant dense<0.000000e+00> : vector<16x256xf32>
    %65 = tpu.matmul %63, %64, %cst_41 {dimension_numbers = #tpu.dot_dimension_numbers<[1], [0], [0], [1], [0, 0, 1, 1], [], []>} : vector<16x8xbf16>, vector<8x256xbf16>, vector<16x256xf32> -> vector<16x256xf32>
    %66 = arith.addf %61, %65 : vector<16x256xf32>
    %c10 = arith.constant 10 : index
    %c0_42 = arith.constant 0 : index
    %c0_43 = arith.constant 0 : index
    %67 = vector.load %arg5[%c10, %c0_42, %c0_43] : memref<16x16x8xbf16, #tpu.memory_space<vmem>>, vector<1x16x8xbf16>
    %68 = vector.shape_cast %67 : vector<1x16x8xbf16> to vector<16x8xbf16>
    %69 = vector.extract_strided_slice %15 {offsets = [0, 2560], sizes = [8, 256], strides = [1, 1]} : vector<8x4096xbf16> to vector<8x256xbf16>
    %cst_44 = arith.constant dense<0.000000e+00> : vector<16x256xf32>
    %70 = tpu.matmul %68, %69, %cst_44 {dimension_numbers = #tpu.dot_dimension_numbers<[1], [0], [0], [1], [0, 0, 1, 1], [], []>} : vector<16x8xbf16>, vector<8x256xbf16>, vector<16x256xf32> -> vector<16x256xf32>
    %71 = arith.addf %66, %70 : vector<16x256xf32>
    %c11 = arith.constant 11 : index
    %c0_45 = arith.constant 0 : index
    %c0_46 = arith.constant 0 : index
    %72 = vector.load %arg5[%c11, %c0_45, %c0_46] : memref<16x16x8xbf16, #tpu.memory_space<vmem>>, vector<1x16x8xbf16>
    %73 = vector.shape_cast %72 : vector<1x16x8xbf16> to vector<16x8xbf16>
    %74 = vector.extract_strided_slice %15 {offsets = [0, 2816], sizes = [8, 256], strides = [1, 1]} : vector<8x4096xbf16> to vector<8x256xbf16>
    %cst_47 = arith.constant dense<0.000000e+00> : vector<16x256xf32>
    %75 = tpu.matmul %73, %74, %cst_47 {dimension_numbers = #tpu.dot_dimension_numbers<[1], [0], [0], [1], [0, 0, 1, 1], [], []>} : vector<16x8xbf16>, vector<8x256xbf16>, vector<16x256xf32> -> vector<16x256xf32>
    %76 = arith.addf %71, %75 : vector<16x256xf32>
    %c12 = arith.constant 12 : index
    %c0_48 = arith.constant 0 : index
    %c0_49 = arith.constant 0 : index
    %77 = vector.load %arg5[%c12, %c0_48, %c0_49] : memref<16x16x8xbf16, #tpu.memory_space<vmem>>, vector<1x16x8xbf16>
    %78 = vector.shape_cast %77 : vector<1x16x8xbf16> to vector<16x8xbf16>
    %79 = vector.extract_strided_slice %15 {offsets = [0, 3072], sizes = [8, 256], strides = [1, 1]} : vector<8x4096xbf16> to vector<8x256xbf16>
    %cst_50 = arith.constant dense<0.000000e+00> : vector<16x256xf32>
    %80 = tpu.matmul %78, %79, %cst_50 {dimension_numbers = #tpu.dot_dimension_numbers<[1], [0], [0], [1], [0, 0, 1, 1], [], []>} : vector<16x8xbf16>, vector<8x256xbf16>, vector<16x256xf32> -> vector<16x256xf32>
    %81 = arith.addf %76, %80 : vector<16x256xf32>
    %c13 = arith.constant 13 : index
    %c0_51 = arith.constant 0 : index
    %c0_52 = arith.constant 0 : index
    %82 = vector.load %arg5[%c13, %c0_51, %c0_52] : memref<16x16x8xbf16, #tpu.memory_space<vmem>>, vector<1x16x8xbf16>
    %83 = vector.shape_cast %82 : vector<1x16x8xbf16> to vector<16x8xbf16>
    %84 = vector.extract_strided_slice %15 {offsets = [0, 3328], sizes = [8, 256], strides = [1, 1]} : vector<8x4096xbf16> to vector<8x256xbf16>
    %cst_53 = arith.constant dense<0.000000e+00> : vector<16x256xf32>
    %85 = tpu.matmul %83, %84, %cst_53 {dimension_numbers = #tpu.dot_dimension_numbers<[1], [0], [0], [1], [0, 0, 1, 1], [], []>} : vector<16x8xbf16>, vector<8x256xbf16>, vector<16x256xf32> -> vector<16x256xf32>
    %86 = arith.addf %81, %85 : vector<16x256xf32>
    %c14 = arith.constant 14 : index
    %c0_54 = arith.constant 0 : index
    %c0_55 = arith.constant 0 : index
    %87 = vector.load %arg5[%c14, %c0_54, %c0_55] : memref<16x16x8xbf16, #tpu.memory_space<vmem>>, vector<1x16x8xbf16>
    %88 = vector.shape_cast %87 : vector<1x16x8xbf16> to vector<16x8xbf16>
    %89 = vector.extract_strided_slice %15 {offsets = [0, 3584], sizes = [8, 256], strides = [1, 1]} : vector<8x4096xbf16> to vector<8x256xbf16>
    %cst_56 = arith.constant dense<0.000000e+00> : vector<16x256xf32>
    %90 = tpu.matmul %88, %89, %cst_56 {dimension_numbers = #tpu.dot_dimension_numbers<[1], [0], [0], [1], [0, 0, 1, 1], [], []>} : vector<16x8xbf16>, vector<8x256xbf16>, vector<16x256xf32> -> vector<16x256xf32>
    %91 = arith.addf %86, %90 : vector<16x256xf32>
    %c15 = arith.constant 15 : index
    %c0_57 = arith.constant 0 : index
    %c0_58 = arith.constant 0 : index
    %92 = vector.load %arg5[%c15, %c0_57, %c0_58] : memref<16x16x8xbf16, #tpu.memory_space<vmem>>, vector<1x16x8xbf16>
    %93 = vector.shape_cast %92 : vector<1x16x8xbf16> to vector<16x8xbf16>
    %94 = vector.extract_strided_slice %15 {offsets = [0, 3840], sizes = [8, 256], strides = [1, 1]} : vector<8x4096xbf16> to vector<8x256xbf16>
    %cst_59 = arith.constant dense<0.000000e+00> : vector<16x256xf32>
    %95 = tpu.matmul %93, %94, %cst_59 {dimension_numbers = #tpu.dot_dimension_numbers<[1], [0], [0], [1], [0, 0, 1, 1], [], []>} : vector<16x8xbf16>, vector<8x256xbf16>, vector<16x256xf32> -> vector<16x256xf32>
    %96 = arith.addf %91, %95 : vector<16x256xf32>
    %c0_60 = arith.constant 0 : index
    %c0_61 = arith.constant 0 : index
    %c0_62 = arith.constant 0 : index
    %97 = vector.load %arg6[%c0_60, %c0_61, %c0_62] : memref<2x16x1xf32, #tpu.memory_space<vmem>>, vector<1x16x1xf32>
    %98 = vector.shape_cast %97 : vector<1x16x1xf32> to vector<16x1xf32>
    %c1_63 = arith.constant 1 : index
    %c0_64 = arith.constant 0 : index
    %c0_65 = arith.constant 0 : index
    %99 = vector.load %arg6[%c1_63, %c0_64, %c0_65] : memref<2x16x1xf32, #tpu.memory_space<vmem>>, vector<1x16x1xf32>
    %100 = vector.shape_cast %99 : vector<1x16x1xf32> to vector<16x1xf32>
    %cst_66 = arith.constant dense<0.000000e+00> : vector<16xf32>
    %101 = vector.multi_reduction <add>, %96, %cst_66 [1] : vector<16x256xf32> to vector<16xf32>
    %102 = vector.shape_cast %101 : vector<16xf32> to vector<16x1xf32>
    %cst_67 = arith.constant 2.560000e+02 : f32
    %103 = vector.broadcast %cst_67 : f32 to vector<16x1xf32>
    %104 = arith.divf %102, %103 : vector<16x1xf32>
    %105 = vector.broadcast %104 : vector<16x1xf32> to vector<16x256xf32>
    %106 = arith.subf %96, %105 : vector<16x256xf32>
    %107 = arith.mulf %106, %106 : vector<16x256xf32>
    %cst_68 = arith.constant dense<0.000000e+00> : vector<16xf32>
    %108 = vector.multi_reduction <add>, %107, %cst_68 [1] : vector<16x256xf32> to vector<16xf32>
    %109 = vector.shape_cast %108 : vector<16xf32> to vector<16x1xf32>
    %cst_69 = arith.constant 2.560000e+02 : f32
    %110 = vector.broadcast %cst_69 : f32 to vector<16x1xf32>
    %111 = arith.divf %109, %110 : vector<16x1xf32>
    %112 = vector.broadcast %104 : vector<16x1xf32> to vector<16x256xf32>
    %113 = arith.subf %96, %112 : vector<16x256xf32>
    %cst_70 = arith.constant 9.99999974E-6 : f32
    %114 = vector.broadcast %cst_70 : f32 to vector<16x1xf32>
    %115 = arith.addf %111, %114 : vector<16x1xf32>
    %116 = math.rsqrt %115 : vector<16x1xf32>
    %117 = vector.broadcast %116 : vector<16x1xf32> to vector<16x256xf32>
    %118 = arith.mulf %113, %117 : vector<16x256xf32>
    %119 = vector.broadcast %98 : vector<16x1xf32> to vector<16x256xf32>
    %120 = arith.mulf %118, %119 : vector<16x256xf32>
    %121 = vector.broadcast %100 : vector<16x1xf32> to vector<16x256xf32>
    %122 = arith.addf %120, %121 : vector<16x256xf32>
    %cst_71 = arith.constant 0.000000e+00 : f32
    %123 = vector.broadcast %cst_71 : f32 to vector<16x256xf32>
    %124 = arith.cmpf oge, %122, %123 : vector<16x256xf32>
    %cst_72 = arith.constant 2.000000e-01 : f32
    %125 = vector.broadcast %cst_72 : f32 to vector<16x256xf32>
    %126 = arith.mulf %125, %122 : vector<16x256xf32>
    %127 = arith.select %124, %122, %126 : vector<16x256xi1>, vector<16x256xf32>
    %128 = arith.truncf %127 : vector<16x256xf32> to vector<16x256xbf16>
    %cst_73 = arith.constant 0.000000e+00 : f32
    %129 = vector.broadcast %cst_73 : f32 to vector<32x64xf32>
    %c0_74 = arith.constant 0 : index
    %c0_75 = arith.constant 0 : index
    %c0_76 = arith.constant 0 : index
    %130 = vector.load %arg7[%c0_74, %c0_75, %c0_76] : memref<16x256x64xbf16, #tpu.memory_space<vmem>>, vector<1x256x64xbf16>
    %131 = vector.shape_cast %130 : vector<1x256x64xbf16> to vector<256x64xbf16>
    %cst_77 = arith.constant dense<0.000000e+00> : vector<16x64xf32>
    %132 = tpu.matmul %128, %131, %cst_77 {dimension_numbers = #tpu.dot_dimension_numbers<[1], [0], [0], [1], [0, 0, 1, 1], [], []>} : vector<16x256xbf16>, vector<256x64xbf16>, vector<16x64xf32> -> vector<16x64xf32>
    %133 = arith.truncf %132 : vector<16x64xf32> to vector<16x64xbf16>
    %c0_78 = arith.constant 0 : index
    %c0_79 = arith.constant 0 : index
    %c0_80 = arith.constant 0 : index
    %134 = vector.load %arg8[%c0_78, %c0_79, %c0_80] : memref<16x32x16xbf16, #tpu.memory_space<vmem>>, vector<1x32x16xbf16>
    %135 = vector.shape_cast %134 : vector<1x32x16xbf16> to vector<32x16xbf16>
    %cst_81 = arith.constant dense<0.000000e+00> : vector<32x64xf32>
    %136 = tpu.matmul %135, %133, %cst_81 {dimension_numbers = #tpu.dot_dimension_numbers<[1], [0], [0], [1], [0, 0, 1, 1], [], []>} : vector<32x16xbf16>, vector<16x64xbf16>, vector<32x64xf32> -> vector<32x64xf32>
    %137 = arith.addf %129, %136 : vector<32x64xf32>
    %c1_82 = arith.constant 1 : index
    %c0_83 = arith.constant 0 : index
    %c0_84 = arith.constant 0 : index
    %138 = vector.load %arg7[%c1_82, %c0_83, %c0_84] : memref<16x256x64xbf16, #tpu.memory_space<vmem>>, vector<1x256x64xbf16>
    %139 = vector.shape_cast %138 : vector<1x256x64xbf16> to vector<256x64xbf16>
    %cst_85 = arith.constant dense<0.000000e+00> : vector<16x64xf32>
    %140 = tpu.matmul %128, %139, %cst_85 {dimension_numbers = #tpu.dot_dimension_numbers<[1], [0], [0], [1], [0, 0, 1, 1], [], []>} : vector<16x256xbf16>, vector<256x64xbf16>, vector<16x64xf32> -> vector<16x64xf32>
    %141 = arith.truncf %140 : vector<16x64xf32> to vector<16x64xbf16>
    %c1_86 = arith.constant 1 : index
    %c0_87 = arith.constant 0 : index
    %c0_88 = arith.constant 0 : index
    %142 = vector.load %arg8[%c1_86, %c0_87, %c0_88] : memref<16x32x16xbf16, #tpu.memory_space<vmem>>, vector<1x32x16xbf16>
    %143 = vector.shape_cast %142 : vector<1x32x16xbf16> to vector<32x16xbf16>
    %cst_89 = arith.constant dense<0.000000e+00> : vector<32x64xf32>
    %144 = tpu.matmul %143, %141, %cst_89 {dimension_numbers = #tpu.dot_dimension_numbers<[1], [0], [0], [1], [0, 0, 1, 1], [], []>} : vector<32x16xbf16>, vector<16x64xbf16>, vector<32x64xf32> -> vector<32x64xf32>
    %145 = arith.addf %137, %144 : vector<32x64xf32>
    %c2_90 = arith.constant 2 : index
    %c0_91 = arith.constant 0 : index
    %c0_92 = arith.constant 0 : index
    %146 = vector.load %arg7[%c2_90, %c0_91, %c0_92] : memref<16x256x64xbf16, #tpu.memory_space<vmem>>, vector<1x256x64xbf16>
    %147 = vector.shape_cast %146 : vector<1x256x64xbf16> to vector<256x64xbf16>
    %cst_93 = arith.constant dense<0.000000e+00> : vector<16x64xf32>
    %148 = tpu.matmul %128, %147, %cst_93 {dimension_numbers = #tpu.dot_dimension_numbers<[1], [0], [0], [1], [0, 0, 1, 1], [], []>} : vector<16x256xbf16>, vector<256x64xbf16>, vector<16x64xf32> -> vector<16x64xf32>
    %149 = arith.truncf %148 : vector<16x64xf32> to vector<16x64xbf16>
    %c2_94 = arith.constant 2 : index
    %c0_95 = arith.constant 0 : index
    %c0_96 = arith.constant 0 : index
    %150 = vector.load %arg8[%c2_94, %c0_95, %c0_96] : memref<16x32x16xbf16, #tpu.memory_space<vmem>>, vector<1x32x16xbf16>
    %151 = vector.shape_cast %150 : vector<1x32x16xbf16> to vector<32x16xbf16>
    %cst_97 = arith.constant dense<0.000000e+00> : vector<32x64xf32>
    %152 = tpu.matmul %151, %149, %cst_97 {dimension_numbers = #tpu.dot_dimension_numbers<[1], [0], [0], [1], [0, 0, 1, 1], [], []>} : vector<32x16xbf16>, vector<16x64xbf16>, vector<32x64xf32> -> vector<32x64xf32>
    %153 = arith.addf %145, %152 : vector<32x64xf32>
    %c3_98 = arith.constant 3 : index
    %c0_99 = arith.constant 0 : index
    %c0_100 = arith.constant 0 : index
    %154 = vector.load %arg7[%c3_98, %c0_99, %c0_100] : memref<16x256x64xbf16, #tpu.memory_space<vmem>>, vector<1x256x64xbf16>
    %155 = vector.shape_cast %154 : vector<1x256x64xbf16> to vector<256x64xbf16>
    %cst_101 = arith.constant dense<0.000000e+00> : vector<16x64xf32>
    %156 = tpu.matmul %128, %155, %cst_101 {dimension_numbers = #tpu.dot_dimension_numbers<[1], [0], [0], [1], [0, 0, 1, 1], [], []>} : vector<16x256xbf16>, vector<256x64xbf16>, vector<16x64xf32> -> vector<16x64xf32>
    %157 = arith.truncf %156 : vector<16x64xf32> to vector<16x64xbf16>
    %c3_102 = arith.constant 3 : index
    %c0_103 = arith.constant 0 : index
    %c0_104 = arith.constant 0 : index
    %158 = vector.load %arg8[%c3_102, %c0_103, %c0_104] : memref<16x32x16xbf16, #tpu.memory_space<vmem>>, vector<1x32x16xbf16>
    %159 = vector.shape_cast %158 : vector<1x32x16xbf16> to vector<32x16xbf16>
    %cst_105 = arith.constant dense<0.000000e+00> : vector<32x64xf32>
    %160 = tpu.matmul %159, %157, %cst_105 {dimension_numbers = #tpu.dot_dimension_numbers<[1], [0], [0], [1], [0, 0, 1, 1], [], []>} : vector<32x16xbf16>, vector<16x64xbf16>, vector<32x64xf32> -> vector<32x64xf32>
    %161 = arith.addf %153, %160 : vector<32x64xf32>
    %c4_106 = arith.constant 4 : index
    %c0_107 = arith.constant 0 : index
    %c0_108 = arith.constant 0 : index
    %162 = vector.load %arg7[%c4_106, %c0_107, %c0_108] : memref<16x256x64xbf16, #tpu.memory_space<vmem>>, vector<1x256x64xbf16>
    %163 = vector.shape_cast %162 : vector<1x256x64xbf16> to vector<256x64xbf16>
    %cst_109 = arith.constant dense<0.000000e+00> : vector<16x64xf32>
    %164 = tpu.matmul %128, %163, %cst_109 {dimension_numbers = #tpu.dot_dimension_numbers<[1], [0], [0], [1], [0, 0, 1, 1], [], []>} : vector<16x256xbf16>, vector<256x64xbf16>, vector<16x64xf32> -> vector<16x64xf32>
    %165 = arith.truncf %164 : vector<16x64xf32> to vector<16x64xbf16>
    %c4_110 = arith.constant 4 : index
    %c0_111 = arith.constant 0 : index
    %c0_112 = arith.constant 0 : index
    %166 = vector.load %arg8[%c4_110, %c0_111, %c0_112] : memref<16x32x16xbf16, #tpu.memory_space<vmem>>, vector<1x32x16xbf16>
    %167 = vector.shape_cast %166 : vector<1x32x16xbf16> to vector<32x16xbf16>
    %cst_113 = arith.constant dense<0.000000e+00> : vector<32x64xf32>
    %168 = tpu.matmul %167, %165, %cst_113 {dimension_numbers = #tpu.dot_dimension_numbers<[1], [0], [0], [1], [0, 0, 1, 1], [], []>} : vector<32x16xbf16>, vector<16x64xbf16>, vector<32x64xf32> -> vector<32x64xf32>
    %169 = arith.addf %161, %168 : vector<32x64xf32>
    %c5_114 = arith.constant 5 : index
    %c0_115 = arith.constant 0 : index
    %c0_116 = arith.constant 0 : index
    %170 = vector.load %arg7[%c5_114, %c0_115, %c0_116] : memref<16x256x64xbf16, #tpu.memory_space<vmem>>, vector<1x256x64xbf16>
    %171 = vector.shape_cast %170 : vector<1x256x64xbf16> to vector<256x64xbf16>
    %cst_117 = arith.constant dense<0.000000e+00> : vector<16x64xf32>
    %172 = tpu.matmul %128, %171, %cst_117 {dimension_numbers = #tpu.dot_dimension_numbers<[1], [0], [0], [1], [0, 0, 1, 1], [], []>} : vector<16x256xbf16>, vector<256x64xbf16>, vector<16x64xf32> -> vector<16x64xf32>
    %173 = arith.truncf %172 : vector<16x64xf32> to vector<16x64xbf16>
    %c5_118 = arith.constant 5 : index
    %c0_119 = arith.constant 0 : index
    %c0_120 = arith.constant 0 : index
    %174 = vector.load %arg8[%c5_118, %c0_119, %c0_120] : memref<16x32x16xbf16, #tpu.memory_space<vmem>>, vector<1x32x16xbf16>
    %175 = vector.shape_cast %174 : vector<1x32x16xbf16> to vector<32x16xbf16>
    %cst_121 = arith.constant dense<0.000000e+00> : vector<32x64xf32>
    %176 = tpu.matmul %175, %173, %cst_121 {dimension_numbers = #tpu.dot_dimension_numbers<[1], [0], [0], [1], [0, 0, 1, 1], [], []>} : vector<32x16xbf16>, vector<16x64xbf16>, vector<32x64xf32> -> vector<32x64xf32>
    %177 = arith.addf %169, %176 : vector<32x64xf32>
    %c6_122 = arith.constant 6 : index
    %c0_123 = arith.constant 0 : index
    %c0_124 = arith.constant 0 : index
    %178 = vector.load %arg7[%c6_122, %c0_123, %c0_124] : memref<16x256x64xbf16, #tpu.memory_space<vmem>>, vector<1x256x64xbf16>
    %179 = vector.shape_cast %178 : vector<1x256x64xbf16> to vector<256x64xbf16>
    %cst_125 = arith.constant dense<0.000000e+00> : vector<16x64xf32>
    %180 = tpu.matmul %128, %179, %cst_125 {dimension_numbers = #tpu.dot_dimension_numbers<[1], [0], [0], [1], [0, 0, 1, 1], [], []>} : vector<16x256xbf16>, vector<256x64xbf16>, vector<16x64xf32> -> vector<16x64xf32>
    %181 = arith.truncf %180 : vector<16x64xf32> to vector<16x64xbf16>
    %c6_126 = arith.constant 6 : index
    %c0_127 = arith.constant 0 : index
    %c0_128 = arith.constant 0 : index
    %182 = vector.load %arg8[%c6_126, %c0_127, %c0_128] : memref<16x32x16xbf16, #tpu.memory_space<vmem>>, vector<1x32x16xbf16>
    %183 = vector.shape_cast %182 : vector<1x32x16xbf16> to vector<32x16xbf16>
    %cst_129 = arith.constant dense<0.000000e+00> : vector<32x64xf32>
    %184 = tpu.matmul %183, %181, %cst_129 {dimension_numbers = #tpu.dot_dimension_numbers<[1], [0], [0], [1], [0, 0, 1, 1], [], []>} : vector<32x16xbf16>, vector<16x64xbf16>, vector<32x64xf32> -> vector<32x64xf32>
    %185 = arith.addf %177, %184 : vector<32x64xf32>
    %c7_130 = arith.constant 7 : index
    %c0_131 = arith.constant 0 : index
    %c0_132 = arith.constant 0 : index
    %186 = vector.load %arg7[%c7_130, %c0_131, %c0_132] : memref<16x256x64xbf16, #tpu.memory_space<vmem>>, vector<1x256x64xbf16>
    %187 = vector.shape_cast %186 : vector<1x256x64xbf16> to vector<256x64xbf16>
    %cst_133 = arith.constant dense<0.000000e+00> : vector<16x64xf32>
    %188 = tpu.matmul %128, %187, %cst_133 {dimension_numbers = #tpu.dot_dimension_numbers<[1], [0], [0], [1], [0, 0, 1, 1], [], []>} : vector<16x256xbf16>, vector<256x64xbf16>, vector<16x64xf32> -> vector<16x64xf32>
    %189 = arith.truncf %188 : vector<16x64xf32> to vector<16x64xbf16>
    %c7_134 = arith.constant 7 : index
    %c0_135 = arith.constant 0 : index
    %c0_136 = arith.constant 0 : index
    %190 = vector.load %arg8[%c7_134, %c0_135, %c0_136] : memref<16x32x16xbf16, #tpu.memory_space<vmem>>, vector<1x32x16xbf16>
    %191 = vector.shape_cast %190 : vector<1x32x16xbf16> to vector<32x16xbf16>
    %cst_137 = arith.constant dense<0.000000e+00> : vector<32x64xf32>
    %192 = tpu.matmul %191, %189, %cst_137 {dimension_numbers = #tpu.dot_dimension_numbers<[1], [0], [0], [1], [0, 0, 1, 1], [], []>} : vector<32x16xbf16>, vector<16x64xbf16>, vector<32x64xf32> -> vector<32x64xf32>
    %193 = arith.addf %185, %192 : vector<32x64xf32>
    %c8_138 = arith.constant 8 : index
    %c0_139 = arith.constant 0 : index
    %c0_140 = arith.constant 0 : index
    %194 = vector.load %arg7[%c8_138, %c0_139, %c0_140] : memref<16x256x64xbf16, #tpu.memory_space<vmem>>, vector<1x256x64xbf16>
    %195 = vector.shape_cast %194 : vector<1x256x64xbf16> to vector<256x64xbf16>
    %cst_141 = arith.constant dense<0.000000e+00> : vector<16x64xf32>
    %196 = tpu.matmul %128, %195, %cst_141 {dimension_numbers = #tpu.dot_dimension_numbers<[1], [0], [0], [1], [0, 0, 1, 1], [], []>} : vector<16x256xbf16>, vector<256x64xbf16>, vector<16x64xf32> -> vector<16x64xf32>
    %197 = arith.truncf %196 : vector<16x64xf32> to vector<16x64xbf16>
    %c8_142 = arith.constant 8 : index
    %c0_143 = arith.constant 0 : index
    %c0_144 = arith.constant 0 : index
    %198 = vector.load %arg8[%c8_142, %c0_143, %c0_144] : memref<16x32x16xbf16, #tpu.memory_space<vmem>>, vector<1x32x16xbf16>
    %199 = vector.shape_cast %198 : vector<1x32x16xbf16> to vector<32x16xbf16>
    %cst_145 = arith.constant dense<0.000000e+00> : vector<32x64xf32>
    %200 = tpu.matmul %199, %197, %cst_145 {dimension_numbers = #tpu.dot_dimension_numbers<[1], [0], [0], [1], [0, 0, 1, 1], [], []>} : vector<32x16xbf16>, vector<16x64xbf16>, vector<32x64xf32> -> vector<32x64xf32>
    %201 = arith.addf %193, %200 : vector<32x64xf32>
    %c9_146 = arith.constant 9 : index
    %c0_147 = arith.constant 0 : index
    %c0_148 = arith.constant 0 : index
    %202 = vector.load %arg7[%c9_146, %c0_147, %c0_148] : memref<16x256x64xbf16, #tpu.memory_space<vmem>>, vector<1x256x64xbf16>
    %203 = vector.shape_cast %202 : vector<1x256x64xbf16> to vector<256x64xbf16>
    %cst_149 = arith.constant dense<0.000000e+00> : vector<16x64xf32>
    %204 = tpu.matmul %128, %203, %cst_149 {dimension_numbers = #tpu.dot_dimension_numbers<[1], [0], [0], [1], [0, 0, 1, 1], [], []>} : vector<16x256xbf16>, vector<256x64xbf16>, vector<16x64xf32> -> vector<16x64xf32>
    %205 = arith.truncf %204 : vector<16x64xf32> to vector<16x64xbf16>
    %c9_150 = arith.constant 9 : index
    %c0_151 = arith.constant 0 : index
    %c0_152 = arith.constant 0 : index
    %206 = vector.load %arg8[%c9_150, %c0_151, %c0_152] : memref<16x32x16xbf16, #tpu.memory_space<vmem>>, vector<1x32x16xbf16>
    %207 = vector.shape_cast %206 : vector<1x32x16xbf16> to vector<32x16xbf16>
    %cst_153 = arith.constant dense<0.000000e+00> : vector<32x64xf32>
    %208 = tpu.matmul %207, %205, %cst_153 {dimension_numbers = #tpu.dot_dimension_numbers<[1], [0], [0], [1], [0, 0, 1, 1], [], []>} : vector<32x16xbf16>, vector<16x64xbf16>, vector<32x64xf32> -> vector<32x64xf32>
    %209 = arith.addf %201, %208 : vector<32x64xf32>
    %c10_154 = arith.constant 10 : index
    %c0_155 = arith.constant 0 : index
    %c0_156 = arith.constant 0 : index
    %210 = vector.load %arg7[%c10_154, %c0_155, %c0_156] : memref<16x256x64xbf16, #tpu.memory_space<vmem>>, vector<1x256x64xbf16>
    %211 = vector.shape_cast %210 : vector<1x256x64xbf16> to vector<256x64xbf16>
    %cst_157 = arith.constant dense<0.000000e+00> : vector<16x64xf32>
    %212 = tpu.matmul %128, %211, %cst_157 {dimension_numbers = #tpu.dot_dimension_numbers<[1], [0], [0], [1], [0, 0, 1, 1], [], []>} : vector<16x256xbf16>, vector<256x64xbf16>, vector<16x64xf32> -> vector<16x64xf32>
    %213 = arith.truncf %212 : vector<16x64xf32> to vector<16x64xbf16>
    %c10_158 = arith.constant 10 : index
    %c0_159 = arith.constant 0 : index
    %c0_160 = arith.constant 0 : index
    %214 = vector.load %arg8[%c10_158, %c0_159, %c0_160] : memref<16x32x16xbf16, #tpu.memory_space<vmem>>, vector<1x32x16xbf16>
    %215 = vector.shape_cast %214 : vector<1x32x16xbf16> to vector<32x16xbf16>
    %cst_161 = arith.constant dense<0.000000e+00> : vector<32x64xf32>
    %216 = tpu.matmul %215, %213, %cst_161 {dimension_numbers = #tpu.dot_dimension_numbers<[1], [0], [0], [1], [0, 0, 1, 1], [], []>} : vector<32x16xbf16>, vector<16x64xbf16>, vector<32x64xf32> -> vector<32x64xf32>
    %217 = arith.addf %209, %216 : vector<32x64xf32>
    %c11_162 = arith.constant 11 : index
    %c0_163 = arith.constant 0 : index
    %c0_164 = arith.constant 0 : index
    %218 = vector.load %arg7[%c11_162, %c0_163, %c0_164] : memref<16x256x64xbf16, #tpu.memory_space<vmem>>, vector<1x256x64xbf16>
    %219 = vector.shape_cast %218 : vector<1x256x64xbf16> to vector<256x64xbf16>
    %cst_165 = arith.constant dense<0.000000e+00> : vector<16x64xf32>
    %220 = tpu.matmul %128, %219, %cst_165 {dimension_numbers = #tpu.dot_dimension_numbers<[1], [0], [0], [1], [0, 0, 1, 1], [], []>} : vector<16x256xbf16>, vector<256x64xbf16>, vector<16x64xf32> -> vector<16x64xf32>
    %221 = arith.truncf %220 : vector<16x64xf32> to vector<16x64xbf16>
    %c11_166 = arith.constant 11 : index
    %c0_167 = arith.constant 0 : index
    %c0_168 = arith.constant 0 : index
    %222 = vector.load %arg8[%c11_166, %c0_167, %c0_168] : memref<16x32x16xbf16, #tpu.memory_space<vmem>>, vector<1x32x16xbf16>
    %223 = vector.shape_cast %222 : vector<1x32x16xbf16> to vector<32x16xbf16>
    %cst_169 = arith.constant dense<0.000000e+00> : vector<32x64xf32>
    %224 = tpu.matmul %223, %221, %cst_169 {dimension_numbers = #tpu.dot_dimension_numbers<[1], [0], [0], [1], [0, 0, 1, 1], [], []>} : vector<32x16xbf16>, vector<16x64xbf16>, vector<32x64xf32> -> vector<32x64xf32>
    %225 = arith.addf %217, %224 : vector<32x64xf32>
    %c12_170 = arith.constant 12 : index
    %c0_171 = arith.constant 0 : index
    %c0_172 = arith.constant 0 : index
    %226 = vector.load %arg7[%c12_170, %c0_171, %c0_172] : memref<16x256x64xbf16, #tpu.memory_space<vmem>>, vector<1x256x64xbf16>
    %227 = vector.shape_cast %226 : vector<1x256x64xbf16> to vector<256x64xbf16>
    %cst_173 = arith.constant dense<0.000000e+00> : vector<16x64xf32>
    %228 = tpu.matmul %128, %227, %cst_173 {dimension_numbers = #tpu.dot_dimension_numbers<[1], [0], [0], [1], [0, 0, 1, 1], [], []>} : vector<16x256xbf16>, vector<256x64xbf16>, vector<16x64xf32> -> vector<16x64xf32>
    %229 = arith.truncf %228 : vector<16x64xf32> to vector<16x64xbf16>
    %c12_174 = arith.constant 12 : index
    %c0_175 = arith.constant 0 : index
    %c0_176 = arith.constant 0 : index
    %230 = vector.load %arg8[%c12_174, %c0_175, %c0_176] : memref<16x32x16xbf16, #tpu.memory_space<vmem>>, vector<1x32x16xbf16>
    %231 = vector.shape_cast %230 : vector<1x32x16xbf16> to vector<32x16xbf16>
    %cst_177 = arith.constant dense<0.000000e+00> : vector<32x64xf32>
    %232 = tpu.matmul %231, %229, %cst_177 {dimension_numbers = #tpu.dot_dimension_numbers<[1], [0], [0], [1], [0, 0, 1, 1], [], []>} : vector<32x16xbf16>, vector<16x64xbf16>, vector<32x64xf32> -> vector<32x64xf32>
    %233 = arith.addf %225, %232 : vector<32x64xf32>
    %c13_178 = arith.constant 13 : index
    %c0_179 = arith.constant 0 : index
    %c0_180 = arith.constant 0 : index
    %234 = vector.load %arg7[%c13_178, %c0_179, %c0_180] : memref<16x256x64xbf16, #tpu.memory_space<vmem>>, vector<1x256x64xbf16>
    %235 = vector.shape_cast %234 : vector<1x256x64xbf16> to vector<256x64xbf16>
    %cst_181 = arith.constant dense<0.000000e+00> : vector<16x64xf32>
    %236 = tpu.matmul %128, %235, %cst_181 {dimension_numbers = #tpu.dot_dimension_numbers<[1], [0], [0], [1], [0, 0, 1, 1], [], []>} : vector<16x256xbf16>, vector<256x64xbf16>, vector<16x64xf32> -> vector<16x64xf32>
    %237 = arith.truncf %236 : vector<16x64xf32> to vector<16x64xbf16>
    %c13_182 = arith.constant 13 : index
    %c0_183 = arith.constant 0 : index
    %c0_184 = arith.constant 0 : index
    %238 = vector.load %arg8[%c13_182, %c0_183, %c0_184] : memref<16x32x16xbf16, #tpu.memory_space<vmem>>, vector<1x32x16xbf16>
    %239 = vector.shape_cast %238 : vector<1x32x16xbf16> to vector<32x16xbf16>
    %cst_185 = arith.constant dense<0.000000e+00> : vector<32x64xf32>
    %240 = tpu.matmul %239, %237, %cst_185 {dimension_numbers = #tpu.dot_dimension_numbers<[1], [0], [0], [1], [0, 0, 1, 1], [], []>} : vector<32x16xbf16>, vector<16x64xbf16>, vector<32x64xf32> -> vector<32x64xf32>
    %241 = arith.addf %233, %240 : vector<32x64xf32>
    %c14_186 = arith.constant 14 : index
    %c0_187 = arith.constant 0 : index
    %c0_188 = arith.constant 0 : index
    %242 = vector.load %arg7[%c14_186, %c0_187, %c0_188] : memref<16x256x64xbf16, #tpu.memory_space<vmem>>, vector<1x256x64xbf16>
    %243 = vector.shape_cast %242 : vector<1x256x64xbf16> to vector<256x64xbf16>
    %cst_189 = arith.constant dense<0.000000e+00> : vector<16x64xf32>
    %244 = tpu.matmul %128, %243, %cst_189 {dimension_numbers = #tpu.dot_dimension_numbers<[1], [0], [0], [1], [0, 0, 1, 1], [], []>} : vector<16x256xbf16>, vector<256x64xbf16>, vector<16x64xf32> -> vector<16x64xf32>
    %245 = arith.truncf %244 : vector<16x64xf32> to vector<16x64xbf16>
    %c14_190 = arith.constant 14 : index
    %c0_191 = arith.constant 0 : index
    %c0_192 = arith.constant 0 : index
    %246 = vector.load %arg8[%c14_190, %c0_191, %c0_192] : memref<16x32x16xbf16, #tpu.memory_space<vmem>>, vector<1x32x16xbf16>
    %247 = vector.shape_cast %246 : vector<1x32x16xbf16> to vector<32x16xbf16>
    %cst_193 = arith.constant dense<0.000000e+00> : vector<32x64xf32>
    %248 = tpu.matmul %247, %245, %cst_193 {dimension_numbers = #tpu.dot_dimension_numbers<[1], [0], [0], [1], [0, 0, 1, 1], [], []>} : vector<32x16xbf16>, vector<16x64xbf16>, vector<32x64xf32> -> vector<32x64xf32>
    %249 = arith.addf %241, %248 : vector<32x64xf32>
    %c15_194 = arith.constant 15 : index
    %c0_195 = arith.constant 0 : index
    %c0_196 = arith.constant 0 : index
    %250 = vector.load %arg7[%c15_194, %c0_195, %c0_196] : memref<16x256x64xbf16, #tpu.memory_space<vmem>>, vector<1x256x64xbf16>
    %251 = vector.shape_cast %250 : vector<1x256x64xbf16> to vector<256x64xbf16>
    %cst_197 = arith.constant dense<0.000000e+00> : vector<16x64xf32>
    %252 = tpu.matmul %128, %251, %cst_197 {dimension_numbers = #tpu.dot_dimension_numbers<[1], [0], [0], [1], [0, 0, 1, 1], [], []>} : vector<16x256xbf16>, vector<256x64xbf16>, vector<16x64xf32> -> vector<16x64xf32>
    %253 = arith.truncf %252 : vector<16x64xf32> to vector<16x64xbf16>
    %c15_198 = arith.constant 15 : index
    %c0_199 = arith.constant 0 : index
    %c0_200 = arith.constant 0 : index
    %254 = vector.load %arg8[%c15_198, %c0_199, %c0_200] : memref<16x32x16xbf16, #tpu.memory_space<vmem>>, vector<1x32x16xbf16>
    %255 = vector.shape_cast %254 : vector<1x32x16xbf16> to vector<32x16xbf16>
    %cst_201 = arith.constant dense<0.000000e+00> : vector<32x64xf32>
    %256 = tpu.matmul %255, %253, %cst_201 {dimension_numbers = #tpu.dot_dimension_numbers<[1], [0], [0], [1], [0, 0, 1, 1], [], []>} : vector<32x16xbf16>, vector<16x64xbf16>, vector<32x64xf32> -> vector<32x64xf32>
    %257 = arith.addf %249, %256 : vector<32x64xf32>
    %c0_202 = arith.constant 0 : index
    %c0_203 = arith.constant 0 : index
    %c0_204 = arith.constant 0 : index
    %258 = vector.load %arg9[%c0_202, %c0_203, %c0_204] : memref<2x32x1xf32, #tpu.memory_space<vmem>>, vector<1x32x1xf32>
    %259 = vector.shape_cast %258 : vector<1x32x1xf32> to vector<32x1xf32>
    %c1_205 = arith.constant 1 : index
    %c0_206 = arith.constant 0 : index
    %c0_207 = arith.constant 0 : index
    %260 = vector.load %arg9[%c1_205, %c0_206, %c0_207] : memref<2x32x1xf32, #tpu.memory_space<vmem>>, vector<1x32x1xf32>
    %261 = vector.shape_cast %260 : vector<1x32x1xf32> to vector<32x1xf32>
    %cst_208 = arith.constant dense<0.000000e+00> : vector<32xf32>
    %262 = vector.multi_reduction <add>, %257, %cst_208 [1] : vector<32x64xf32> to vector<32xf32>
    %263 = vector.shape_cast %262 : vector<32xf32> to vector<32x1xf32>
    %cst_209 = arith.constant 6.400000e+01 : f32
    %264 = vector.broadcast %cst_209 : f32 to vector<32x1xf32>
    %265 = arith.divf %263, %264 : vector<32x1xf32>
    %266 = vector.broadcast %265 : vector<32x1xf32> to vector<32x64xf32>
    %267 = arith.subf %257, %266 : vector<32x64xf32>
    %268 = arith.mulf %267, %267 : vector<32x64xf32>
    %cst_210 = arith.constant dense<0.000000e+00> : vector<32xf32>
    %269 = vector.multi_reduction <add>, %268, %cst_210 [1] : vector<32x64xf32> to vector<32xf32>
    %270 = vector.shape_cast %269 : vector<32xf32> to vector<32x1xf32>
    %cst_211 = arith.constant 6.400000e+01 : f32
    %271 = vector.broadcast %cst_211 : f32 to vector<32x1xf32>
    %272 = arith.divf %270, %271 : vector<32x1xf32>
    %273 = vector.broadcast %265 : vector<32x1xf32> to vector<32x64xf32>
    %274 = arith.subf %257, %273 : vector<32x64xf32>
    %cst_212 = arith.constant 9.99999974E-6 : f32
    %275 = vector.broadcast %cst_212 : f32 to vector<32x1xf32>
    %276 = arith.addf %272, %275 : vector<32x1xf32>
    %277 = math.rsqrt %276 : vector<32x1xf32>
    %278 = vector.broadcast %277 : vector<32x1xf32> to vector<32x64xf32>
    %279 = arith.mulf %274, %278 : vector<32x64xf32>
    %280 = vector.broadcast %259 : vector<32x1xf32> to vector<32x64xf32>
    %281 = arith.mulf %279, %280 : vector<32x64xf32>
    %282 = vector.broadcast %261 : vector<32x1xf32> to vector<32x64xf32>
    %283 = arith.addf %281, %282 : vector<32x64xf32>
    %cst_213 = arith.constant 0.000000e+00 : f32
    %284 = vector.broadcast %cst_213 : f32 to vector<32x64xf32>
    %285 = arith.cmpf oge, %283, %284 : vector<32x64xf32>
    %cst_214 = arith.constant 2.000000e-01 : f32
    %286 = vector.broadcast %cst_214 : f32 to vector<32x64xf32>
    %287 = arith.mulf %286, %283 : vector<32x64xf32>
    %288 = arith.select %285, %283, %287 : vector<32x64xi1>, vector<32x64xf32>
    %289 = arith.truncf %288 : vector<32x64xf32> to vector<32x64xbf16>
    %cst_215 = arith.constant 0.000000e+00 : f32
    %290 = vector.broadcast %cst_215 : f32 to vector<64x16xf32>
    %c0_216 = arith.constant 0 : index
    %c0_217 = arith.constant 0 : index
    %c0_218 = arith.constant 0 : index
    %291 = vector.load %arg10[%c0_216, %c0_217, %c0_218] : memref<16x64x16xbf16, #tpu.memory_space<vmem>>, vector<1x64x16xbf16>
    %292 = vector.shape_cast %291 : vector<1x64x16xbf16> to vector<64x16xbf16>
    %cst_219 = arith.constant dense<0.000000e+00> : vector<32x16xf32>
    %293 = tpu.matmul %289, %292, %cst_219 {dimension_numbers = #tpu.dot_dimension_numbers<[1], [0], [0], [1], [0, 0, 1, 1], [], []>} : vector<32x64xbf16>, vector<64x16xbf16>, vector<32x16xf32> -> vector<32x16xf32>
    %294 = arith.truncf %293 : vector<32x16xf32> to vector<32x16xbf16>
    %c0_220 = arith.constant 0 : index
    %c0_221 = arith.constant 0 : index
    %c0_222 = arith.constant 0 : index
    %295 = vector.load %arg11[%c0_220, %c0_221, %c0_222] : memref<16x64x32xbf16, #tpu.memory_space<vmem>>, vector<1x64x32xbf16>
    %296 = vector.shape_cast %295 : vector<1x64x32xbf16> to vector<64x32xbf16>
    %cst_223 = arith.constant dense<0.000000e+00> : vector<64x16xf32>
    %297 = tpu.matmul %296, %294, %cst_223 {dimension_numbers = #tpu.dot_dimension_numbers<[1], [0], [0], [1], [0, 0, 1, 1], [], []>} : vector<64x32xbf16>, vector<32x16xbf16>, vector<64x16xf32> -> vector<64x16xf32>
    %298 = arith.addf %290, %297 : vector<64x16xf32>
    %c1_224 = arith.constant 1 : index
    %c0_225 = arith.constant 0 : index
    %c0_226 = arith.constant 0 : index
    %299 = vector.load %arg10[%c1_224, %c0_225, %c0_226] : memref<16x64x16xbf16, #tpu.memory_space<vmem>>, vector<1x64x16xbf16>
    %300 = vector.shape_cast %299 : vector<1x64x16xbf16> to vector<64x16xbf16>
    %cst_227 = arith.constant dense<0.000000e+00> : vector<32x16xf32>
    %301 = tpu.matmul %289, %300, %cst_227 {dimension_numbers = #tpu.dot_dimension_numbers<[1], [0], [0], [1], [0, 0, 1, 1], [], []>} : vector<32x64xbf16>, vector<64x16xbf16>, vector<32x16xf32> -> vector<32x16xf32>
    %302 = arith.truncf %301 : vector<32x16xf32> to vector<32x16xbf16>
    %c1_228 = arith.constant 1 : index
    %c0_229 = arith.constant 0 : index
    %c0_230 = arith.constant 0 : index
    %303 = vector.load %arg11[%c1_228, %c0_229, %c0_230] : memref<16x64x32xbf16, #tpu.memory_space<vmem>>, vector<1x64x32xbf16>
    %304 = vector.shape_cast %303 : vector<1x64x32xbf16> to vector<64x32xbf16>
    %cst_231 = arith.constant dense<0.000000e+00> : vector<64x16xf32>
    %305 = tpu.matmul %304, %302, %cst_231 {dimension_numbers = #tpu.dot_dimension_numbers<[1], [0], [0], [1], [0, 0, 1, 1], [], []>} : vector<64x32xbf16>, vector<32x16xbf16>, vector<64x16xf32> -> vector<64x16xf32>
    %306 = arith.addf %298, %305 : vector<64x16xf32>
    %c2_232 = arith.constant 2 : index
    %c0_233 = arith.constant 0 : index
    %c0_234 = arith.constant 0 : index
    %307 = vector.load %arg10[%c2_232, %c0_233, %c0_234] : memref<16x64x16xbf16, #tpu.memory_space<vmem>>, vector<1x64x16xbf16>
    %308 = vector.shape_cast %307 : vector<1x64x16xbf16> to vector<64x16xbf16>
    %cst_235 = arith.constant dense<0.000000e+00> : vector<32x16xf32>
    %309 = tpu.matmul %289, %308, %cst_235 {dimension_numbers = #tpu.dot_dimension_numbers<[1], [0], [0], [1], [0, 0, 1, 1], [], []>} : vector<32x64xbf16>, vector<64x16xbf16>, vector<32x16xf32> -> vector<32x16xf32>
    %310 = arith.truncf %309 : vector<32x16xf32> to vector<32x16xbf16>
    %c2_236 = arith.constant 2 : index
    %c0_237 = arith.constant 0 : index
    %c0_238 = arith.constant 0 : index
    %311 = vector.load %arg11[%c2_236, %c0_237, %c0_238] : memref<16x64x32xbf16, #tpu.memory_space<vmem>>, vector<1x64x32xbf16>
    %312 = vector.shape_cast %311 : vector<1x64x32xbf16> to vector<64x32xbf16>
    %cst_239 = arith.constant dense<0.000000e+00> : vector<64x16xf32>
    %313 = tpu.matmul %312, %310, %cst_239 {dimension_numbers = #tpu.dot_dimension_numbers<[1], [0], [0], [1], [0, 0, 1, 1], [], []>} : vector<64x32xbf16>, vector<32x16xbf16>, vector<64x16xf32> -> vector<64x16xf32>
    %314 = arith.addf %306, %313 : vector<64x16xf32>
    %c3_240 = arith.constant 3 : index
    %c0_241 = arith.constant 0 : index
    %c0_242 = arith.constant 0 : index
    %315 = vector.load %arg10[%c3_240, %c0_241, %c0_242] : memref<16x64x16xbf16, #tpu.memory_space<vmem>>, vector<1x64x16xbf16>
    %316 = vector.shape_cast %315 : vector<1x64x16xbf16> to vector<64x16xbf16>
    %cst_243 = arith.constant dense<0.000000e+00> : vector<32x16xf32>
    %317 = tpu.matmul %289, %316, %cst_243 {dimension_numbers = #tpu.dot_dimension_numbers<[1], [0], [0], [1], [0, 0, 1, 1], [], []>} : vector<32x64xbf16>, vector<64x16xbf16>, vector<32x16xf32> -> vector<32x16xf32>
    %318 = arith.truncf %317 : vector<32x16xf32> to vector<32x16xbf16>
    %c3_244 = arith.constant 3 : index
    %c0_245 = arith.constant 0 : index
    %c0_246 = arith.constant 0 : index
    %319 = vector.load %arg11[%c3_244, %c0_245, %c0_246] : memref<16x64x32xbf16, #tpu.memory_space<vmem>>, vector<1x64x32xbf16>
    %320 = vector.shape_cast %319 : vector<1x64x32xbf16> to vector<64x32xbf16>
    %cst_247 = arith.constant dense<0.000000e+00> : vector<64x16xf32>
    %321 = tpu.matmul %320, %318, %cst_247 {dimension_numbers = #tpu.dot_dimension_numbers<[1], [0], [0], [1], [0, 0, 1, 1], [], []>} : vector<64x32xbf16>, vector<32x16xbf16>, vector<64x16xf32> -> vector<64x16xf32>
    %322 = arith.addf %314, %321 : vector<64x16xf32>
    %c4_248 = arith.constant 4 : index
    %c0_249 = arith.constant 0 : index
    %c0_250 = arith.constant 0 : index
    %323 = vector.load %arg10[%c4_248, %c0_249, %c0_250] : memref<16x64x16xbf16, #tpu.memory_space<vmem>>, vector<1x64x16xbf16>
    %324 = vector.shape_cast %323 : vector<1x64x16xbf16> to vector<64x16xbf16>
    %cst_251 = arith.constant dense<0.000000e+00> : vector<32x16xf32>
    %325 = tpu.matmul %289, %324, %cst_251 {dimension_numbers = #tpu.dot_dimension_numbers<[1], [0], [0], [1], [0, 0, 1, 1], [], []>} : vector<32x64xbf16>, vector<64x16xbf16>, vector<32x16xf32> -> vector<32x16xf32>
    %326 = arith.truncf %325 : vector<32x16xf32> to vector<32x16xbf16>
    %c4_252 = arith.constant 4 : index
    %c0_253 = arith.constant 0 : index
    %c0_254 = arith.constant 0 : index
    %327 = vector.load %arg11[%c4_252, %c0_253, %c0_254] : memref<16x64x32xbf16, #tpu.memory_space<vmem>>, vector<1x64x32xbf16>
    %328 = vector.shape_cast %327 : vector<1x64x32xbf16> to vector<64x32xbf16>
    %cst_255 = arith.constant dense<0.000000e+00> : vector<64x16xf32>
    %329 = tpu.matmul %328, %326, %cst_255 {dimension_numbers = #tpu.dot_dimension_numbers<[1], [0], [0], [1], [0, 0, 1, 1], [], []>} : vector<64x32xbf16>, vector<32x16xbf16>, vector<64x16xf32> -> vector<64x16xf32>
    %330 = arith.addf %322, %329 : vector<64x16xf32>
    %c5_256 = arith.constant 5 : index
    %c0_257 = arith.constant 0 : index
    %c0_258 = arith.constant 0 : index
    %331 = vector.load %arg10[%c5_256, %c0_257, %c0_258] : memref<16x64x16xbf16, #tpu.memory_space<vmem>>, vector<1x64x16xbf16>
    %332 = vector.shape_cast %331 : vector<1x64x16xbf16> to vector<64x16xbf16>
    %cst_259 = arith.constant dense<0.000000e+00> : vector<32x16xf32>
    %333 = tpu.matmul %289, %332, %cst_259 {dimension_numbers = #tpu.dot_dimension_numbers<[1], [0], [0], [1], [0, 0, 1, 1], [], []>} : vector<32x64xbf16>, vector<64x16xbf16>, vector<32x16xf32> -> vector<32x16xf32>
    %334 = arith.truncf %333 : vector<32x16xf32> to vector<32x16xbf16>
    %c5_260 = arith.constant 5 : index
    %c0_261 = arith.constant 0 : index
    %c0_262 = arith.constant 0 : index
    %335 = vector.load %arg11[%c5_260, %c0_261, %c0_262] : memref<16x64x32xbf16, #tpu.memory_space<vmem>>, vector<1x64x32xbf16>
    %336 = vector.shape_cast %335 : vector<1x64x32xbf16> to vector<64x32xbf16>
    %cst_263 = arith.constant dense<0.000000e+00> : vector<64x16xf32>
    %337 = tpu.matmul %336, %334, %cst_263 {dimension_numbers = #tpu.dot_dimension_numbers<[1], [0], [0], [1], [0, 0, 1, 1], [], []>} : vector<64x32xbf16>, vector<32x16xbf16>, vector<64x16xf32> -> vector<64x16xf32>
    %338 = arith.addf %330, %337 : vector<64x16xf32>
    %c6_264 = arith.constant 6 : index
    %c0_265 = arith.constant 0 : index
    %c0_266 = arith.constant 0 : index
    %339 = vector.load %arg10[%c6_264, %c0_265, %c0_266] : memref<16x64x16xbf16, #tpu.memory_space<vmem>>, vector<1x64x16xbf16>
    %340 = vector.shape_cast %339 : vector<1x64x16xbf16> to vector<64x16xbf16>
    %cst_267 = arith.constant dense<0.000000e+00> : vector<32x16xf32>
    %341 = tpu.matmul %289, %340, %cst_267 {dimension_numbers = #tpu.dot_dimension_numbers<[1], [0], [0], [1], [0, 0, 1, 1], [], []>} : vector<32x64xbf16>, vector<64x16xbf16>, vector<32x16xf32> -> vector<32x16xf32>
    %342 = arith.truncf %341 : vector<32x16xf32> to vector<32x16xbf16>
    %c6_268 = arith.constant 6 : index
    %c0_269 = arith.constant 0 : index
    %c0_270 = arith.constant 0 : index
    %343 = vector.load %arg11[%c6_268, %c0_269, %c0_270] : memref<16x64x32xbf16, #tpu.memory_space<vmem>>, vector<1x64x32xbf16>
    %344 = vector.shape_cast %343 : vector<1x64x32xbf16> to vector<64x32xbf16>
    %cst_271 = arith.constant dense<0.000000e+00> : vector<64x16xf32>
    %345 = tpu.matmul %344, %342, %cst_271 {dimension_numbers = #tpu.dot_dimension_numbers<[1], [0], [0], [1], [0, 0, 1, 1], [], []>} : vector<64x32xbf16>, vector<32x16xbf16>, vector<64x16xf32> -> vector<64x16xf32>
    %346 = arith.addf %338, %345 : vector<64x16xf32>
    %c7_272 = arith.constant 7 : index
    %c0_273 = arith.constant 0 : index
    %c0_274 = arith.constant 0 : index
    %347 = vector.load %arg10[%c7_272, %c0_273, %c0_274] : memref<16x64x16xbf16, #tpu.memory_space<vmem>>, vector<1x64x16xbf16>
    %348 = vector.shape_cast %347 : vector<1x64x16xbf16> to vector<64x16xbf16>
    %cst_275 = arith.constant dense<0.000000e+00> : vector<32x16xf32>
    %349 = tpu.matmul %289, %348, %cst_275 {dimension_numbers = #tpu.dot_dimension_numbers<[1], [0], [0], [1], [0, 0, 1, 1], [], []>} : vector<32x64xbf16>, vector<64x16xbf16>, vector<32x16xf32> -> vector<32x16xf32>
    %350 = arith.truncf %349 : vector<32x16xf32> to vector<32x16xbf16>
    %c7_276 = arith.constant 7 : index
    %c0_277 = arith.constant 0 : index
    %c0_278 = arith.constant 0 : index
    %351 = vector.load %arg11[%c7_276, %c0_277, %c0_278] : memref<16x64x32xbf16, #tpu.memory_space<vmem>>, vector<1x64x32xbf16>
    %352 = vector.shape_cast %351 : vector<1x64x32xbf16> to vector<64x32xbf16>
    %cst_279 = arith.constant dense<0.000000e+00> : vector<64x16xf32>
    %353 = tpu.matmul %352, %350, %cst_279 {dimension_numbers = #tpu.dot_dimension_numbers<[1], [0], [0], [1], [0, 0, 1, 1], [], []>} : vector<64x32xbf16>, vector<32x16xbf16>, vector<64x16xf32> -> vector<64x16xf32>
    %354 = arith.addf %346, %353 : vector<64x16xf32>
    %c8_280 = arith.constant 8 : index
    %c0_281 = arith.constant 0 : index
    %c0_282 = arith.constant 0 : index
    %355 = vector.load %arg10[%c8_280, %c0_281, %c0_282] : memref<16x64x16xbf16, #tpu.memory_space<vmem>>, vector<1x64x16xbf16>
    %356 = vector.shape_cast %355 : vector<1x64x16xbf16> to vector<64x16xbf16>
    %cst_283 = arith.constant dense<0.000000e+00> : vector<32x16xf32>
    %357 = tpu.matmul %289, %356, %cst_283 {dimension_numbers = #tpu.dot_dimension_numbers<[1], [0], [0], [1], [0, 0, 1, 1], [], []>} : vector<32x64xbf16>, vector<64x16xbf16>, vector<32x16xf32> -> vector<32x16xf32>
    %358 = arith.truncf %357 : vector<32x16xf32> to vector<32x16xbf16>
    %c8_284 = arith.constant 8 : index
    %c0_285 = arith.constant 0 : index
    %c0_286 = arith.constant 0 : index
    %359 = vector.load %arg11[%c8_284, %c0_285, %c0_286] : memref<16x64x32xbf16, #tpu.memory_space<vmem>>, vector<1x64x32xbf16>
    %360 = vector.shape_cast %359 : vector<1x64x32xbf16> to vector<64x32xbf16>
    %cst_287 = arith.constant dense<0.000000e+00> : vector<64x16xf32>
    %361 = tpu.matmul %360, %358, %cst_287 {dimension_numbers = #tpu.dot_dimension_numbers<[1], [0], [0], [1], [0, 0, 1, 1], [], []>} : vector<64x32xbf16>, vector<32x16xbf16>, vector<64x16xf32> -> vector<64x16xf32>
    %362 = arith.addf %354, %361 : vector<64x16xf32>
    %c9_288 = arith.constant 9 : index
    %c0_289 = arith.constant 0 : index
    %c0_290 = arith.constant 0 : index
    %363 = vector.load %arg10[%c9_288, %c0_289, %c0_290] : memref<16x64x16xbf16, #tpu.memory_space<vmem>>, vector<1x64x16xbf16>
    %364 = vector.shape_cast %363 : vector<1x64x16xbf16> to vector<64x16xbf16>
    %cst_291 = arith.constant dense<0.000000e+00> : vector<32x16xf32>
    %365 = tpu.matmul %289, %364, %cst_291 {dimension_numbers = #tpu.dot_dimension_numbers<[1], [0], [0], [1], [0, 0, 1, 1], [], []>} : vector<32x64xbf16>, vector<64x16xbf16>, vector<32x16xf32> -> vector<32x16xf32>
    %366 = arith.truncf %365 : vector<32x16xf32> to vector<32x16xbf16>
    %c9_292 = arith.constant 9 : index
    %c0_293 = arith.constant 0 : index
    %c0_294 = arith.constant 0 : index
    %367 = vector.load %arg11[%c9_292, %c0_293, %c0_294] : memref<16x64x32xbf16, #tpu.memory_space<vmem>>, vector<1x64x32xbf16>
    %368 = vector.shape_cast %367 : vector<1x64x32xbf16> to vector<64x32xbf16>
    %cst_295 = arith.constant dense<0.000000e+00> : vector<64x16xf32>
    %369 = tpu.matmul %368, %366, %cst_295 {dimension_numbers = #tpu.dot_dimension_numbers<[1], [0], [0], [1], [0, 0, 1, 1], [], []>} : vector<64x32xbf16>, vector<32x16xbf16>, vector<64x16xf32> -> vector<64x16xf32>
    %370 = arith.addf %362, %369 : vector<64x16xf32>
    %c10_296 = arith.constant 10 : index
    %c0_297 = arith.constant 0 : index
    %c0_298 = arith.constant 0 : index
    %371 = vector.load %arg10[%c10_296, %c0_297, %c0_298] : memref<16x64x16xbf16, #tpu.memory_space<vmem>>, vector<1x64x16xbf16>
    %372 = vector.shape_cast %371 : vector<1x64x16xbf16> to vector<64x16xbf16>
    %cst_299 = arith.constant dense<0.000000e+00> : vector<32x16xf32>
    %373 = tpu.matmul %289, %372, %cst_299 {dimension_numbers = #tpu.dot_dimension_numbers<[1], [0], [0], [1], [0, 0, 1, 1], [], []>} : vector<32x64xbf16>, vector<64x16xbf16>, vector<32x16xf32> -> vector<32x16xf32>
    %374 = arith.truncf %373 : vector<32x16xf32> to vector<32x16xbf16>
    %c10_300 = arith.constant 10 : index
    %c0_301 = arith.constant 0 : index
    %c0_302 = arith.constant 0 : index
    %375 = vector.load %arg11[%c10_300, %c0_301, %c0_302] : memref<16x64x32xbf16, #tpu.memory_space<vmem>>, vector<1x64x32xbf16>
    %376 = vector.shape_cast %375 : vector<1x64x32xbf16> to vector<64x32xbf16>
    %cst_303 = arith.constant dense<0.000000e+00> : vector<64x16xf32>
    %377 = tpu.matmul %376, %374, %cst_303 {dimension_numbers = #tpu.dot_dimension_numbers<[1], [0], [0], [1], [0, 0, 1, 1], [], []>} : vector<64x32xbf16>, vector<32x16xbf16>, vector<64x16xf32> -> vector<64x16xf32>
    %378 = arith.addf %370, %377 : vector<64x16xf32>
    %c11_304 = arith.constant 11 : index
    %c0_305 = arith.constant 0 : index
    %c0_306 = arith.constant 0 : index
    %379 = vector.load %arg10[%c11_304, %c0_305, %c0_306] : memref<16x64x16xbf16, #tpu.memory_space<vmem>>, vector<1x64x16xbf16>
    %380 = vector.shape_cast %379 : vector<1x64x16xbf16> to vector<64x16xbf16>
    %cst_307 = arith.constant dense<0.000000e+00> : vector<32x16xf32>
    %381 = tpu.matmul %289, %380, %cst_307 {dimension_numbers = #tpu.dot_dimension_numbers<[1], [0], [0], [1], [0, 0, 1, 1], [], []>} : vector<32x64xbf16>, vector<64x16xbf16>, vector<32x16xf32> -> vector<32x16xf32>
    %382 = arith.truncf %381 : vector<32x16xf32> to vector<32x16xbf16>
    %c11_308 = arith.constant 11 : index
    %c0_309 = arith.constant 0 : index
    %c0_310 = arith.constant 0 : index
    %383 = vector.load %arg11[%c11_308, %c0_309, %c0_310] : memref<16x64x32xbf16, #tpu.memory_space<vmem>>, vector<1x64x32xbf16>
    %384 = vector.shape_cast %383 : vector<1x64x32xbf16> to vector<64x32xbf16>
    %cst_311 = arith.constant dense<0.000000e+00> : vector<64x16xf32>
    %385 = tpu.matmul %384, %382, %cst_311 {dimension_numbers = #tpu.dot_dimension_numbers<[1], [0], [0], [1], [0, 0, 1, 1], [], []>} : vector<64x32xbf16>, vector<32x16xbf16>, vector<64x16xf32> -> vector<64x16xf32>
    %386 = arith.addf %378, %385 : vector<64x16xf32>
    %c12_312 = arith.constant 12 : index
    %c0_313 = arith.constant 0 : index
    %c0_314 = arith.constant 0 : index
    %387 = vector.load %arg10[%c12_312, %c0_313, %c0_314] : memref<16x64x16xbf16, #tpu.memory_space<vmem>>, vector<1x64x16xbf16>
    %388 = vector.shape_cast %387 : vector<1x64x16xbf16> to vector<64x16xbf16>
    %cst_315 = arith.constant dense<0.000000e+00> : vector<32x16xf32>
    %389 = tpu.matmul %289, %388, %cst_315 {dimension_numbers = #tpu.dot_dimension_numbers<[1], [0], [0], [1], [0, 0, 1, 1], [], []>} : vector<32x64xbf16>, vector<64x16xbf16>, vector<32x16xf32> -> vector<32x16xf32>
    %390 = arith.truncf %389 : vector<32x16xf32> to vector<32x16xbf16>
    %c12_316 = arith.constant 12 : index
    %c0_317 = arith.constant 0 : index
    %c0_318 = arith.constant 0 : index
    %391 = vector.load %arg11[%c12_316, %c0_317, %c0_318] : memref<16x64x32xbf16, #tpu.memory_space<vmem>>, vector<1x64x32xbf16>
    %392 = vector.shape_cast %391 : vector<1x64x32xbf16> to vector<64x32xbf16>
    %cst_319 = arith.constant dense<0.000000e+00> : vector<64x16xf32>
    %393 = tpu.matmul %392, %390, %cst_319 {dimension_numbers = #tpu.dot_dimension_numbers<[1], [0], [0], [1], [0, 0, 1, 1], [], []>} : vector<64x32xbf16>, vector<32x16xbf16>, vector<64x16xf32> -> vector<64x16xf32>
    %394 = arith.addf %386, %393 : vector<64x16xf32>
    %c13_320 = arith.constant 13 : index
    %c0_321 = arith.constant 0 : index
    %c0_322 = arith.constant 0 : index
    %395 = vector.load %arg10[%c13_320, %c0_321, %c0_322] : memref<16x64x16xbf16, #tpu.memory_space<vmem>>, vector<1x64x16xbf16>
    %396 = vector.shape_cast %395 : vector<1x64x16xbf16> to vector<64x16xbf16>
    %cst_323 = arith.constant dense<0.000000e+00> : vector<32x16xf32>
    %397 = tpu.matmul %289, %396, %cst_323 {dimension_numbers = #tpu.dot_dimension_numbers<[1], [0], [0], [1], [0, 0, 1, 1], [], []>} : vector<32x64xbf16>, vector<64x16xbf16>, vector<32x16xf32> -> vector<32x16xf32>
    %398 = arith.truncf %397 : vector<32x16xf32> to vector<32x16xbf16>
    %c13_324 = arith.constant 13 : index
    %c0_325 = arith.constant 0 : index
    %c0_326 = arith.constant 0 : index
    %399 = vector.load %arg11[%c13_324, %c0_325, %c0_326] : memref<16x64x32xbf16, #tpu.memory_space<vmem>>, vector<1x64x32xbf16>
    %400 = vector.shape_cast %399 : vector<1x64x32xbf16> to vector<64x32xbf16>
    %cst_327 = arith.constant dense<0.000000e+00> : vector<64x16xf32>
    %401 = tpu.matmul %400, %398, %cst_327 {dimension_numbers = #tpu.dot_dimension_numbers<[1], [0], [0], [1], [0, 0, 1, 1], [], []>} : vector<64x32xbf16>, vector<32x16xbf16>, vector<64x16xf32> -> vector<64x16xf32>
    %402 = arith.addf %394, %401 : vector<64x16xf32>
    %c14_328 = arith.constant 14 : index
    %c0_329 = arith.constant 0 : index
    %c0_330 = arith.constant 0 : index
    %403 = vector.load %arg10[%c14_328, %c0_329, %c0_330] : memref<16x64x16xbf16, #tpu.memory_space<vmem>>, vector<1x64x16xbf16>
    %404 = vector.shape_cast %403 : vector<1x64x16xbf16> to vector<64x16xbf16>
    %cst_331 = arith.constant dense<0.000000e+00> : vector<32x16xf32>
    %405 = tpu.matmul %289, %404, %cst_331 {dimension_numbers = #tpu.dot_dimension_numbers<[1], [0], [0], [1], [0, 0, 1, 1], [], []>} : vector<32x64xbf16>, vector<64x16xbf16>, vector<32x16xf32> -> vector<32x16xf32>
    %406 = arith.truncf %405 : vector<32x16xf32> to vector<32x16xbf16>
    %c14_332 = arith.constant 14 : index
    %c0_333 = arith.constant 0 : index
    %c0_334 = arith.constant 0 : index
    %407 = vector.load %arg11[%c14_332, %c0_333, %c0_334] : memref<16x64x32xbf16, #tpu.memory_space<vmem>>, vector<1x64x32xbf16>
    %408 = vector.shape_cast %407 : vector<1x64x32xbf16> to vector<64x32xbf16>
    %cst_335 = arith.constant dense<0.000000e+00> : vector<64x16xf32>
    %409 = tpu.matmul %408, %406, %cst_335 {dimension_numbers = #tpu.dot_dimension_numbers<[1], [0], [0], [1], [0, 0, 1, 1], [], []>} : vector<64x32xbf16>, vector<32x16xbf16>, vector<64x16xf32> -> vector<64x16xf32>
    %410 = arith.addf %402, %409 : vector<64x16xf32>
    %c15_336 = arith.constant 15 : index
    %c0_337 = arith.constant 0 : index
    %c0_338 = arith.constant 0 : index
    %411 = vector.load %arg10[%c15_336, %c0_337, %c0_338] : memref<16x64x16xbf16, #tpu.memory_space<vmem>>, vector<1x64x16xbf16>
    %412 = vector.shape_cast %411 : vector<1x64x16xbf16> to vector<64x16xbf16>
    %cst_339 = arith.constant dense<0.000000e+00> : vector<32x16xf32>
    %413 = tpu.matmul %289, %412, %cst_339 {dimension_numbers = #tpu.dot_dimension_numbers<[1], [0], [0], [1], [0, 0, 1, 1], [], []>} : vector<32x64xbf16>, vector<64x16xbf16>, vector<32x16xf32> -> vector<32x16xf32>
    %414 = arith.truncf %413 : vector<32x16xf32> to vector<32x16xbf16>
    %c15_340 = arith.constant 15 : index
    %c0_341 = arith.constant 0 : index
    %c0_342 = arith.constant 0 : index
    %415 = vector.load %arg11[%c15_340, %c0_341, %c0_342] : memref<16x64x32xbf16, #tpu.memory_space<vmem>>, vector<1x64x32xbf16>
    %416 = vector.shape_cast %415 : vector<1x64x32xbf16> to vector<64x32xbf16>
    %cst_343 = arith.constant dense<0.000000e+00> : vector<64x16xf32>
    %417 = tpu.matmul %416, %414, %cst_343 {dimension_numbers = #tpu.dot_dimension_numbers<[1], [0], [0], [1], [0, 0, 1, 1], [], []>} : vector<64x32xbf16>, vector<32x16xbf16>, vector<64x16xf32> -> vector<64x16xf32>
    %418 = arith.addf %410, %417 : vector<64x16xf32>
    %c0_344 = arith.constant 0 : index
    %c0_345 = arith.constant 0 : index
    %c0_346 = arith.constant 0 : index
    %419 = vector.load %arg12[%c0_344, %c0_345, %c0_346] : memref<2x64x1xf32, #tpu.memory_space<vmem>>, vector<1x64x1xf32>
    %420 = vector.shape_cast %419 : vector<1x64x1xf32> to vector<64x1xf32>
    %c1_347 = arith.constant 1 : index
    %c0_348 = arith.constant 0 : index
    %c0_349 = arith.constant 0 : index
    %421 = vector.load %arg12[%c1_347, %c0_348, %c0_349] : memref<2x64x1xf32, #tpu.memory_space<vmem>>, vector<1x64x1xf32>
    %422 = vector.shape_cast %421 : vector<1x64x1xf32> to vector<64x1xf32>
    %cst_350 = arith.constant dense<0.000000e+00> : vector<64xf32>
    %423 = vector.multi_reduction <add>, %418, %cst_350 [1] : vector<64x16xf32> to vector<64xf32>
    %424 = vector.shape_cast %423 : vector<64xf32> to vector<64x1xf32>
    %cst_351 = arith.constant 1.600000e+01 : f32
    %425 = vector.broadcast %cst_351 : f32 to vector<64x1xf32>
    %426 = arith.divf %424, %425 : vector<64x1xf32>
    %427 = vector.broadcast %426 : vector<64x1xf32> to vector<64x16xf32>
    %428 = arith.subf %418, %427 : vector<64x16xf32>
    %429 = arith.mulf %428, %428 : vector<64x16xf32>
    %cst_352 = arith.constant dense<0.000000e+00> : vector<64xf32>
    %430 = vector.multi_reduction <add>, %429, %cst_352 [1] : vector<64x16xf32> to vector<64xf32>
    %431 = vector.shape_cast %430 : vector<64xf32> to vector<64x1xf32>
    %cst_353 = arith.constant 1.600000e+01 : f32
    %432 = vector.broadcast %cst_353 : f32 to vector<64x1xf32>
    %433 = arith.divf %431, %432 : vector<64x1xf32>
    %434 = vector.broadcast %426 : vector<64x1xf32> to vector<64x16xf32>
    %435 = arith.subf %418, %434 : vector<64x16xf32>
    %cst_354 = arith.constant 9.99999974E-6 : f32
    %436 = vector.broadcast %cst_354 : f32 to vector<64x1xf32>
    %437 = arith.addf %433, %436 : vector<64x1xf32>
    %438 = math.rsqrt %437 : vector<64x1xf32>
    %439 = vector.broadcast %438 : vector<64x1xf32> to vector<64x16xf32>
    %440 = arith.mulf %435, %439 : vector<64x16xf32>
    %441 = vector.broadcast %420 : vector<64x1xf32> to vector<64x16xf32>
    %442 = arith.mulf %440, %441 : vector<64x16xf32>
    %443 = vector.broadcast %422 : vector<64x1xf32> to vector<64x16xf32>
    %444 = arith.addf %442, %443 : vector<64x16xf32>
    %cst_355 = arith.constant 0.000000e+00 : f32
    %445 = vector.broadcast %cst_355 : f32 to vector<64x16xf32>
    %446 = arith.cmpf oge, %444, %445 : vector<64x16xf32>
    %cst_356 = arith.constant 2.000000e-01 : f32
    %447 = vector.broadcast %cst_356 : f32 to vector<64x16xf32>
    %448 = arith.mulf %447, %444 : vector<64x16xf32>
    %449 = arith.select %446, %444, %448 : vector<64x16xi1>, vector<64x16xf32>
    %c0_357 = arith.constant 0 : index
    %c0_358 = arith.constant 0 : index
    %450 = vector.load %arg13[%c0_357, %c0_358] : memref<64x16xf32, #tpu.memory_space<vmem>>, vector<64x16xf32>
    %451 = arith.mulf %449, %450 : vector<64x16xf32>
    %cst_359 = arith.constant dense<0.000000e+00> : vector<64xf32>
    %452 = vector.multi_reduction <add>, %451, %cst_359 [1] : vector<64x16xf32> to vector<64xf32>
    %453 = vector.shape_cast %452 : vector<64xf32> to vector<64x1xf32>
    %cst_360 = arith.constant dense<0.000000e+00> : vector<1xf32>
    %454 = vector.multi_reduction <add>, %453, %cst_360 [0] : vector<64x1xf32> to vector<1xf32>
    %455 = vector.shape_cast %454 : vector<1xf32> to vector<1x1xf32>
    %c0_361 = arith.constant 0 : index
    %c0_362 = arith.constant 0 : index
    %456 = vector.load %arg14[%c0_361, %c0_362] : memref<1x1xf32, #tpu.memory_space<vmem>>, vector<1x1xf32>
    %457 = arith.addf %455, %456 : vector<1x1xf32>
    %c0_363 = arith.constant 0 : index
    %c0_364 = arith.constant 0 : index
    %c0_365 = arith.constant 0 : index
    %458 = vector.load %arg15[%c0_363, %c0_364, %c0_365] : memref<1x1x1xf32, #tpu.memory_space<vmem>>, vector<1x1x1xf32>
    %459 = vector.shape_cast %458 : vector<1x1x1xf32> to vector<1x1xf32>
    %460 = vector.shape_cast %457 : vector<1x1xf32> to vector<1x1x1xf32>
    tpu.vector_store %arg15[%c0_363, %c0_364, %c0_365], %460 {strides = array<i32>} : memref<1x1x1xf32, #tpu.memory_space<vmem>>, vector<1x1x1xf32>,
    return
  }
  func.func @transform_0(%arg0: i32) -> (i32, i32, i32) {
    %c0_i32 = arith.constant 0 : i32
    %c0_i32_0 = arith.constant 0 : i32
    %c0_i32_1 = arith.constant 0 : i32
    return %arg0, %c0_i32, %c0_i32_0 : i32, i32, i32
  }
  func.func @transform_1(%arg0: i32) -> (i32, i32) {
    %c0_i32 = arith.constant 0 : i32
    %c0_i32_0 = arith.constant 0 : i32
    %c0_i32_1 = arith.constant 0 : i32
    return %c0_i32, %c0_i32_0 : i32, i32
  }
  func.func @transform_2(%arg0: i32) -> (i32, i32) {
    %c0_i32 = arith.constant 0 : i32
    %c0_i32_0 = arith.constant 0 : i32
    %c0_i32_1 = arith.constant 0 : i32
    return %c0_i32, %c0_i32_0 : i32, i32
  }
  func.func @transform_3(%arg0: i32) -> (i32, i32) {
    %c0_i32 = arith.constant 0 : i32
    %c0_i32_0 = arith.constant 0 : i32
    %c0_i32_1 = arith.constant 0 : i32
    return %c0_i32, %c0_i32_0 : i32, i32
  }
  func.func @transform_4(%arg0: i32) -> (i32, i32, i32) {
    %c0_i32 = arith.constant 0 : i32
    %c0_i32_0 = arith.constant 0 : i32
    %c0_i32_1 = arith.constant 0 : i32
    %c0_i32_2 = arith.constant 0 : i32
    return %c0_i32, %c0_i32_0, %c0_i32_1 : i32, i32, i32
  }
  func.func @transform_5(%arg0: i32) -> (i32, i32, i32) {
    %c0_i32 = arith.constant 0 : i32
    %c0_i32_0 = arith.constant 0 : i32
    %c0_i32_1 = arith.constant 0 : i32
    %c0_i32_2 = arith.constant 0 : i32
    return %c0_i32, %c0_i32_0, %c0_i32_1 : i32, i32, i32
  }
  func.func @transform_6(%arg0: i32) -> (i32, i32, i32) {
    %c0_i32 = arith.constant 0 : i32
    %c0_i32_0 = arith.constant 0 : i32
    %c0_i32_1 = arith.constant 0 : i32
    %c0_i32_2 = arith.constant 0 : i32
    return %c0_i32, %c0_i32_0, %c0_i32_1 : i32, i32, i32
  }
  func.func @transform_7(%arg0: i32) -> (i32, i32, i32) {
    %c0_i32 = arith.constant 0 : i32
    %c0_i32_0 = arith.constant 0 : i32
    %c0_i32_1 = arith.constant 0 : i32
    %c0_i32_2 = arith.constant 0 : i32
    return %c0_i32, %c0_i32_0, %c0_i32_1 : i32, i32, i32
  }
  func.func @transform_8(%arg0: i32) -> (i32, i32, i32) {
    %c0_i32 = arith.constant 0 : i32
    %c0_i32_0 = arith.constant 0 : i32
    %c0_i32_1 = arith.constant 0 : i32
    %c0_i32_2 = arith.constant 0 : i32
    return %c0_i32, %c0_i32_0, %c0_i32_1 : i32, i32, i32
  }
  func.func @transform_9(%arg0: i32) -> (i32, i32, i32) {
    %c0_i32 = arith.constant 0 : i32
    %c0_i32_0 = arith.constant 0 : i32
    %c0_i32_1 = arith.constant 0 : i32
    %c0_i32_2 = arith.constant 0 : i32
    return %c0_i32, %c0_i32_0, %c0_i32_1 : i32, i32, i32
  }
  func.func @transform_10(%arg0: i32) -> (i32, i32, i32) {
    %c0_i32 = arith.constant 0 : i32
    %c0_i32_0 = arith.constant 0 : i32
    %c0_i32_1 = arith.constant 0 : i32
    %c0_i32_2 = arith.constant 0 : i32
    return %c0_i32, %c0_i32_0, %c0_i32_1 : i32, i32, i32
  }
  func.func @transform_11(%arg0: i32) -> (i32, i32, i32) {
    %c0_i32 = arith.constant 0 : i32
    %c0_i32_0 = arith.constant 0 : i32
    %c0_i32_1 = arith.constant 0 : i32
    %c0_i32_2 = arith.constant 0 : i32
    return %c0_i32, %c0_i32_0, %c0_i32_1 : i32, i32, i32
  }
  func.func @transform_12(%arg0: i32) -> (i32, i32) {
    %c0_i32 = arith.constant 0 : i32
    %c0_i32_0 = arith.constant 0 : i32
    %c0_i32_1 = arith.constant 0 : i32
    return %c0_i32, %c0_i32_0 : i32, i32
  }
  func.func @transform_13(%arg0: i32) -> (i32, i32) {
    %c0_i32 = arith.constant 0 : i32
    %c0_i32_0 = arith.constant 0 : i32
    %c0_i32_1 = arith.constant 0 : i32
    return %c0_i32, %c0_i32_0 : i32, i32
  }
  func.func @transform_14(%arg0: i32) -> (i32, i32, i32) {
    %c0_i32 = arith.constant 0 : i32
    %c0_i32_0 = arith.constant 0 : i32
    %c0_i32_1 = arith.constant 0 : i32
    return %arg0, %c0_i32, %c0_i32_0 : i32, i32, i32
  }
}

</mosaic_0001>

<bundles_post_ra>
// kernel: _lambda_.1
= control target key start
LH: loop header
LB: loop body
LE: loop exit
PB: predicated region body
PF: predicated region fallthrough
CT: control target
= control target key end

     0   :  { %s13841_s15 = smov 0   ;;  %s16046_s0 = inlined_call_operand.vmem [shape: bf16[2,48,4096], index: 0, kind: input, shape index: {}]   ;;  %s16047_s1 = inlined_call_operand.vmem [shape: f32[1,4096], index: 1, kind: input, shape index: {}]   ;;  %s16048_s2 = inlined_call_operand.vmem [shape: bf16[8,48], index: 2, kind: input, shape index: {}]   ;;  %s16049_s3 = inlined_call_operand.vmem [shape: f32[8,1], index: 3, kind: input, shape index: {}]   ;;  %s16050_s4 = inlined_call_operand.vmem [shape: bf16[16,16,8], index: 4, kind: input, shape index: {}]   ;;  %s16051_s5 = inlined_call_operand.vmem [shape: f32[2,16,1], index: 5, kind: input, shape index: {}]   ;;  %s16052_s6 = inlined_call_operand.vmem [shape: bf16[16,256,64], index: 6, kind: input, shape index: {}]   ;;  %s16053_s7 = inlined_call_operand.vmem [shape: bf16[16,32,16], index: 7, kind: input, shape index: {}]   ;;  %s16054_s8 = inlined_call_operand.vmem [shape: f32[2,32,1], index: 8, kind: input, shape index: {}]   ;;  %s16055_s9 = inlined_call_operand.vmem [shape: bf16[16,64,16], index: 9, kind: input, shape index: {}]   ;;  %s16056_s10 = inlined_call_operand.vmem [shape: bf16[16,64,32], index: 10, kind: input, shape index: {}]   ;;  %s16057_s11 = inlined_call_operand.vmem [shape: f32[2,64,1], index: 11, kind: input, shape index: {}]   ;;  %s16058_s12 = inlined_call_operand.vmem [shape: f32[64,16], index: 12, kind: input, shape index: {}]   ;;  %s16059_s13 = inlined_call_operand.<no memory space> [shape: f32[1,1], index: 13, kind: input, shape index: {}]   ;;  %s16060_s14 = inlined_call_operand.vmem [shape: f32[2,1,1], index: 14, kind: output, shape index: {}]  }
   0x1   :  { %v19_v0 = vstv %s16059_s13 }
   0x2   :  { %20 = vst [vmem:[#allocation2] sm:$0x1] %v19_v0 }
   0x3 LB: > { %s10674_s16 = sadd.s32 4294967295, %s13760_s15   ;;  %p10678_p0 = scmp.ge.s32.totalorder %s13760_s15, 1  ;;  %s13760_s15 = sphi %s13841_s15, %s26_s15  }
   0x4   : > { %p414_p1 = scmp.lt.s32.totalorder %s13760_s15, 3 }
   0x6   : > { %p415_p2 = pnand %p10678_p0, %p414_p1 }
   0x7   : > { %p458_p3 = scmp.lt.s32.totalorder (!%p415_p2), %s10674_s16, 1 }
   0x8   : > { %418 = sbr.rel (%p415_p2) target bundleno = 6289 (0x1891), region = 76 }
   0xd   : > { %v564_v1 = vld [vmem:[%s16049_s3] sm:$0xff]  ;;  %v13762_v2 = vmov 0   ;;  %s16062_s16 = smov (!%p458_p3, %s10674_s16), 1  ;;  %vm1050_vm0 = vcmask 392192   ;;  %vm2052_vm1 = vcmask 1043456   ;;  %vm2048_vm6 = vcmask 64512  }
   0xe   : > { %1086 = vmatprep.mubr.bf16.mxu0 %v13762_v2  ;;  %1127 = vmatprep.mubr.bf16.mxu1 %v13762_v2  ;;  %s13282_s13 = smul.u32 768, %s16062_s16  ;;  %v13887_v37 = vld [vmem:[%s16048_s2] sm:$0xf]  ;;  %s465_s25 = scalar_lea.vmem %s16060_s14, %s16062_s16 }
   0xf   : > { %13292 = vset.pattern.permute.xlu0 %v13762_v2  ;;  %13293 = vset.pattern.permute.xlu1 %v13762_v2 }
  0x10   : > { %567 = vperm.xlu0 %13292, %v564_v1   ;;  %s13862_s21 = scalar_lea.vmem %s16046_s0, %s13282_s13 }
  0x11   : > { %v532_v3 = vld [vmem:[%s13862_s21 + $0x200] sm:$0xff]  ;;  %v533_v5 = vld [vmem:[%s13862_s21 + $0x208] sm:$0xff]  ;;  %v534_v25 = vld [vmem:[%s13862_s21 + $0x210] sm:$0xff] }
  0x12   : > { %v548_v4 = vld [vmem:[%s13862_s21 + $0x280] sm:$0xff]  ;;  %v549_v7 = vld [vmem:[%s13862_s21 + $0x288] sm:$0xff]  ;;  %v550_v26 = vld [vmem:[%s13862_s21 + $0x290] sm:$0xff] }
  0x13   : > { %v10745_v6 = vcombine.high %v532_v3, %v548_v4  ;;  %v10744_v8 = vcombine.low %v532_v3, %v548_v4  ;;  %v500_v9 = vld [vmem:[%s13862_s21 + $0x100] sm:$0xff]  ;;  %v10747_v11 = vcombine.high %v533_v5, %v549_v7  ;;  %v10746_v12 = vcombine.low %v533_v5, %v549_v7  ;;  %v501_v14 = vld [vmem:[%s13862_s21 + $0x108] sm:$0xff]  ;;  %v535_v27 = vld [vmem:[%s13862_s21 + $0x218] sm:$0xff] }
  0x14   : > { %v516_v10 = vld [vmem:[%s13862_s21 + $0x180] sm:$0xff]  ;;  %v517_v15 = vld [vmem:[%s13862_s21 + $0x188] sm:$0xff]  ;;  %v551_v28 = vld [vmem:[%s13862_s21 + $0x298] sm:$0xff]  ;;  %v10749_v31 = vcombine.high %v534_v25, %v550_v26  ;;  %v10748_v38 = vcombine.low %v534_v25, %v550_v26 }
  0x15   : > { %v10713_v13 = vcombine.high %v500_v9, %v516_v10  ;;  %v468_v16 = vld [vmem:[%s13862_s21] sm:$0xff]  ;;  %1064 = vmatprep.subr.bf16.mxu0 %v10745_v6  ;;  %v10715_v17 = vcombine.high %v501_v14, %v517_v15  ;;  %v469_v19 = vld [vmem:[%s13862_s21 + $0x8] sm:$0xff]  ;;  %1105 = vmatprep.subr.bf16.mxu1 %v10747_v11  ;;  %v10712_v21 = vcombine.low %v500_v9, %v516_v10  ;;  %v502_v33 = vld [vmem:[%s13862_s21 + $0x110] sm:$0xff] }
  0x16   : > { %v484_v18 = vld [vmem:[%s13862_s21 + $0x80] sm:$0xff]  ;;  %v485_v20 = vld [vmem:[%s13862_s21 + $0x88] sm:$0xff]  ;;  %1065 = vmatpush1.bf16.msra.mxu0 %v10744_v8  ;;  %1106 = vmatpush1.bf16.msra.mxu1 %v10746_v12  ;;  %v10714_v22 = vcombine.low %v501_v14, %v517_v15  ;;  %v10751_v32 = vcombine.high %v535_v27, %v551_v28  ;;  %v518_v34 = vld [vmem:[%s13862_s21 + $0x190] sm:$0xff]  ;;  %v10750_v39 = vcombine.low %v535_v27, %v551_v28 }
  0x17   : > { %1066 = vmatprep.subr.bf16.mxu0 %v10713_v13  ;;  %v10681_v23 = vcombine.high %v468_v16, %v484_v18  ;;  %1107 = vmatprep.subr.bf16.mxu1 %v10715_v17  ;;  %v10683_v24 = vcombine.high %v469_v19, %v485_v20  ;;  %v10680_v29 = vcombine.low %v468_v16, %v484_v18  ;;  %v503_v35 = vld [vmem:[%s13862_s21 + $0x118] sm:$0xff]  ;;  %v470_v42 = vld [vmem:[%s13862_s21 + $0x10] sm:$0xff]  ;;  %v536_v50 = vld [vmem:[%s13862_s21 + $0x220] sm:$0xff] }
  0x18   : > { %v10682_v30 = vcombine.low %v469_v19, %v485_v20  ;;  %v519_v36 = vld [vmem:[%s13862_s21 + $0x198] sm:$0xff]  ;;  %v10717_v40 = vcombine.high %v502_v33, %v518_v34  ;;  %v486_v43 = vld [vmem:[%s13862_s21 + $0x90] sm:$0xff]  ;;  %v10716_v46 = vcombine.low %v502_v33, %v518_v34  ;;  %v552_v51 = vld [vmem:[%s13862_s21 + $0x2a0] sm:$0xff] }
  0x19   : > { %v10719_v41 = vcombine.high %v503_v35, %v519_v36  ;;  %v471_v44 = vld [vmem:[%s13862_s21 + $0x18] sm:$0xff]  ;;  %v10718_v47 = vcombine.low %v503_v35, %v519_v36  ;;  %v10685_v48 = vcombine.high %v470_v42, %v486_v43  ;;  %v537_v52 = vld [vmem:[%s13862_s21 + $0x228] sm:$0xff]  ;;  %v10684_v54 = vcombine.low %v470_v42, %v486_v43  ;;  %v504_v58 = vld [vmem:[%s13862_s21 + $0x120] sm:$0xff] }
  0x1a   : > { %1067 = vmatpush1.bf16.msra.mxu0 %v10712_v21  ;;  %1108 = vmatpush1.bf16.msra.mxu1 %v10714_v22  ;;  %v487_v45 = vld [vmem:[%s13862_s21 + $0x98] sm:$0xff]  ;;  %v553_v53 = vld [vmem:[%s13862_s21 + $0x2a8] sm:$0xff]  ;;  %v10753_v56 = vcombine.high %v536_v50, %v552_v51  ;;  %v520_v59 = vld [vmem:[%s13862_s21 + $0x1a0] sm:$0xff]  ;;  %v10752_v62 = vcombine.low %v536_v50, %v552_v51 }
  0x1b   : > { %1068 = vmatprep.subr.bf16.mxu0 %v10681_v23  ;;  %1109 = vmatprep.subr.bf16.mxu1 %v10683_v24  ;;  %v10687_v49 = vcombine.high %v471_v44, %v487_v45  ;;  %v10686_v55 = vcombine.low %v471_v44, %v487_v45  ;;  %v10755_v57 = vcombine.high %v537_v52, %v553_v53  ;;  %v505_v60 = vld [vmem:[%s13862_s21 + $0x128] sm:$0xff]  ;;  %v472_v3 = vld [vmem:[%s13862_s21 + $0x20] sm:$0xff]  ;;  %v538_v11 = vld [vmem:[%s13862_s21 + $0x230] sm:$0xff] }
  0x1c   : > { %v521_v61 = vld [vmem:[%s13862_s21 + $0x1a8] sm:$0xff]  ;;  %v10754_v63 = vcombine.low %v537_v52, %v553_v53  ;;  %v10721_v0 = vcombine.high %v504_v58, %v520_v59  ;;  %v488_v4 = vld [vmem:[%s13862_s21 + $0xa0] sm:$0xff]  ;;  %v10720_v7 = vcombine.low %v504_v58, %v520_v59  ;;  %v554_v12 = vld [vmem:[%s13862_s21 + $0x2b0] sm:$0xff] }
  0x1d   : > { %v10723_v1 = vcombine.high %v505_v60, %v521_v61  ;;  %v473_v5 = vld [vmem:[%s13862_s21 + $0x28] sm:$0xff]  ;;  %v10722_v8 = vcombine.low %v505_v60, %v521_v61  ;;  %v10689_v9 = vcombine.high %v472_v3, %v488_v4  ;;  %v539_v13 = vld [vmem:[%s13862_s21 + $0x238] sm:$0xff]  ;;  %v10688_v15 = vcombine.low %v472_v3, %v488_v4  ;;  %v506_v16 = vld [vmem:[%s13862_s21 + $0x130] sm:$0xff] }
  0x1e   : > { %1069 = vmatpush1.bf16.msra.mxu0 %v10680_v29  ;;  %1110 = vmatpush1.bf16.msra.mxu1 %v10682_v30  ;;  %v489_v6 = vld [vmem:[%s13862_s21 + $0xa8] sm:$0xff]  ;;  %v555_v14 = vld [vmem:[%s13862_s21 + $0x2b8] sm:$0xff]  ;;  %v522_v17 = vld [vmem:[%s13862_s21 + $0x1b0] sm:$0xff]  ;;  %v10757_v19 = vcombine.high %v538_v11, %v554_v12  ;;  %v10756_v23 = vcombine.low %v538_v11, %v554_v12 }
  0x1f   : > { %1146 = vmatprep.subr.bf16.mxu0 %v10749_v31  ;;  %1187 = vmatprep.subr.bf16.mxu1 %v10751_v32  ;;  %v10691_v10 = vcombine.high %v473_v5, %v489_v6  ;;  %v10690_v18 = vcombine.low %v473_v5, %v489_v6  ;;  %v507_v20 = vld [vmem:[%s13862_s21 + $0x138] sm:$0xff]  ;;  %v10759_v22 = vcombine.high %v539_v13, %v555_v14  ;;  %v474_v24 = vld [vmem:[%s13862_s21 + $0x30] sm:$0xff]  ;;  %v540_v32 = vld [vmem:[%s13862_s21 + $0x240] sm:$0xff] }
  0x20   : > { %v523_v21 = vld [vmem:[%s13862_s21 + $0x1b8] sm:$0xff]  ;;  %v490_v25 = vld [vmem:[%s13862_s21 + $0xb0] sm:$0xff]  ;;  %v10758_v26 = vcombine.low %v539_v13, %v555_v14  ;;  %v10725_v27 = vcombine.high %v506_v16, %v522_v17  ;;  %v10724_v31 = vcombine.low %v506_v16, %v522_v17  ;;  %v556_v33 = vld [vmem:[%s13862_s21 + $0x2c0] sm:$0xff] }
  0x21   : > { %10776 = vmatmul.mubr.msk.bf16.vlgmr.msra.gmra.mxu0 %vm1050_vm0, %v13887_v37  ;;  %10777 = vmatmul.mubr.msk.bf16.vlgmr.msra.gmra.mxu1 %vm1050_vm0, %v13887_v37  ;;  %v475_v28 = vld [vmem:[%s13862_s21 + $0x38] sm:$0xff]  ;;  %v10727_v30 = vcombine.high %v507_v20, %v523_v21  ;;  %v10726_v34 = vcombine.low %v507_v20, %v523_v21  ;;  %v10693_v35 = vcombine.high %v474_v24, %v490_v25  ;;  %v541_v36 = vld [vmem:[%s13862_s21 + $0x248] sm:$0xff]  ;;  %v524_v42 = vld [vmem:[%s13862_s21 + $0x1c0] sm:$0xff] }
  0x22   : > { %1147 = vmatpush1.bf16.msra.mxu0 %v10748_v38  ;;  %1188 = vmatpush1.bf16.msra.mxu1 %v10750_v39  ;;  %v491_v29 = vld [vmem:[%s13862_s21 + $0xb8] sm:$0xff]  ;;  %v557_v38 = vld [vmem:[%s13862_s21 + $0x2c8] sm:$0xff]  ;;  %v10761_v44 = vcombine.high %v540_v32, %v556_v33  ;;  %v492_v50 = vld [vmem:[%s13862_s21 + $0xc0] sm:$0xff] }
  0x23   : > { %1148 = vmatprep.subr.bf16.mxu0 %v10717_v40  ;;  %1189 = vmatprep.subr.bf16.mxu1 %v10719_v41  ;;  %v10695_v39 = vcombine.high %v475_v28, %v491_v29  ;;  %v10692_v40 = vcombine.low %v474_v24, %v490_v25  ;;  %v508_v41 = vld [vmem:[%s13862_s21 + $0x140] sm:$0xff]  ;;  %v10694_v43 = vcombine.low %v475_v28, %v491_v29  ;;  %v509_v45 = vld [vmem:[%s13862_s21 + $0x148] sm:$0xff]  ;;  %v558_v58 = vld [vmem:[%s13862_s21 + $0x2d0] sm:$0xff] }
  0x24   : > { %1168 = vmatprep.mubr.bf16.mxu0 %v13762_v2  ;;  %1209 = vmatprep.mubr.bf16.mxu1 %v13762_v2  ;;  %v10762_v51 = vcombine.low %v541_v36, %v557_v38  ;;  %v10729_v52 = vcombine.high %v508_v41, %v524_v42  ;;  %v477_v53 = vld [vmem:[%s13862_s21 + $0x48] sm:$0xff]  ;;  %v543_v61 = vld [vmem:[%s13862_s21 + $0x258] sm:$0xff]  ;;  %v526_v3 = vld [vmem:[%s13862_s21 + $0x1d0] sm:$0xff] }
  0x25   : > { %v511_v6 = vld [vmem:[%s13862_s21 + $0x158] sm:$0xff]  ;;  %v494_v11 = vld [vmem:[%s13862_s21 + $0xd0] sm:$0xff] }
  0x26   : > { %1149 = vmatpush1.bf16.msra.mxu0 %v10716_v46  ;;  %1190 = vmatpush1.bf16.msra.mxu1 %v10718_v47  ;;  %v525_v46 = vld [vmem:[%s13862_s21 + $0x1c8] sm:$0xff]  ;;  %v10763_v47 = vcombine.high %v541_v36, %v557_v38  ;;  %v479_v14 = vld [vmem:[%s13862_s21 + $0x58] sm:$0xff] }
  0x27   : > { %1150 = vmatprep.subr.bf16.mxu0 %v10685_v48  ;;  %1191 = vmatprep.subr.bf16.mxu1 %v10687_v49  ;;  %v10760_v48 = vcombine.low %v540_v32, %v556_v33  ;;  %v476_v49 = vld [vmem:[%s13862_s21 + $0x40] sm:$0xff]  ;;  %v10730_v59 = vcombine.low %v509_v45, %v525_v46 }
  0x28   : > { %v10697_v60 = vcombine.high %v476_v49, %v492_v50 }
  0x2a   : > { %1151 = vmatpush1.bf16.msra.mxu0 %v10684_v54  ;;  %1192 = vmatpush1.bf16.msra.mxu1 %v10686_v55  ;;  %v493_v54 = vld [vmem:[%s13862_s21 + $0xc8] sm:$0xff]  ;;  %v10731_v55 = vcombine.high %v509_v45, %v525_v46 }
  0x2b   : > { %1228 = vmatprep.subr.bf16.mxu0 %v10753_v56  ;;  %1269 = vmatprep.subr.bf16.mxu1 %v10755_v57  ;;  %v10728_v56 = vcombine.low %v508_v41, %v524_v42  ;;  %v542_v57 = vld [vmem:[%s13862_s21 + $0x250] sm:$0xff]  ;;  %v10698_v4 = vcombine.low %v477_v53, %v493_v54 }
  0x2c   : > { %v10765_v5 = vcombine.high %v542_v57, %v558_v58 }
  0x2d   : > { %10778 = vmatmul.mubr.msk.bf16.vlgmr.msra.gmra.mxu0 %vm1050_vm0, %v13887_v37  ;;  %10779 = vmatmul.mubr.msk.bf16.vlgmr.msra.gmra.mxu1 %vm1050_vm0, %v13887_v37 }
  0x2e   : > { %1229 = vmatpush1.bf16.msra.mxu0 %v10752_v62  ;;  %1270 = vmatpush1.bf16.msra.mxu1 %v10754_v63  ;;  %v559_v62 = vld [vmem:[%s13862_s21 + $0x2d8] sm:$0xff]  ;;  %v10699_v63 = vcombine.high %v477_v53, %v493_v54 }
  0x2f   : > { %1230 = vmatprep.subr.bf16.mxu0 %v10721_v0  ;;  %1271 = vmatprep.subr.bf16.mxu1 %v10723_v1  ;;  %v10696_v0 = vcombine.low %v476_v49, %v492_v50  ;;  %v510_v1 = vld [vmem:[%s13862_s21 + $0x150] sm:$0xff]  ;;  %v10766_v12 = vcombine.low %v543_v61, %v559_v62 }
  0x30   : > { %1250 = vmatprep.mubr.bf16.mxu0 %v13762_v2  ;;  %1291 = vmatprep.mubr.bf16.mxu1 %v13762_v2  ;;  %v10733_v13 = vcombine.high %v510_v1, %v526_v3  ;;  %v10732_v17 = vcombine.low %v510_v1, %v526_v3 }
  0x32   : > { %1231 = vmatpush1.bf16.msra.mxu0 %v10720_v7  ;;  %1272 = vmatpush1.bf16.msra.mxu1 %v10722_v8  ;;  %v527_v7 = vld [vmem:[%s13862_s21 + $0x1d8] sm:$0xff]  ;;  %v10767_v8 = vcombine.high %v543_v61, %v559_v62 }
  0x33   : > { %1232 = vmatprep.subr.bf16.mxu0 %v10689_v9  ;;  %1273 = vmatprep.subr.bf16.mxu1 %v10691_v10  ;;  %v10764_v9 = vcombine.low %v542_v57, %v558_v58  ;;  %v478_v10 = vld [vmem:[%s13862_s21 + $0x50] sm:$0xff]  ;;  %v10735_v16 = vcombine.high %v511_v6, %v527_v7  ;;  %v10734_v20 = vcombine.low %v511_v6, %v527_v7  ;;  %v531_v57 = vld [vmem:[%s13862_s21 + $0x1f8] sm:$0xff] }
  0x34   : > { %v10701_v21 = vcombine.high %v478_v10, %v494_v11  ;;  %v10700_v25 = vcombine.low %v478_v10, %v494_v11 }
  0x36   : > { %1233 = vmatpush1.bf16.msra.mxu0 %v10688_v15  ;;  %1274 = vmatpush1.bf16.msra.mxu1 %v10690_v18  ;;  %v495_v15 = vld [vmem:[%s13862_s21 + $0xd8] sm:$0xff]  ;;  %v544_v18 = vld [vmem:[%s13862_s21 + $0x260] sm:$0xff] }
  0x37   : > { %1310 = vmatprep.subr.bf16.mxu0 %v10757_v19  ;;  %1351 = vmatprep.subr.bf16.mxu1 %v10759_v22  ;;  %v560_v19 = vld [vmem:[%s13862_s21 + $0x2e0] sm:$0xff]  ;;  %v545_v22 = vld [vmem:[%s13862_s21 + $0x268] sm:$0xff]  ;;  %v10703_v24 = vcombine.high %v479_v14, %v495_v15  ;;  %v10702_v28 = vcombine.low %v479_v14, %v495_v15 }
  0x38   : > { %v10769_v29 = vcombine.high %v544_v18, %v560_v19  ;;  %v10768_v33 = vcombine.low %v544_v18, %v560_v19 }
  0x39   : > { %10780 = vmatmul.mubr.msk.bf16.vlgmr.msra.gmra.mxu0 %vm1050_vm0, %v13887_v37  ;;  %10781 = vmatmul.mubr.msk.bf16.vlgmr.msra.gmra.mxu1 %vm1050_vm0, %v13887_v37 }
  0x3a   : > { %1311 = vmatpush1.bf16.msra.mxu0 %v10756_v23  ;;  %1352 = vmatpush1.bf16.msra.mxu1 %v10758_v26  ;;  %v561_v23 = vld [vmem:[%s13862_s21 + $0x2e8] sm:$0xff]  ;;  %v512_v26 = vld [vmem:[%s13862_s21 + $0x160] sm:$0xff] }
  0x3b   : > { %1312 = vmatprep.subr.bf16.mxu0 %v10725_v27  ;;  %1353 = vmatprep.subr.bf16.mxu1 %v10727_v30  ;;  %v528_v27 = vld [vmem:[%s13862_s21 + $0x1e0] sm:$0xff]  ;;  %v513_v30 = vld [vmem:[%s13862_s21 + $0x168] sm:$0xff]  ;;  %v10771_v32 = vcombine.high %v545_v22, %v561_v23  ;;  %v10770_v36 = vcombine.low %v545_v22, %v561_v23 }
  0x3c   : > { %1332 = vmatprep.mubr.bf16.mxu0 %v13762_v2  ;;  %1373 = vmatprep.mubr.bf16.mxu1 %v13762_v2  ;;  %v10737_v38 = vcombine.high %v512_v26, %v528_v27  ;;  %v10736_v42 = vcombine.low %v512_v26, %v528_v27 }
  0x3e   : > { %1313 = vmatpush1.bf16.msra.mxu0 %v10724_v31  ;;  %1354 = vmatpush1.bf16.msra.mxu1 %v10726_v34  ;;  %v529_v31 = vld [vmem:[%s13862_s21 + $0x1e8] sm:$0xff]  ;;  %v480_v34 = vld [vmem:[%s13862_s21 + $0x60] sm:$0xff] }
  0x3f   : > { %1314 = vmatprep.subr.bf16.mxu0 %v10693_v35  ;;  %1355 = vmatprep.subr.bf16.mxu1 %v10695_v39  ;;  %v496_v35 = vld [vmem:[%s13862_s21 + $0xe0] sm:$0xff]  ;;  %v481_v39 = vld [vmem:[%s13862_s21 + $0x68] sm:$0xff]  ;;  %v10739_v41 = vcombine.high %v513_v30, %v529_v31  ;;  %v10738_v45 = vcombine.low %v513_v30, %v529_v31 }
  0x40   : > { %v10705_v46 = vcombine.high %v480_v34, %v496_v35  ;;  %v10704_v50 = vcombine.low %v480_v34, %v496_v35 }
  0x42   : > { %1315 = vmatpush1.bf16.msra.mxu0 %v10692_v40  ;;  %1356 = vmatpush1.bf16.msra.mxu1 %v10694_v43  ;;  %v497_v40 = vld [vmem:[%s13862_s21 + $0xe8] sm:$0xff]  ;;  %v546_v43 = vld [vmem:[%s13862_s21 + $0x270] sm:$0xff] }
  0x43   : > { %1392 = vmatprep.subr.bf16.mxu0 %v10761_v44  ;;  %1433 = vmatprep.subr.bf16.mxu1 %v10763_v47  ;;  %v562_v44 = vld [vmem:[%s13862_s21 + $0x2f0] sm:$0xff]  ;;  %v547_v47 = vld [vmem:[%s13862_s21 + $0x278] sm:$0xff]  ;;  %v10707_v49 = vcombine.high %v481_v39, %v497_v40  ;;  %v10706_v53 = vcombine.low %v481_v39, %v497_v40 }
  0x44   : > { %v10773_v54 = vcombine.high %v546_v43, %v562_v44  ;;  %v10772_v58 = vcombine.low %v546_v43, %v562_v44 }
  0x45   : > { %10782 = vmatmul.mubr.msk.bf16.vlgmr.msra.gmra.mxu0 %vm1050_vm0, %v13887_v37  ;;  %10783 = vmatmul.mubr.msk.bf16.vlgmr.msra.gmra.mxu1 %vm1050_vm0, %v13887_v37 }
  0x46   : > { %1393 = vmatpush1.bf16.msra.mxu0 %v10760_v48  ;;  %1434 = vmatpush1.bf16.msra.mxu1 %v10762_v51  ;;  %v563_v48 = vld [vmem:[%s13862_s21 + $0x2f8] sm:$0xff]  ;;  %v514_v51 = vld [vmem:[%s13862_s21 + $0x170] sm:$0xff] }
  0x47   : > { %1394 = vmatprep.subr.bf16.mxu0 %v10729_v52  ;;  %1435 = vmatprep.subr.bf16.mxu1 %v10731_v55  ;;  %v530_v52 = vld [vmem:[%s13862_s21 + $0x1f0] sm:$0xff]  ;;  %v10775_v55 = vcombine.high %v547_v47, %v563_v48  ;;  %v10774_v61 = vcombine.low %v547_v47, %v563_v48 }
  0x48   : > { %1414 = vmatprep.mubr.bf16.mxu0 %v13762_v2  ;;  %1455 = vmatprep.mubr.bf16.mxu1 %v13762_v2  ;;  %v10741_v62 = vcombine.high %v514_v51, %v530_v52  ;;  %v10740_v3 = vcombine.low %v514_v51, %v530_v52  ;;  %v13295_v52 = vld [vmem:[%s16050_s4] sm:$0xff]  }
  0x4a   : > { %1395 = vmatpush1.bf16.msra.mxu0 %v10728_v56  ;;  %1436 = vmatpush1.bf16.msra.mxu1 %v10730_v59  ;;  %v515_v56 = vld [vmem:[%s13862_s21 + $0x178] sm:$0xff]  ;;  %v482_v59 = vld [vmem:[%s13862_s21 + $0x70] sm:$0xff] }
  0x4b   : > { %1396 = vmatprep.subr.bf16.mxu0 %v10697_v60  ;;  %1437 = vmatprep.subr.bf16.mxu1 %v10699_v63  ;;  %v498_v60 = vld [vmem:[%s13862_s21 + $0xf0] sm:$0xff]  ;;  %v483_v63 = vld [vmem:[%s13862_s21 + $0x78] sm:$0xff]  ;;  %v10743_v1 = vcombine.high %v515_v56, %v531_v57 }
  0x4c   : > { %v10708_v7 = vcombine.low %v482_v59, %v498_v60 }
  0x4e   : > { %1397 = vmatpush1.bf16.msra.mxu0 %v10696_v0  ;;  %1438 = vmatpush1.bf16.msra.mxu1 %v10698_v4  ;;  %v499_v0 = vld [vmem:[%s13862_s21 + $0xf8] sm:$0xff]  ;;  %v10742_v4 = vcombine.low %v515_v56, %v531_v57  ;;  %v13294_v56 = vld [vmem:[%s16050_s4 + $0x8] sm:$0xff]  }
  0x4f   : > { %1474 = vmatprep.subr.bf16.mxu0 %v10765_v5  ;;  %1515 = vmatprep.subr.bf16.mxu1 %v10767_v8  ;;  %v10709_v5 = vcombine.high %v482_v59, %v498_v60  ;;  %v10711_v6 = vcombine.high %v483_v63, %v499_v0  ;;  %v10710_v8 = vcombine.low %v483_v63, %v499_v0 }
  0x51   : > { %10784 = vmatmul.mubr.msk.bf16.vlgmr.msra.gmra.mxu0 %vm1050_vm0, %v13887_v37  ;;  %10785 = vmatmul.mubr.msk.bf16.vlgmr.msra.gmra.mxu1 %vm1050_vm0, %v13887_v37 }
  0x52   : > { %1475 = vmatpush1.bf16.msra.mxu0 %v10764_v9  ;;  %1516 = vmatpush1.bf16.msra.mxu1 %v10766_v12  ;;  %v1814_v9 = vlaneseq }
  0x53   : > { %1476 = vmatprep.subr.bf16.mxu0 %v10733_v13  ;;  %1517 = vmatprep.subr.bf16.mxu1 %v10735_v16 }
  0x54   : > { %1496 = vmatprep.mubr.bf16.mxu0 %v13762_v2  ;;  %1537 = vmatprep.mubr.bf16.mxu1 %v13762_v2  ;;  %v1815_v10 = vshrl.u32 %v1814_v9, 7 }
  0x56   : > { %1477 = vmatpush1.bf16.msra.mxu0 %v10732_v17  ;;  %1518 = vmatpush1.bf16.msra.mxu1 %v10734_v20  ;;  %v14013_v11 = vsub.s32 0, %v1815_v10  ;;  %v14015_v12 = vsub.s32 1, %v1815_v10  ;;  %v14017_v13 = vsub.s32 2, %v1815_v10  ;;  %v14019_v14 = vsub.s32 3, %v1815_v10 }
  0x57   : > { %1478 = vmatprep.subr.bf16.mxu0 %v10701_v21  ;;  %1519 = vmatprep.subr.bf16.mxu1 %v10703_v24  ;;  %v14021_v15 = vsub.s32 4, %v1815_v10 }
  0x5a   : > { %1479 = vmatpush1.bf16.msra.mxu0 %v10700_v25  ;;  %1520 = vmatpush1.bf16.msra.mxu1 %v10702_v28 }
  0x5b   : > { %1556 = vmatprep.subr.bf16.mxu0 %v10769_v29  ;;  %1597 = vmatprep.subr.bf16.mxu1 %v10771_v32  ;;  %v14041_v29 = vsub.s32 6, %v1815_v10 }
  0x5d   : > { %10786 = vmatmul.mubr.msk.bf16.vlgmr.msra.gmra.mxu0 %vm1050_vm0, %v13887_v37  ;;  %10787 = vmatmul.mubr.msk.bf16.vlgmr.msra.gmra.mxu1 %vm1050_vm0, %v13887_v37 }
  0x5e   : > { %1557 = vmatpush1.bf16.msra.mxu0 %v10768_v33  ;;  %1598 = vmatpush1.bf16.msra.mxu1 %v10770_v36  ;;  %v14044_v33 = vsub.s32 5, %v1815_v10 }
  0x5f   : > { %1558 = vmatprep.subr.bf16.mxu0 %v10737_v38  ;;  %1599 = vmatprep.subr.bf16.mxu1 %v10739_v41  ;;  %v14046_v38 = vsub.s32 7, %v1815_v10 }
  0x60   : > { %1578 = vmatprep.mubr.bf16.mxu0 %v13762_v2  ;;  %1619 = vmatprep.mubr.bf16.mxu1 %v13762_v2 }
  0x62   : > { %1559 = vmatpush1.bf16.msra.mxu0 %v10736_v42  ;;  %1600 = vmatpush1.bf16.msra.mxu1 %v10738_v45 }
  0x63   : > { %1560 = vmatprep.subr.bf16.mxu0 %v10705_v46  ;;  %1601 = vmatprep.subr.bf16.mxu1 %v10707_v49 }
  0x66   : > { %1561 = vmatpush1.bf16.msra.mxu0 %v10704_v50  ;;  %1602 = vmatpush1.bf16.msra.mxu1 %v10706_v53 }
  0x67   : > { %1638 = vmatprep.subr.bf16.mxu0 %v10773_v54  ;;  %1679 = vmatprep.subr.bf16.mxu1 %v10775_v55 }
  0x69   : > { %10788 = vmatmul.mubr.msk.bf16.vlgmr.msra.gmra.mxu0 %vm1050_vm0, %v13887_v37  ;;  %10789 = vmatmul.mubr.msk.bf16.vlgmr.msra.gmra.mxu1 %vm1050_vm0, %v13887_v37 }
  0x6a   : > { %1639 = vmatpush1.bf16.msra.mxu0 %v10772_v58  ;;  %1680 = vmatpush1.bf16.msra.mxu1 %v10774_v61 }
  0x6b   : > { %1640 = vmatprep.subr.bf16.mxu0 %v10741_v62  ;;  %1681 = vmatprep.subr.bf16.mxu1 %v10743_v1 }
  0x6c   : > { %1660 = vmatprep.mubr.bf16.mxu0 %v13762_v2  ;;  %1701 = vmatprep.mubr.bf16.mxu1 %v13762_v2 }
  0x6e   : > { %1641 = vmatpush1.bf16.msra.mxu0 %v10740_v3  ;;  %1682 = vmatpush1.bf16.msra.mxu1 %v10742_v4 }
  0x6f   : > { %1642 = vmatprep.subr.bf16.mxu0 %v10709_v5  ;;  %1683 = vmatprep.subr.bf16.mxu1 %v10711_v6 }
  0x72   : > { %1643 = vmatpush1.bf16.msra.mxu0 %v10708_v7  ;;  %1684 = vmatpush1.bf16.msra.mxu1 %v10710_v8 }
  0x75   : > { %10790 = vmatmul.mubr.msk.bf16.vlgmr.msra.gmra.mxu0 %vm1050_vm0, %v13887_v37  ;;  %10791 = vmatmul.mubr.msk.bf16.vlgmr.msra.gmra.mxu1 %vm1050_vm0, %v13887_v37  ;;  %v14026_v37 = vld [vmem:[%s16047_s1] sm:$0xff] }
  0x76   : > { %2091 = vmatprep.mubr.bf16.mxu0 %v13762_v2  ;;  %2148 = vmatprep.mubr.bf16.mxu1 %v13762_v2  ;;  %v1817_v20 = vrot.slane %v14026_v37, %v14013_v11  ;;  %v1821_v23 = vrot.slane %v14026_v37, %v14015_v12  ;;  %v1829_v24 = vrot.slane %v14026_v37, %v14019_v14 }
  0x77   : > { %v1825_v25 = vrot.slane %v14026_v37, %v14017_v13  ;;  %v1833_v62 = vrot.slane %v14026_v37, %v14021_v15  ;;  %v1841_v3 = vrot.slane %v14026_v37, %v14041_v29  ;;  %v1837_v5 = vrot.slane %v14026_v37, %v14044_v33 }
  0x78   : > { %v1845_v10 = vrot.slane %v14026_v37, %v14046_v38 }
  0x8b   : > { %v14028_v16 = vpop.permute.xlu0 %567 }
  0xe1   : > { %v1088_v17 = vpop.f32.mrf.mxu0  ;;  %v1129_v19 = vpop.f32.mrf.mxu1 }
  0xe2   : > { %v1089_v18 = vadd.f32 %v1088_v17, %v14028_v16  ;;  %v1130_v21 = vadd.f32 %v1129_v19, %v14028_v16 }
  0xe3   : > { %v1090_v22 = vpop.f32.mrf.mxu0  ;;  %v1131_v28 = vpop.f32.mrf.mxu1 }
  0xe4   : > { %vm1710_vm2 = vcmp.ge.f32.partialorder %v1089_v18, 0.0  ;;  %v1742_v26 = vmul.f32 0.2, %v1089_v18  ;;  %v1091_v27 = vadd.f32 %v1090_v22, %v14028_v16  ;;  %vm1712_vm3 = vcmp.ge.f32.partialorder %v1130_v21, 0.0 }
  0xe5   : > { %v1744_v30 = vmul.f32 0.2, %v1130_v21  ;;  %v1132_v31 = vadd.f32 %v1131_v28, %v14028_v16  ;;  %v1092_v32 = vpop.f32.mrf.mxu0  ;;  %v1133_v36 = vpop.f32.mrf.mxu1 }
  0xe6   : > { %v1774_v34 = vsel %vm1710_vm2, %v1089_v18, %v1742_v26  ;;  %vm1711_vm4 = vcmp.ge.f32.partialorder %v1091_v27, 0.0  ;;  %v1743_v35 = vmul.f32 0.2, %v1091_v27  ;;  %v13296_v32 = vld [vmem:[%s16050_s4 + $0x10] sm:$0xff]  }
  0xe7   : > { %v1776_v39 = vsel %vm1712_vm3, %v1130_v21, %v1744_v30  ;;  %vm1713_vm5 = vcmp.ge.f32.partialorder %v1132_v31, 0.0  ;;  %v1745_v40 = vmul.f32 0.2, %v1132_v31  ;;  %v1093_v41 = vpop.f32.mrf.mxu0  ;;  %v1974_v42 = vmul.f32 %v1817_v20, %v1774_v34  ;;  %v1134_v44 = vpop.f32.mrf.mxu1  ;;  %v14077_v30 = vld [vmem:[%s16047_s1 + $0x8] sm:$0xff] }
  0xe8   : > { %v1775_v43 = vsel %vm1711_vm4, %v1091_v27, %v1743_v35  ;;  %v1976_v45 = vmul.f32 %v1825_v25, %v1776_v39  ;;  %v13297_v39 = vld [vmem:[%s16050_s4 + $0x18] sm:$0xff]  }
  0xe9   : > { %v1975_v46 = vmul.f32 %v1821_v23, %v1775_v43  ;;  %v1777_v47 = vsel %vm1713_vm5, %v1132_v31, %v1745_v40  ;;  %v2006_v48 = vpack.c.bf16 %v1974_v42, %v1974_v42 }
  0xea   : > { %v1977_v49 = vmul.f32 %v1829_v24, %v1777_v47  ;;  %v2008_v50 = vpack.c.bf16 %v1976_v45, %v1976_v45  ;;  %v1849_v45 = vrot.slane %v14077_v30, %v14013_v11 }
  0xeb   : > { %v2007_v51 = vpack.c.bf16 %v1975_v46, %v1975_v46  ;;  %v2111_v55 = vsel %vm2052_vm1, %v2006_v48, 0 }
  0xec   : > { %v2009_v53 = vpack.c.bf16 %v1977_v49, %v1977_v49  ;;  %v2054_v54 = vsel %vm2052_vm1, %v2008_v50, 0  ;;  %v1857_v49 = vrot.slane %v14077_v30, %v14017_v13 }
  0xed   : > { %v1170_v57 = vpop.f32.mrf.mxu0  ;;  %10798 = vmatprep.subr.msk.bf16.mxu1 %vm2052_vm1, %v2007_v51  ;;  %v1211_v59 = vpop.f32.mrf.mxu1  ;;  %v1853_v51 = vrot.slane %v14077_v30, %v14015_v12 }
  0xee   : > { %v1171_v58 = vadd.f32 %v1170_v57, %v14028_v16  ;;  %10795 = vmatprep.subr.msk.bf16.mxu0 %vm2052_vm1, %v2009_v53  ;;  %2131 = vmatpush1.bf16.msra.mxu1 %v2111_v55  ;;  %v1212_v60 = vadd.f32 %v1211_v59, %v14028_v16 }
  0xef   : > { %2074 = vmatpush1.bf16.msra.mxu0 %v2054_v54  ;;  %v1172_v61 = vpop.f32.mrf.mxu0  ;;  %v1213_v1 = vpop.f32.mrf.mxu1 }
  0xf0   : > { %vm1714_vm7 = vcmp.ge.f32.partialorder %v1171_v58, 0.0  ;;  %v1746_v63 = vmul.f32 0.2, %v1171_v58  ;;  %v1173_v0 = vadd.f32 %v1172_v61, %v14028_v16  ;;  %vm1716_vm8 = vcmp.ge.f32.partialorder %v1212_v60, 0.0 }
  0xf1   : > { %v1748_v4 = vmul.f32 0.2, %v1212_v60  ;;  %v1214_v6 = vadd.f32 %v1213_v1, %v14028_v16  ;;  %v1174_v7 = vpop.f32.mrf.mxu0  ;;  %10799 = vmatmul.mubr.msk.bf16.vlgmr.msra.gmra.mxu1 %vm2048_vm6, %v13295_v52  ;;  %v1215_v17 = vpop.f32.mrf.mxu1 }
  0xf2   : > { %v1778_v8 = vsel %vm1714_vm7, %v1171_v58, %v1746_v63  ;;  %vm1715_vm9 = vcmp.ge.f32.partialorder %v1173_v0, 0.0  ;;  %v1747_v9 = vmul.f32 0.2, %v1173_v0  ;;  %10796 = vmatmul.mubr.msk.bf16.vlgmr.msra.gmra.mxu0 %vm2048_vm6, %v13294_v56  ;;  %2272 = vmatprep.mubr.bf16.mxu1 %v13762_v2  ;;  %v1861_v56 = vrot.slane %v14077_v30, %v14019_v14 }
  0xf3   : > { %v1780_v18 = vsel %vm1716_vm8, %v1212_v60, %v1748_v4  ;;  %vm1717_vm10 = vcmp.ge.f32.partialorder %v1214_v6, 0.0  ;;  %v1749_v19 = vmul.f32 0.2, %v1214_v6  ;;  %v1175_v20 = vpop.f32.mrf.mxu0  ;;  %v1978_v21 = vmul.f32 %v1833_v62, %v1778_v8  ;;  %2208 = vmatprep.mubr.bf16.mxu0 %v13762_v2  ;;  %v1216_v23 = vpop.f32.mrf.mxu1  ;;  %v13298_v8 = vld [vmem:[%s16050_s4 + $0x20] sm:$0xff]  }
  0xf4   : > { %v1779_v22 = vsel %vm1715_vm9, %v1173_v0, %v1747_v9  ;;  %v1980_v24 = vmul.f32 %v1841_v3, %v1780_v18  ;;  %v13299_v18 = vld [vmem:[%s16050_s4 + $0x28] sm:$0xff]  }
  0xf5   : > { %v1979_v25 = vmul.f32 %v1837_v5, %v1779_v22  ;;  %v1781_v26 = vsel %vm1717_vm10, %v1214_v6, %v1749_v19  ;;  %v2010_v27 = vpack.c.bf16 %v1978_v21, %v1978_v21 }
  0xf6   : > { %v1981_v28 = vmul.f32 %v1845_v10, %v1781_v26  ;;  %v2012_v37 = vpack.c.bf16 %v1980_v24, %v1980_v24  ;;  %v1865_v24 = vrot.slane %v14077_v30, %v14021_v15 }
  0xf7   : > { %v2011_v31 = vpack.c.bf16 %v1979_v25, %v1979_v25  ;;  %v2171_v35 = vsel %vm2052_vm1, %v2010_v27, 0 }
  0xf8   : > { %v2013_v34 = vpack.c.bf16 %v1981_v28, %v1981_v28  ;;  %v2235_v36 = vsel %vm2052_vm1, %v2012_v37, 0  ;;  %v1873_v28 = vrot.slane %v14077_v30, %v14041_v29 }
  0xf9   : > { %v1252_v40 = vpop.f32.mrf.mxu0  ;;  %10803 = vmatprep.subr.msk.bf16.mxu0 %vm2052_vm1, %v2011_v31  ;;  %v1293_v42 = vpop.f32.mrf.mxu1  ;;  %v1869_v31 = vrot.slane %v14077_v30, %v14044_v33 }
  0xfa   : > { %v1253_v41 = vadd.f32 %v1252_v40, %v14028_v16  ;;  %10808 = vmatprep.subr.msk.bf16.mxu1 %vm2052_vm1, %v2013_v34  ;;  %2191 = vmatpush1.bf16.msra.mxu0 %v2171_v35  ;;  %v1294_v43 = vadd.f32 %v1293_v42, %v14028_v16 }
  0xfb   : > { %2255 = vmatpush1.bf16.msra.mxu1 %v2235_v36  ;;  %v1254_v44 = vpop.f32.mrf.mxu0  ;;  %v1295_v48 = vpop.f32.mrf.mxu1 }
  0xfc   : > { %vm1718_vm11 = vcmp.ge.f32.partialorder %v1253_v41, 0.0  ;;  %v1750_v46 = vmul.f32 0.2, %v1253_v41  ;;  %v1255_v47 = vadd.f32 %v1254_v44, %v14028_v16  ;;  %vm1720_vm12 = vcmp.ge.f32.partialorder %v1294_v43, 0.0 }
  0xfd   : > { %v1752_v50 = vmul.f32 0.2, %v1294_v43  ;;  %v1296_v52 = vadd.f32 %v1295_v48, %v14028_v16  ;;  %v1256_v53 = vpop.f32.mrf.mxu0  ;;  %10804 = vmatmul.mubr.msk.bf16.vlgmr.msra.gmra.mxu0 %vm2048_vm6, %v13296_v32  ;;  %v1297_v57 = vpop.f32.mrf.mxu1 }
  0xfe   : > { %v1782_v54 = vsel %vm1718_vm11, %v1253_v41, %v1750_v46  ;;  %vm1719_vm13 = vcmp.ge.f32.partialorder %v1255_v47, 0.0  ;;  %v1751_v55 = vmul.f32 0.2, %v1255_v47  ;;  %10809 = vmatmul.mubr.msk.bf16.vlgmr.msra.gmra.mxu1 %vm2048_vm6, %v13297_v39  ;;  %2336 = vmatprep.mubr.bf16.mxu0 %v13762_v2  ;;  %v1877_v39 = vrot.slane %v14077_v30, %v14046_v38  ;;  %v14134_v53 = vld [vmem:[%s16047_s1 + $0x10] sm:$0xff] }
  0xff   : > { %v1784_v58 = vsel %vm1720_vm12, %v1294_v43, %v1752_v50  ;;  %vm1721_vm14 = vcmp.ge.f32.partialorder %v1296_v52, 0.0  ;;  %v1753_v59 = vmul.f32 0.2, %v1296_v52  ;;  %v1257_v60 = vpop.f32.mrf.mxu0  ;;  %v1982_v61 = vmul.f32 %v1849_v45, %v1782_v54  ;;  %2400 = vmatprep.mubr.bf16.mxu1 %v13762_v2  ;;  %v1298_v63 = vpop.f32.mrf.mxu1  ;;  %v13300_v54 = vld [vmem:[%s16050_s4 + $0x30] sm:$0xff]  }
 0x100   : > { %v1783_v62 = vsel %vm1719_vm13, %v1255_v47, %v1751_v55  ;;  %v1984_v0 = vmul.f32 %v1857_v49, %v1784_v58  ;;  %v13301_v58 = vld [vmem:[%s16050_s4 + $0x38] sm:$0xff]  }
 0x101   : > { %v1983_v1 = vmul.f32 %v1853_v51, %v1783_v62  ;;  %v1785_v3 = vsel %vm1721_vm14, %v1296_v52, %v1753_v59  ;;  %v2014_v4 = vpack.c.bf16 %v1982_v61, %v1982_v61 }
 0x102   : > { %v1985_v5 = vmul.f32 %v1861_v56, %v1785_v3  ;;  %v2016_v6 = vpack.c.bf16 %v1984_v0, %v1984_v0  ;;  %v1881_v0 = vrot.slane %v14134_v53, %v14013_v11 }
 0x103   : > { %v2015_v7 = vpack.c.bf16 %v1983_v1, %v1983_v1  ;;  %v2299_v10 = vsel %vm2052_vm1, %v2014_v4, 0 }
 0x104   : > { %v2017_v9 = vpack.c.bf16 %v1985_v5, %v1985_v5  ;;  %v2363_v17 = vsel %vm2052_vm1, %v2016_v6, 0  ;;  %v1889_v5 = vrot.slane %v14134_v53, %v14017_v13 }
 0x105   : > { %v1334_v19 = vpop.f32.mrf.mxu0  ;;  %10813 = vmatprep.subr.msk.bf16.mxu0 %vm2052_vm1, %v2015_v7  ;;  %v1375_v21 = vpop.f32.mrf.mxu1  ;;  %v1885_v7 = vrot.slane %v14134_v53, %v14015_v12 }
 0x106   : > { %v1335_v20 = vadd.f32 %v1334_v19, %v14028_v16  ;;  %10818 = vmatprep.subr.msk.bf16.mxu1 %vm2052_vm1, %v2017_v9  ;;  %2319 = vmatpush1.bf16.msra.mxu0 %v2299_v10  ;;  %v1376_v22 = vadd.f32 %v1375_v21, %v14028_v16 }
 0x107   : > { %2383 = vmatpush1.bf16.msra.mxu1 %v2363_v17  ;;  %v1336_v23 = vpop.f32.mrf.mxu0  ;;  %v1377_v27 = vpop.f32.mrf.mxu1 }
 0x108   : > { %vm1722_vm15 = vcmp.ge.f32.partialorder %v1335_v20, 0.0  ;;  %v1754_v25 = vmul.f32 0.2, %v1335_v20  ;;  %v1337_v26 = vadd.f32 %v1336_v23, %v14028_v16  ;;  %vm1724_vm0 = vcmp.ge.f32.partialorder %v1376_v22, 0.0 }
 0x109   : > { %v1756_v37 = vmul.f32 0.2, %v1376_v22  ;;  %v1378_v32 = vadd.f32 %v1377_v27, %v14028_v16  ;;  %v1338_v34 = vpop.f32.mrf.mxu0  ;;  %10814 = vmatmul.mubr.msk.bf16.vlgmr.msra.gmra.mxu0 %vm2048_vm6, %v13298_v8  ;;  %v1379_v40 = vpop.f32.mrf.mxu1 }
 0x10a   : > { %v1786_v35 = vsel %vm1722_vm15, %v1335_v20, %v1754_v25  ;;  %vm1723_vm2 = vcmp.ge.f32.partialorder %v1337_v26, 0.0  ;;  %v1755_v36 = vmul.f32 0.2, %v1337_v26  ;;  %10819 = vmatmul.mubr.msk.bf16.vlgmr.msra.gmra.mxu1 %vm2048_vm6, %v13299_v18  ;;  %2464 = vmatprep.mubr.bf16.mxu0 %v13762_v2  ;;  %v1893_v18 = vrot.slane %v14134_v53, %v14019_v14 }
 0x10b   : > { %v1788_v41 = vsel %vm1724_vm0, %v1376_v22, %v1756_v37  ;;  %vm1725_vm3 = vcmp.ge.f32.partialorder %v1378_v32, 0.0  ;;  %v1757_v42 = vmul.f32 0.2, %v1378_v32  ;;  %v1339_v43 = vpop.f32.mrf.mxu0  ;;  %v1986_v44 = vmul.f32 %v1865_v24, %v1786_v35  ;;  %2528 = vmatprep.mubr.bf16.mxu1 %v13762_v2  ;;  %v1380_v46 = vpop.f32.mrf.mxu1  ;;  %v13302_v35 = vld [vmem:[%s16050_s4 + $0x40] sm:$0xff]  }
 0x10c   : > { %v1787_v45 = vsel %vm1723_vm2, %v1337_v26, %v1755_v36  ;;  %v1988_v47 = vmul.f32 %v1873_v28, %v1788_v41  ;;  %v13303_v41 = vld [vmem:[%s16050_s4 + $0x48] sm:$0xff]  }
 0x10d   : > { %v1987_v48 = vmul.f32 %v1869_v31, %v1787_v45  ;;  %v1789_v49 = vsel %vm1725_vm3, %v1378_v32, %v1757_v42  ;;  %v2018_v50 = vpack.c.bf16 %v1986_v44, %v1986_v44 }
 0x10e   : > { %v1989_v51 = vmul.f32 %v1877_v39, %v1789_v49  ;;  %v2020_v30 = vpack.c.bf16 %v1988_v47, %v1988_v47  ;;  %v1897_v47 = vrot.slane %v14134_v53, %v14021_v15 }
 0x10f   : > { %v2019_v52 = vpack.c.bf16 %v1987_v48, %v1987_v48  ;;  %v2427_v56 = vsel %vm2052_vm1, %v2018_v50, 0 }
 0x110   : > { %v2021_v55 = vpack.c.bf16 %v1989_v51, %v1989_v51  ;;  %v2491_v57 = vsel %vm2052_vm1, %v2020_v30, 0  ;;  %v1905_v51 = vrot.slane %v14134_v53, %v14041_v29 }
 0x111   : > { %v1416_v59 = vpop.f32.mrf.mxu0  ;;  %10823 = vmatprep.subr.msk.bf16.mxu0 %vm2052_vm1, %v2019_v52  ;;  %v1457_v61 = vpop.f32.mrf.mxu1  ;;  %v1901_v52 = vrot.slane %v14134_v53, %v14044_v33 }
 0x112   : > { %v1417_v60 = vadd.f32 %v1416_v59, %v14028_v16  ;;  %10828 = vmatprep.subr.msk.bf16.mxu1 %vm2052_vm1, %v2021_v55  ;;  %2447 = vmatpush1.bf16.msra.mxu0 %v2427_v56  ;;  %v1458_v62 = vadd.f32 %v1457_v61, %v14028_v16 }
 0x113   : > { %2511 = vmatpush1.bf16.msra.mxu1 %v2491_v57  ;;  %v1418_v63 = vpop.f32.mrf.mxu0  ;;  %v1459_v4 = vpop.f32.mrf.mxu1 }
 0x114   : > { %vm1726_vm4 = vcmp.ge.f32.partialorder %v1417_v60, 0.0  ;;  %v1758_v1 = vmul.f32 0.2, %v1417_v60  ;;  %v1419_v3 = vadd.f32 %v1418_v63, %v14028_v16  ;;  %vm1728_vm5 = vcmp.ge.f32.partialorder %v1458_v62, 0.0 }
 0x115   : > { %v1760_v6 = vmul.f32 0.2, %v1458_v62  ;;  %v1460_v8 = vadd.f32 %v1459_v4, %v14028_v16  ;;  %v1420_v9 = vpop.f32.mrf.mxu0  ;;  %10824 = vmatmul.mubr.msk.bf16.vlgmr.msra.gmra.mxu0 %vm2048_vm6, %v13300_v54  ;;  %v1461_v19 = vpop.f32.mrf.mxu1 }
 0x116   : > { %v1790_v10 = vsel %vm1726_vm4, %v1417_v60, %v1758_v1  ;;  %vm1727_vm7 = vcmp.ge.f32.partialorder %v1419_v3, 0.0  ;;  %v1759_v17 = vmul.f32 0.2, %v1419_v3  ;;  %10829 = vmatmul.mubr.msk.bf16.vlgmr.msra.gmra.mxu1 %vm2048_vm6, %v13301_v58  ;;  %2592 = vmatprep.mubr.bf16.mxu0 %v13762_v2  ;;  %v1909_v58 = vrot.slane %v14134_v53, %v14046_v38  ;;  %v14191_v9 = vld [vmem:[%s16047_s1 + $0x18] sm:$0xff] }
 0x117   : > { %v1792_v20 = vsel %vm1728_vm5, %v1458_v62, %v1760_v6  ;;  %vm1729_vm8 = vcmp.ge.f32.partialorder %v1460_v8, 0.0  ;;  %v1761_v21 = vmul.f32 0.2, %v1460_v8  ;;  %v1421_v22 = vpop.f32.mrf.mxu0  ;;  %v1990_v23 = vmul.f32 %v1881_v0, %v1790_v10  ;;  %2656 = vmatprep.mubr.bf16.mxu1 %v13762_v2  ;;  %v1462_v25 = vpop.f32.mrf.mxu1  ;;  %v13304_v10 = vld [vmem:[%s16050_s4 + $0x50] sm:$0xff]  }
 0x118   : > { %v1791_v24 = vsel %vm1727_vm7, %v1419_v3, %v1759_v17  ;;  %v1992_v26 = vmul.f32 %v1889_v5, %v1792_v20  ;;  %v13305_v20 = vld [vmem:[%s16050_s4 + $0x58] sm:$0xff]  }
 0x119   : > { %v1991_v27 = vmul.f32 %v1885_v7, %v1791_v24  ;;  %v1793_v28 = vsel %vm1729_vm8, %v1460_v8, %v1761_v21  ;;  %v2022_v37 = vpack.c.bf16 %v1990_v23, %v1990_v23 }
 0x11a   : > { %v1993_v31 = vmul.f32 %v1893_v18, %v1793_v28  ;;  %v2024_v32 = vpack.c.bf16 %v1992_v26, %v1992_v26  ;;  %v1913_v26 = vrot.slane %v14191_v9, %v14013_v11 }
 0x11b   : > { %v2023_v34 = vpack.c.bf16 %v1991_v27, %v1991_v27  ;;  %v2555_v39 = vsel %vm2052_vm1, %v2022_v37, 0 }
 0x11c   : > { %v2025_v36 = vpack.c.bf16 %v1993_v31, %v1993_v31  ;;  %v2619_v40 = vsel %vm2052_vm1, %v2024_v32, 0  ;;  %v1921_v31 = vrot.slane %v14191_v9, %v14017_v13 }
 0x11d   : > { %v1498_v42 = vpop.f32.mrf.mxu0  ;;  %10833 = vmatprep.subr.msk.bf16.mxu0 %vm2052_vm1, %v2023_v34  ;;  %v1539_v44 = vpop.f32.mrf.mxu1  ;;  %v1917_v34 = vrot.slane %v14191_v9, %v14015_v12 }
 0x11e   : > { %v1499_v43 = vadd.f32 %v1498_v42, %v14028_v16  ;;  %10838 = vmatprep.subr.msk.bf16.mxu1 %vm2052_vm1, %v2025_v36  ;;  %2575 = vmatpush1.bf16.msra.mxu0 %v2555_v39  ;;  %v1540_v45 = vadd.f32 %v1539_v44, %v14028_v16 }
 0x11f   : > { %2639 = vmatpush1.bf16.msra.mxu1 %v2619_v40  ;;  %v1500_v46 = vpop.f32.mrf.mxu0  ;;  %v1541_v50 = vpop.f32.mrf.mxu1  ;;  %v1925_v40 = vrot.slane %v14191_v9, %v14019_v14 }
 0x120   : > { %vm1730_vm9 = vcmp.ge.f32.partialorder %v1499_v43, 0.0  ;;  %v1762_v48 = vmul.f32 0.2, %v1499_v43  ;;  %v1501_v49 = vadd.f32 %v1500_v46, %v14028_v16  ;;  %vm1732_vm10 = vcmp.ge.f32.partialorder %v1540_v45, 0.0 }
 0x121   : > { %v1764_v30 = vmul.f32 0.2, %v1540_v45  ;;  %v1542_v54 = vadd.f32 %v1541_v50, %v14028_v16  ;;  %v1502_v55 = vpop.f32.mrf.mxu0  ;;  %10834 = vmatmul.mubr.msk.bf16.vlgmr.msra.gmra.mxu0 %vm2048_vm6, %v13302_v35  ;;  %v1543_v59 = vpop.f32.mrf.mxu1 }
 0x122   : > { %v1794_v56 = vsel %vm1730_vm9, %v1499_v43, %v1762_v48  ;;  %vm1731_vm11 = vcmp.ge.f32.partialorder %v1501_v49, 0.0  ;;  %v1763_v57 = vmul.f32 0.2, %v1501_v49  ;;  %10839 = vmatmul.mubr.msk.bf16.vlgmr.msra.gmra.mxu1 %vm2048_vm6, %v13303_v41  ;;  %2720 = vmatprep.mubr.bf16.mxu0 %v13762_v2  ;;  %vm3495_vm9 = vcmask 130048  }
 0x123   : > { %v1796_v60 = vsel %vm1732_vm10, %v1540_v45, %v1764_v30  ;;  %vm1733_vm12 = vcmp.ge.f32.partialorder %v1542_v54, 0.0  ;;  %v1765_v61 = vmul.f32 0.2, %v1542_v54  ;;  %v1503_v62 = vpop.f32.mrf.mxu0  ;;  %v1994_v63 = vmul.f32 %v1897_v47, %v1794_v56  ;;  %2784 = vmatprep.mubr.bf16.mxu1 %v13762_v2  ;;  %v1544_v1 = vpop.f32.mrf.mxu1  ;;  %v13306_v30 = vld [vmem:[%s16050_s4 + $0x60] sm:$0xff]   ;;  %v13307_v56 = vld [vmem:[%s16050_s4 + $0x68] sm:$0xff]  }
 0x124   : > { %v1795_v0 = vsel %vm1731_vm11, %v1501_v49, %v1763_v57  ;;  %v1996_v3 = vmul.f32 %v1905_v51, %v1796_v60  ;;  %v1929_v62 = vrot.slane %v14191_v9, %v14021_v15  ;;  %vm7055_vm10 = vcmask 523264  }
 0x125   : > { %v1995_v4 = vmul.f32 %v1901_v52, %v1795_v0  ;;  %v1797_v5 = vsel %vm1733_vm12, %v1542_v54, %v1765_v61  ;;  %v2026_v6 = vpack.c.bf16 %v1994_v63, %v1994_v63 }
 0x126   : > { %v1997_v7 = vmul.f32 %v1909_v58, %v1797_v5  ;;  %v2028_v53 = vpack.c.bf16 %v1996_v3, %v1996_v3  ;;  %v1937_v3 = vrot.slane %v14191_v9, %v14041_v29  ;;  %v1933_v5 = vrot.slane %v14191_v9, %v14044_v33 }
 0x127   : > { %v2027_v8 = vpack.c.bf16 %v1995_v4, %v1995_v4  ;;  %v2683_v18 = vsel %vm2052_vm1, %v2026_v6, 0 }
 0x128   : > { %v2029_v17 = vpack.c.bf16 %v1997_v7, %v1997_v7  ;;  %v2747_v19 = vsel %vm2052_vm1, %v2028_v53, 0 }
 0x129   : > { %v1580_v21 = vpop.f32.mrf.mxu0  ;;  %10843 = vmatprep.subr.msk.bf16.mxu0 %vm2052_vm1, %v2027_v8  ;;  %v1621_v23 = vpop.f32.mrf.mxu1  ;;  %v1941_v8 = vrot.slane %v14191_v9, %v14046_v38 }
 0x12a   : > { %v1581_v22 = vadd.f32 %v1580_v21, %v14028_v16  ;;  %10848 = vmatprep.subr.msk.bf16.mxu1 %vm2052_vm1, %v2029_v17  ;;  %2703 = vmatpush1.bf16.msra.mxu0 %v2683_v18  ;;  %v1622_v24 = vadd.f32 %v1621_v23, %v14028_v16 }
 0x12b   : > { %2767 = vmatpush1.bf16.msra.mxu1 %v2747_v19  ;;  %v1582_v25 = vpop.f32.mrf.mxu0  ;;  %v1623_v37 = vpop.f32.mrf.mxu1 }
 0x12c   : > { %vm1734_vm13 = vcmp.ge.f32.partialorder %v1581_v22, 0.0  ;;  %v1766_v27 = vmul.f32 0.2, %v1581_v22  ;;  %v1583_v28 = vadd.f32 %v1582_v25, %v14028_v16  ;;  %vm1736_vm14 = vcmp.ge.f32.partialorder %v1622_v24, 0.0  ;;  %v13308_v25 = vld [vmem:[%s16050_s4 + $0x70] sm:$0xff]  }
 0x12d   : > { %v1768_v32 = vmul.f32 0.2, %v1622_v24  ;;  %v1624_v35 = vadd.f32 %v1623_v37, %v14028_v16  ;;  %v1584_v36 = vpop.f32.mrf.mxu0  ;;  %10844 = vmatmul.mubr.msk.bf16.vlgmr.msra.gmra.mxu0 %vm2048_vm6, %v13304_v10  ;;  %v1625_v41 = vpop.f32.mrf.mxu1 }
 0x12e   : > { %v1798_v39 = vsel %vm1734_vm13, %v1581_v22, %v1766_v27  ;;  %vm1735_vm15 = vcmp.ge.f32.partialorder %v1583_v28, 0.0  ;;  %v1767_v11 = vmul.f32 0.2, %v1583_v28  ;;  %10849 = vmatmul.mubr.msk.bf16.vlgmr.msra.gmra.mxu1 %vm2048_vm6, %v13305_v20  ;;  %2848 = vmatprep.mubr.bf16.mxu0 %v13762_v2 }
 0x12f   : > { %v1800_v13 = vsel %vm1736_vm14, %v1622_v24, %v1768_v32  ;;  %vm1737_vm0 = vcmp.ge.f32.partialorder %v1624_v35, 0.0  ;;  %v1769_v42 = vmul.f32 0.2, %v1624_v35  ;;  %v1585_v12 = vpop.f32.mrf.mxu0  ;;  %v1998_v43 = vmul.f32 %v1913_v26, %v1798_v39  ;;  %2912 = vmatprep.mubr.bf16.mxu1 %v13762_v2  ;;  %v1626_v45 = vpop.f32.mrf.mxu1 }
 0x130   : > { %v1799_v44 = vsel %vm1735_vm15, %v1583_v28, %v1767_v11  ;;  %v2000_v46 = vmul.f32 %v1921_v31, %v1800_v13  ;;  %vm7381_vm15 = vcmask 261120  }
 0x131   : > { %v1999_v47 = vmul.f32 %v1917_v34, %v1799_v44  ;;  %v1801_v48 = vsel %vm1737_vm0, %v1624_v35, %v1769_v42  ;;  %v2030_v49 = vpack.c.bf16 %v1998_v43, %v1998_v43 }
 0x132   : > { %v2001_v50 = vmul.f32 %v1925_v40, %v1801_v48  ;;  %v2032_v14 = vpack.c.bf16 %v2000_v46, %v2000_v46 }
 0x133   : > { %v2031_v51 = vpack.c.bf16 %v1999_v47, %v1999_v47  ;;  %v2811_v54 = vsel %vm2052_vm1, %v2030_v49, 0 }
 0x134   : > { %v2033_v52 = vpack.c.bf16 %v2001_v50, %v2001_v50  ;;  %v2875_v55 = vsel %vm2052_vm1, %v2032_v14, 0 }
 0x135   : > { %v1662_v57 = vpop.f32.mrf.mxu0  ;;  %10853 = vmatprep.subr.msk.bf16.mxu0 %vm2052_vm1, %v2031_v51  ;;  %v1703_v59 = vpop.f32.mrf.mxu1 }
 0x136   : > { %v1663_v58 = vadd.f32 %v1662_v57, %v14028_v16  ;;  %10858 = vmatprep.subr.msk.bf16.mxu1 %vm2052_vm1, %v2033_v52  ;;  %2831 = vmatpush1.bf16.msra.mxu0 %v2811_v54  ;;  %v1704_v60 = vadd.f32 %v1703_v59, %v14028_v16 }
 0x137   : > { %2895 = vmatpush1.bf16.msra.mxu1 %v2875_v55  ;;  %v1664_v61 = vpop.f32.mrf.mxu0  ;;  %v1705_v1 = vpop.f32.mrf.mxu1 }
 0x138   : > { %vm1738_vm2 = vcmp.ge.f32.partialorder %v1663_v58, 0.0  ;;  %v1770_v63 = vmul.f32 0.2, %v1663_v58  ;;  %v1665_v0 = vadd.f32 %v1664_v61, %v14028_v16  ;;  %vm1740_vm3 = vcmp.ge.f32.partialorder %v1704_v60, 0.0 }
 0x139   : > { %v1772_v4 = vmul.f32 0.2, %v1704_v60  ;;  %v1706_v6 = vadd.f32 %v1705_v1, %v14028_v16  ;;  %v1666_v7 = vpop.f32.mrf.mxu0  ;;  %10854 = vmatmul.mubr.msk.bf16.vlgmr.msra.gmra.mxu0 %vm2048_vm6, %v13306_v30  ;;  %v1707_v10 = vpop.f32.mrf.mxu1 }
 0x13a   : > { %v1802_v53 = vsel %vm1738_vm2, %v1663_v58, %v1770_v63  ;;  %vm1739_vm4 = vcmp.ge.f32.partialorder %v1665_v0, 0.0  ;;  %v1771_v15 = vmul.f32 0.2, %v1665_v0  ;;  %10859 = vmatmul.mubr.msk.bf16.vlgmr.msra.gmra.mxu1 %vm2048_vm6, %v13307_v56  ;;  %2976 = vmatprep.mubr.bf16.mxu0 %v13762_v2 }
 0x13b   : > { %v1804_v29 = vsel %vm1740_vm3, %v1704_v60, %v1772_v4  ;;  %vm1741_vm5 = vcmp.ge.f32.partialorder %v1706_v6, 0.0  ;;  %v1773_v17 = vmul.f32 0.2, %v1706_v6  ;;  %v1667_v33 = vpop.f32.mrf.mxu0  ;;  %v2002_v18 = vmul.f32 %v1929_v62, %v1802_v53  ;;  %3040 = vmatprep.mubr.bf16.mxu1 %v13762_v2  ;;  %v1708_v19 = vpop.f32.mrf.mxu1  ;;  %v13309_v2 = vld [vmem:[%s16050_s4 + $0x78] sm:$0xff]  }
 0x13c   : > { %v1803_v16 = vsel %vm1739_vm4, %v1665_v0, %v1771_v15  ;;  %v2004_v20 = vmul.f32 %v1937_v3, %v1804_v29 }
 0x13d   : > { %v2003_v21 = vmul.f32 %v1933_v5, %v1803_v16  ;;  %v1805_v22 = vsel %vm1741_vm5, %v1706_v6, %v1773_v17  ;;  %v2034_v23 = vpack.c.bf16 %v2002_v18, %v2002_v18 }
 0x13e   : > { %v2005_v24 = vmul.f32 %v1941_v8, %v1805_v22  ;;  %v2036_v38 = vpack.c.bf16 %v2004_v20, %v2004_v20 }
 0x13f   : > { %v2035_v9 = vpack.c.bf16 %v2003_v21, %v2003_v21  ;;  %v2939_v27 = vsel %vm2052_vm1, %v2034_v23, 0 }
 0x140   : > { %v2037_v26 = vpack.c.bf16 %v2005_v24, %v2005_v24  ;;  %v3003_v28 = vsel %vm2052_vm1, %v2036_v38, 0 }
 0x141   : > { %10863 = vmatprep.subr.msk.bf16.mxu0 %vm2052_vm1, %v2035_v9 }
 0x142   : > { %10868 = vmatprep.subr.msk.bf16.mxu1 %vm2052_vm1, %v2037_v26  ;;  %2959 = vmatpush1.bf16.msra.mxu0 %v2939_v27 }
 0x143   : > { %3023 = vmatpush1.bf16.msra.mxu1 %v3003_v28 }
 0x145   : > { %10864 = vmatmul.mubr.msk.bf16.vlgmr.msra.gmra.mxu0 %vm2048_vm6, %v13308_v25 }
 0x146   : > { %10869 = vmatmul.mubr.msk.bf16.vlgmr.msra.gmra.mxu1 %vm2048_vm6, %v13309_v2 }
 0x1b1   : > { %v2150_v37 = vpop.f32.mrf.mxu1 }
 0x1b2   : > { %v2093_v31 = vpop.f32.mrf.mxu0 }
 0x1b3   : > { %v2152_v32 = vpop.f32.mrf.mxu1  ;;  %v2151_v57 = vadd.f32 %v2150_v37, %v2093_v31 }
 0x1b4   : > { %v2095_v34 = vpop.f32.mrf.mxu0 }
 0x1b5   : > { %v2154_v36 = vpop.f32.mrf.mxu1  ;;  %v2153_v59 = vadd.f32 %v2152_v32, %v2095_v34 }
 0x1b6   : > { %v2097_v35 = vpop.f32.mrf.mxu0 }
 0x1b7   : > { %v2156_v11 = vpop.f32.mrf.mxu1  ;;  %v2155_v63 = vadd.f32 %v2154_v36, %v2097_v35 }
 0x1b8   : > { %v2099_v39 = vpop.f32.mrf.mxu0 }
 0x1b9   : > { %v2157_v4 = vadd.f32 %v2156_v11, %v2099_v39 }
 0x1bd   : > { %v2210_v40 = vpop.f32.mrf.mxu0 }
 0x1be   : > { %v2274_v41 = vpop.f32.mrf.mxu1  ;;  %v2219_v61 = vadd.f32 %v2210_v40, %v2151_v57 }
 0x1bf   : > { %v2212_v13 = vpop.f32.mrf.mxu0 }
 0x1c0   : > { %v2276_v42 = vpop.f32.mrf.mxu1  ;;  %v2220_v0 = vadd.f32 %v2212_v13, %v2153_v59  ;;  %v2283_v5 = vadd.f32 %v2274_v41, %v2219_v61 }
 0x1c1   : > { %v2214_v12 = vpop.f32.mrf.mxu0 }
 0x1c2   : > { %v2278_v43 = vpop.f32.mrf.mxu1  ;;  %v2221_v53 = vadd.f32 %v2214_v12, %v2155_v63  ;;  %v2284_v15 = vadd.f32 %v2276_v42, %v2220_v0 }
 0x1c3   : > { %v2216_v44 = vpop.f32.mrf.mxu0 }
 0x1c4   : > { %v2280_v45 = vpop.f32.mrf.mxu1  ;;  %v2222_v10 = vadd.f32 %v2216_v44, %v2157_v4  ;;  %v2285_v33 = vadd.f32 %v2278_v43, %v2221_v53 }
 0x1c6   : > { %v2286_v19 = vadd.f32 %v2280_v45, %v2222_v10 }
 0x1c9   : > { %v2338_v46 = vpop.f32.mrf.mxu0 }
 0x1ca   : > { %v2402_v47 = vpop.f32.mrf.mxu1  ;;  %v2347_v29 = vadd.f32 %v2338_v46, %v2283_v5 }
 0x1cb   : > { %v2340_v48 = vpop.f32.mrf.mxu0 }
 0x1cc   : > { %v2404_v49 = vpop.f32.mrf.mxu1  ;;  %v2348_v18 = vadd.f32 %v2340_v48, %v2284_v15  ;;  %v2411_v20 = vadd.f32 %v2402_v47, %v2347_v29 }
 0x1cd   : > { %v2342_v50 = vpop.f32.mrf.mxu0 }
 0x1ce   : > { %v2406_v14 = vpop.f32.mrf.mxu1  ;;  %v2349_v22 = vadd.f32 %v2342_v50, %v2285_v33  ;;  %v2412_v23 = vadd.f32 %v2404_v49, %v2348_v18 }
 0x1cf   : > { %v2344_v51 = vpop.f32.mrf.mxu0 }
 0x1d0   : > { %v2408_v30 = vpop.f32.mrf.mxu1  ;;  %v2350_v9 = vadd.f32 %v2344_v51, %v2286_v19  ;;  %v2413_v28 = vadd.f32 %v2406_v14, %v2349_v22 }
 0x1d2   : > { %v2414_v31 = vadd.f32 %v2408_v30, %v2350_v9 }
 0x1d5   : > { %v2466_v52 = vpop.f32.mrf.mxu0 }
 0x1d6   : > { %v2530_v54 = vpop.f32.mrf.mxu1  ;;  %v2475_v25 = vadd.f32 %v2466_v52, %v2411_v20 }
 0x1d7   : > { %v2468_v55 = vpop.f32.mrf.mxu0 }
 0x1d8   : > { %v2532_v56 = vpop.f32.mrf.mxu1  ;;  %v2476_v2 = vadd.f32 %v2468_v55, %v2412_v23  ;;  %v2539_v32 = vadd.f32 %v2530_v54, %v2475_v25 }
 0x1d9   : > { %v2470_v58 = vpop.f32.mrf.mxu0 }
 0x1da   : > { %v2534_v60 = vpop.f32.mrf.mxu1  ;;  %v2477_v34 = vadd.f32 %v2470_v58, %v2413_v28  ;;  %v2540_v36 = vadd.f32 %v2532_v56, %v2476_v2  ;;  %v3055_v28 = vld [vmem:[%s16051_s5] sm:$0xff]  ;;  %v10871_v2 = vld [vmem:[%s16051_s5 + $0x18] sm:$0xff] }
 0x1db   : > { %v2472_v62 = vpop.f32.mrf.mxu0 }
 0x1dc   : > { %v2536_v1 = vpop.f32.mrf.mxu1  ;;  %v2478_v39 = vadd.f32 %v2472_v62, %v2414_v31  ;;  %v2541_v41 = vadd.f32 %v2534_v60, %v2477_v34 }
 0x1de   : > { %v2542_v12 = vadd.f32 %v2536_v1, %v2478_v39 }
 0x1e1   : > { %v2594_v3 = vpop.f32.mrf.mxu0 }
 0x1e2   : > { %v2658_v6 = vpop.f32.mrf.mxu1  ;;  %v2603_v11 = vadd.f32 %v2594_v3, %v2539_v32 }
 0x1e3   : > { %v2596_v7 = vpop.f32.mrf.mxu0 }
 0x1e4   : > { %v2660_v8 = vpop.f32.mrf.mxu1  ;;  %v2604_v13 = vadd.f32 %v2596_v7, %v2540_v36  ;;  %v2667_v43 = vadd.f32 %v2658_v6, %v2603_v11 }
 0x1e5   : > { %v2598_v17 = vpop.f32.mrf.mxu0 }
 0x1e6   : > { %v2662_v16 = vpop.f32.mrf.mxu1  ;;  %v2605_v44 = vadd.f32 %v2598_v17, %v2541_v41  ;;  %v2668_v47 = vadd.f32 %v2660_v8, %v2604_v13 }
 0x1e7   : > { %v2600_v21 = vpop.f32.mrf.mxu0 }
 0x1e8   : > { %v2664_v24 = vpop.f32.mrf.mxu1  ;;  %v2606_v48 = vadd.f32 %v2600_v21, %v2542_v12  ;;  %v2669_v51 = vadd.f32 %v2662_v16, %v2605_v44 }
 0x1ea   : > { %v2670_v54 = vadd.f32 %v2664_v24, %v2606_v48  ;;  %v13313_v48 = vld [vmem:[%s16052_s6 + $0xb8] sm:$0xff]  }
 0x1ed   : > { %v2722_v38 = vpop.f32.mrf.mxu0 }
 0x1ee   : > { %v2786_v26 = vpop.f32.mrf.mxu1  ;;  %v2731_v49 = vadd.f32 %v2722_v38, %v2667_v43 }
 0x1ef   : > { %v2724_v27 = vpop.f32.mrf.mxu0 }
 0x1f0   : > { %v2788_v37 = vpop.f32.mrf.mxu1  ;;  %v2732_v30 = vadd.f32 %v2724_v27, %v2668_v47  ;;  %v2795_v55 = vadd.f32 %v2786_v26, %v2731_v49  ;;  %v13312_v47 = vld [vmem:[%s16052_s6 + $0x38] sm:$0xff]   ;;  %v13314_v49 = vld [vmem:[%s16052_s6 + $0x70] sm:$0xff]  }
 0x1f1   : > { %v2726_v35 = vpop.f32.mrf.mxu0 }
 0x1f2   : > { %v2790_v40 = vpop.f32.mrf.mxu1  ;;  %v2733_v56 = vadd.f32 %v2726_v35, %v2669_v51  ;;  %v2796_v58 = vadd.f32 %v2788_v37, %v2732_v30  ;;  %v3056_v37 = vld [vmem:[%s16051_s5 + $0x8] sm:$0xff]  ;;  %v13317_v51 = vld [vmem:[%s16052_s6 + $0xb0] sm:$0xff]  }
 0x1f3   : > { %v2728_v42 = vpop.f32.mrf.mxu0  ;;  %v10870_v30 = vld [vmem:[%s16051_s5 + $0x10] sm:$0xff] }
 0x1f4   : > { %v2792_v45 = vpop.f32.mrf.mxu1  ;;  %v2734_v59 = vadd.f32 %v2728_v42, %v2670_v54  ;;  %v2797_v62 = vadd.f32 %v2790_v40, %v2733_v56  ;;  %v13319_v54 = vld [vmem:[%s16052_s6 + $0xe8] sm:$0xff]  }
 0x1f5   : > { %v13321_v56 = vld [vmem:[%s16052_s6 + $0xa8] sm:$0xff]  }
 0x1f6   : > { %v2798_v1 = vadd.f32 %v2792_v45, %v2734_v59  ;;  %v13310_v45 = vld [vmem:[%s16052_s6 + $0x78] sm:$0xff]   ;;  %v13324_v59 = vld [vmem:[%s16052_s6 + $0x20] sm:$0xff]  }
 0x1f7   : > { %12210 = vmatprep.subr.bf16.mxu0 %v13310_v45 }
 0x1f8   : > { %12211 = vmatpush3.bf16.msra.mxu0 %v13312_v47 }
 0x1f9   : > { %v2850_v46 = vpop.f32.mrf.mxu0  ;;  %12212 = vmatprep.subr.bf16.mxu0 %v13314_v49  ;;  %v13343_v49 = vld [vmem:[%s16053_s7] sm:$0xff]  }
 0x1fa   : > { %v2914_v50 = vpop.f32.mrf.mxu1  ;;  %v2859_v60 = vadd.f32 %v2850_v46, %v2795_v55  ;;  %v13311_v46 = vld [vmem:[%s16052_s6 + $0xf8] sm:$0xff]   ;;  %v13320_v55 = vld [vmem:[%s16052_s6 + $0x28] sm:$0xff]  }
 0x1fb   : > { %v2852_v14 = vpop.f32.mrf.mxu0  ;;  %12232 = vmatprep.subr.bf16.mxu1 %v13311_v46 }
 0x1fc   : > { %v2916_v52 = vpop.f32.mrf.mxu1  ;;  %v2860_v63 = vadd.f32 %v2852_v14, %v2796_v58  ;;  %v2923_v3 = vadd.f32 %v2914_v50, %v2859_v60  ;;  %12233 = vmatpush3.bf16.msra.mxu1 %v13313_v48  ;;  %v13315_v50 = vld [vmem:[%s16052_s6 + $0xf0] sm:$0xff]   ;;  %v13323_v58 = vld [vmem:[%s16052_s6 + $0xe0] sm:$0xff]  }
 0x1fd   : > { %v2854_v57 = vpop.f32.mrf.mxu0  ;;  %v13316_v14 = vld [vmem:[%s16052_s6 + $0x30] sm:$0xff]   ;;  %12234 = vmatprep.subr.bf16.mxu1 %v13315_v50  ;;  %v13325_v60 = vld [vmem:[%s16052_s6 + $0xa0] sm:$0xff]  }
 0x1fe   : > { %v2918_v61 = vpop.f32.mrf.mxu1  ;;  %v2861_v4 = vadd.f32 %v2854_v57, %v2797_v62  ;;  %v2924_v7 = vadd.f32 %v2916_v52, %v2860_v63  ;;  %12213 = vmatpush3.bf16.msra.mxu0 %v13316_v14  ;;  %v13318_v52 = vld [vmem:[%s16052_s6 + $0x68] sm:$0xff]   ;;  %v13322_v57 = vld [vmem:[%s16052_s6 + $0x60] sm:$0xff]   ;;  %v13327_v62 = vld [vmem:[%s16052_s6 + $0xd8] sm:$0xff]  }
 0x1ff   : > { %v2856_v0 = vpop.f32.mrf.mxu0  ;;  %12214 = vmatprep.subr.bf16.mxu0 %v13318_v52  ;;  %v13328_v63 = vld [vmem:[%s16052_s6 + $0x18] sm:$0xff]   ;;  %v13342_v48 = vld [vmem:[%s16053_s7 + $0x10] sm:$0xff]  }
 0x200   : > { %v2920_v5 = vpop.f32.mrf.mxu1  ;;  %v2862_v53 = vadd.f32 %v2856_v0, %v2798_v1  ;;  %v2925_v29 = vadd.f32 %v2918_v61, %v2861_v4  ;;  %12235 = vmatpush3.bf16.msra.mxu1 %v13317_v51  ;;  %v13326_v61 = vld [vmem:[%s16052_s6 + $0x58] sm:$0xff]   ;;  %v13330_v1 = vld [vmem:[%s16052_s6 + $0x50] sm:$0xff]  }
 0x201   : > { %12236 = vmatprep.subr.bf16.mxu1 %v13319_v54  ;;  %v13329_v0 = vld [vmem:[%s16052_s6 + $0x98] sm:$0xff]   ;;  %v13332_v4 = vld [vmem:[%s16052_s6 + $0x10] sm:$0xff]  }
 0x202   : > { %v2926_v16 = vadd.f32 %v2920_v5, %v2862_v53  ;;  %12215 = vmatpush3.bf16.msra.mxu0 %v13320_v55  ;;  %v13333_v5 = vld [vmem:[%s16052_s6 + $0x90] sm:$0xff]   ;;  %v13336_v53 = vld [vmem:[%s16052_s6 + $0x8] sm:$0xff]  }
 0x203   : > { %12216 = vmatprep.subr.bf16.mxu0 %v13322_v57 }
 0x204   : > { %12237 = vmatpush3.bf16.msra.mxu1 %v13321_v56 }
 0x205   : > { %v2978_v6 = vpop.f32.mrf.mxu0  ;;  %12238 = vmatprep.subr.bf16.mxu1 %v13323_v58 }
 0x206   : > { %v2987_v15 = vadd.f32 %v2978_v6, %v2923_v3  ;;  %v3042_v8 = vpop.f32.mrf.mxu1  ;;  %12217 = vmatpush3.bf16.msra.mxu0 %v13324_v59  ;;  %v13331_v3 = vld [vmem:[%s16052_s6 + $0xd0] sm:$0xff]   ;;  %v13334_v6 = vld [vmem:[%s16052_s6 + $0x48] sm:$0xff]  }
 0x207   : > { %v2980_v10 = vpop.f32.mrf.mxu0  ;;  %12218 = vmatprep.subr.bf16.mxu0 %v13326_v61 }
 0x208   : > { %v2988_v17 = vadd.f32 %v2980_v10, %v2924_v7  ;;  %v3044_v33 = vpop.f32.mrf.mxu1  ;;  %v3051_v19 = vadd.f32 %v3042_v8, %v2987_v15  ;;  %12239 = vmatpush3.bf16.msra.mxu1 %v13325_v60  ;;  %v13335_v7 = vld [vmem:[%s16052_s6 + $0xc8] sm:$0xff]   ;;  %v13338_v8 = vld [vmem:[%s16052_s6 + $0x40] sm:$0xff]  }
 0x209   : > { %v2982_v18 = vpop.f32.mrf.mxu0  ;;  %12240 = vmatprep.subr.bf16.mxu1 %v13327_v62  ;;  %v13337_v15 = vld [vmem:[%s16052_s6 + $0x88] sm:$0xff]   ;;  %v13339_v10 = vld [vmem:[%s16052_s6 + $0xc0] sm:$0xff]  }
 0x20a   : > { %v3052_v20 = vadd.f32 %v3044_v33, %v2988_v17  ;;  %v2989_v21 = vadd.f32 %v2982_v18, %v2925_v29  ;;  %v3046_v22 = vpop.f32.mrf.mxu1  ;;  %12219 = vmatpush3.bf16.msra.mxu0 %v13328_v63  ;;  %v13340_v29 = vld [vmem:[%s16052_s6] sm:$0xff]   ;;  %v13346_v63 = vld [vmem:[%s16052_s6 + $0x178] sm:$0xff]  }
 0x20b   : > { %v2984_v23 = vpop.f32.mrf.mxu0  ;;  %12220 = vmatprep.subr.bf16.mxu0 %v13330_v1  ;;  %v13341_v17 = vld [vmem:[%s16052_s6 + $0x80] sm:$0xff]   ;;  %v13345_v1 = vld [vmem:[%s16053_s7 + $0x8] sm:$0xff]  }
 0x20c   : > { %v2990_v24 = vadd.f32 %v2984_v23, %v2926_v16  ;;  %v3060_v38 = vadd.f32 %v3052_v20, %v3051_v19  ;;  %v3048_v9 = vpop.f32.mrf.mxu1  ;;  %v3053_v25 = vadd.f32 %v3046_v22, %v2989_v21  ;;  %12241 = vmatpush3.bf16.msra.mxu1 %v13329_v0  ;;  %v13344_v0 = vld [vmem:[%s16053_s7 + $0x18] sm:$0xff]  }
 0x20d   : > { %12242 = vmatprep.subr.bf16.mxu1 %v13331_v3  ;;  %v13347_v3 = vld [vmem:[%s16052_s6 + $0x138] sm:$0xff]  }
 0x20e   : > { %v3054_v26 = vadd.f32 %v3048_v9, %v2990_v24  ;;  %3061 = vadd.xlane.f32.xlu0 %v3060_v38  ;;  %12221 = vmatpush3.bf16.msra.mxu0 %v13332_v4  ;;  %v13348_v4 = vld [vmem:[%s16052_s6 + $0x170] sm:$0xff]  }
 0x20f   : > { %12222 = vmatprep.subr.bf16.mxu0 %v13334_v6  ;;  %v13350_v6 = vld [vmem:[%s16052_s6 + $0x168] sm:$0xff]  }
 0x210   : > { %v3063_v27 = vadd.f32 %v3054_v26, %v3053_v25  ;;  %12243 = vmatpush3.bf16.msra.mxu1 %v13333_v5  ;;  %v13349_v5 = vld [vmem:[%s16052_s6 + $0x130] sm:$0xff]  }
 0x211   : > { %12244 = vmatprep.subr.bf16.mxu1 %v13335_v7  ;;  %v13351_v7 = vld [vmem:[%s16052_s6 + $0x128] sm:$0xff]  }
 0x212   : > { %3064 = vadd.xlane.f32.xlu1 %v3063_v27  ;;  %12223 = vmatpush3.bf16.msra.mxu0 %v13336_v53  ;;  %v13352_v53 = vld [vmem:[%s16052_s6 + $0x160] sm:$0xff]  }
 0x213   : > { %12224 = vmatprep.subr.bf16.mxu0 %v13338_v8  ;;  %v13354_v8 = vld [vmem:[%s16052_s6 + $0x158] sm:$0xff]  }
 0x214   : > { %12245 = vmatpush3.bf16.msra.mxu1 %v13337_v15  ;;  %v13353_v15 = vld [vmem:[%s16052_s6 + $0x120] sm:$0xff]  }
 0x215   : > { %12246 = vmatprep.subr.bf16.mxu1 %v13339_v10  ;;  %v13355_v10 = vld [vmem:[%s16052_s6 + $0x118] sm:$0xff]  }
 0x216   : > { %12225 = vmatpush3.bf16.msra.mxu0 %v13340_v29  ;;  %v13356_v29 = vld [vmem:[%s16052_s6 + $0x150] sm:$0xff]  }
 0x218   : > { %12247 = vmatpush3.bf16.msra.mxu1 %v13341_v17  ;;  %v13357_v17 = vld [vmem:[%s16052_s6 + $0x110] sm:$0xff]  }
 0x223   : > { %3095 = vperm.xlu1 %13293, %v3055_v28  }
 0x224   : > { %3114 = vperm.xlu0 %13292, %v10871_v2  }
 0x227   : > { %3100 = vperm.xlu1 %13293, %v3056_v37  }
 0x297   : > { %v3062_v31 = vpop.xlane.xlu0 %3061 }
 0x298   : > { %v3067_v32 = vmul.f32 0.00390625, %v3062_v31 }
 0x29a   : > { %v14266_v34 = vsub.f32 %v3051_v19, %v3067_v32  ;;  %v14268_v35 = vsub.f32 %v3052_v20, %v3067_v32 }
 0x29b   : > { %v3065_v36 = vpop.xlane.xlu1 %3064 }
 0x29c   : > { %v3068_v39 = vmul.f32 0.00390625, %v3065_v36  ;;  %v3073_v11 = vmul.f32 %v14266_v34, %v14266_v34  ;;  %v3074_v40 = vmul.f32 %v14268_v35, %v14268_v35 }
 0x29e   : > { %v14274_v41 = vsub.f32 %v3053_v25, %v3068_v39  ;;  %v14276_v13 = vsub.f32 %v3054_v26, %v3068_v39  ;;  %v3077_v42 = vadd.f32 %v3074_v40, %v3073_v11 }
 0x29f   : > { %v3096_v33 = vpop.permute.xlu1 %3095  ;;  %v3115_v11 = vpop.permute.xlu0 %3114 }
 0x2a0   : > { %3078 = vadd.xlane.f32.xlu1 %v3077_v42  ;;  %v3075_v12 = vmul.f32 %v14274_v41, %v14274_v41  ;;  %v3076_v43 = vmul.f32 %v14276_v13, %v14276_v13 }
 0x2a2   : > { %v3080_v44 = vadd.f32 %v3076_v43, %v3075_v12 }
 0x2a3   : > { %v3101_v18 = vpop.permute.xlu1 %3100 }
 0x2a4   : > { %3081 = vadd.xlane.f32.xlu1 %v3080_v44 }
 0x2b5   : > { %3109 = vperm.xlu1 %13293, %v10870_v30  }
 0x329   : > { %v3079_v16 = vpop.xlane.xlu1 %3078 }
 0x32a   : > { %v3083_v19 = vmul.f32 0.00390625, %v3079_v16  ;;  %v13360_v16 = vld [vmem:[%s16052_s6 + $0x140] sm:$0xff]  }
 0x32c   : > { %v3085_v20 = vadd.f32 1e-05, %v3083_v19  ;;  %v13361_v19 = vld [vmem:[%s16052_s6 + $0x100] sm:$0xff]  }
 0x32d   : > { %v3082_v21 = vpop.xlane.xlu1 %3081 }
 0x32e   : > { %13726 = vrsqrt.f32 %v3085_v20  ;;  %v3084_v22 = vmul.f32 0.00390625, %v3082_v21  ;;  %v13362_v20 = vld [vmem:[%s16053_s7 + $0x20] sm:$0xff]  }
 0x330   : > { %v3086_v23 = vadd.f32 1e-05, %v3084_v22 }
 0x331   : > { %v3110_v28 = vpop.permute.xlu1 %3109 }
 0x332   : > { %13728 = vrsqrt.f32 %v3086_v23 }
 0x33b   : > { %v13727_v24 = vpop.eup %13726 }
 0x33c   : > { %v3089_v38 = vmul.f32 %v13727_v24, %v14266_v34  ;;  %v3090_v9 = vmul.f32 %v13727_v24, %v14268_v35 }
 0x33e   : > { %v3103_v25 = vmul.f32 %v3096_v33, %v3089_v38  ;;  %v3104_v26 = vmul.f32 %v3096_v33, %v3090_v9  ;;  %v13358_v33 = vld [vmem:[%s16052_s6 + $0x148] sm:$0xff]  }
 0x33f   : > { %v13729_v27 = vpop.eup %13728 }
 0x340   : > { %v3091_v2 = vmul.f32 %v13729_v27, %v14274_v41  ;;  %v3092_v37 = vmul.f32 %v13729_v27, %v14276_v13  ;;  %v3117_v31 = vadd.f32 %v3110_v28, %v3103_v25  ;;  %v3118_v32 = vadd.f32 %v3110_v28, %v3104_v26 }
 0x342   : > { %v3105_v36 = vmul.f32 %v3101_v18, %v3091_v2  ;;  %v3106_v39 = vmul.f32 %v3101_v18, %v3092_v37  ;;  %v3125_v12 = vmul.f32 0.2, %v3117_v31  ;;  %v3126_v43 = vmul.f32 0.2, %v3118_v32  ;;  %v13359_v18 = vld [vmem:[%s16052_s6 + $0x108] sm:$0xff]  }
 0x343   : > { %vm3121_vm1 = vcmp.ge.f32.partialorder %v3117_v31, 0.0  ;;  %vm3122_vm6 = vcmp.ge.f32.partialorder %v3118_v32, 0.0 }
 0x344   : > { %v3119_v40 = vadd.f32 %v3115_v11, %v3105_v36  ;;  %v3120_v42 = vadd.f32 %v3115_v11, %v3106_v39  ;;  %v3129_v44 = vsel %vm3121_vm1, %v3117_v31, %v3125_v12  ;;  %v3130_v45 = vsel %vm3122_vm6, %v3118_v32, %v3126_v43  ;;  %v13365_v12 = vld [vmem:[%s16052_s6 + $0x1b8] sm:$0xff]   ;;  %v13366_v43 = vld [vmem:[%s16052_s6 + $0x1f0] sm:$0xff]  }
 0x346   : > { %vm3123_vm7 = vcmp.ge.f32.partialorder %v3119_v40, 0.0  ;;  %vm3124_vm8 = vcmp.ge.f32.partialorder %v3120_v42, 0.0  ;;  %v3127_v34 = vmul.f32 0.2, %v3119_v40  ;;  %v3128_v35 = vmul.f32 0.2, %v3120_v42 }
 0x348   : > { %v3131_v41 = vsel %vm3123_vm7, %v3119_v40, %v3127_v34  ;;  %v3132_v46 = vsel %vm3124_vm8, %v3120_v42, %v3128_v35  ;;  %v13364_v40 = vld [vmem:[%s16052_s6 + $0x1f8] sm:$0xff]   ;;  %v13363_v42 = vld [vmem:[%s16053_s7 + $0x28] sm:$0xff]   ;;  %v13367_v34 = vld [vmem:[%s16052_s6 + $0x1b0] sm:$0xff]   ;;  %vm10625_vm8 = vcmask 0  }
 0x349   : > { %v14385_v13 = vpack.c.bf16 %v3131_v41, %v3129_v44  ;;  %v14387_v47 = vpack.c.bf16 %v3132_v46, %v3130_v45  ;;  %v13368_v35 = vld [vmem:[%s16052_s6 + $0x1e8] sm:$0xff]   ;;  %v13370_v45 = vld [vmem:[%s16052_s6 + $0x1e0] sm:$0xff]   ;;  %v13372_v46 = vld [vmem:[%s16052_s6 + $0x1d8] sm:$0xff]  }
 0x34a   : > { %v13369_v44 = vld [vmem:[%s16052_s6 + $0x1a8] sm:$0xff]   ;;  %v13371_v41 = vld [vmem:[%s16052_s6 + $0x1a0] sm:$0xff]  }
 0x34b   : > { %3295 = vmatprep.mubr.bf16.mxu0 %v14387_v47  ;;  %3470 = vmatprep.mubr.bf16.mxu1 %v14387_v47 }
 0x34c   : > { %3296 = vmatmul.mubr.bf16.vlgmr.msra.gmra.mxu0 %v14385_v13  ;;  %3471 = vmatmul.mubr.bf16.vlgmr.msra.gmra.mxu1 %v14385_v13 }
 0x34d   : > { %12804 = vmatprep.mubr.msk.bf16.mxu0 %vm3495_vm9, %v13342_v48  ;;  %12810 = vmatprep.mubr.msk.bf16.mxu1 %vm3495_vm9, %v13343_v49  ;;  %v13373_v48 = vld [vmem:[%s16052_s6 + $0x198] sm:$0xff]   ;;  %v13374_v49 = vld [vmem:[%s16052_s6 + $0x1d0] sm:$0xff]  }
 0x40c   : > { %v12226_v50 = vpop.f32.mrf.mxu0  ;;  %v12248_v14 = vpop.f32.mrf.mxu1 }
 0x40e   : > { %v12227_v51 = vpop.f32.mrf.mxu0  ;;  %v12249_v30 = vpop.f32.mrf.mxu1 }
 0x40f   : > { %v12228_v57 = vadd.f32 %v12227_v51, %v12226_v50  ;;  %v12250_v58 = vadd.f32 %v12249_v30, %v12248_v14  ;;  %v13375_v50 = vld [vmem:[%s16052_s6 + $0x190] sm:$0xff]   ;;  %v13376_v14 = vld [vmem:[%s16052_s6 + $0x1c8] sm:$0xff]   ;;  %v13378_v30 = vld [vmem:[%s16052_s6 + $0x1c0] sm:$0xff]  }
 0x410   : > { %v12229_v52 = vpop.f32.mrf.mxu0  ;;  %v12251_v54 = vpop.f32.mrf.mxu1  ;;  %v13377_v51 = vld [vmem:[%s16052_s6 + $0x188] sm:$0xff]  }
 0x412   : > { %v12230_v55 = vpop.f32.mrf.mxu0  ;;  %v12252_v56 = vpop.f32.mrf.mxu1 }
 0x413   : > { %v12231_v59 = vadd.f32 %v12230_v55, %v12229_v52  ;;  %v12253_v60 = vadd.f32 %v12252_v56, %v12251_v54  ;;  %v13379_v52 = vld [vmem:[%s16052_s6 + $0x180] sm:$0xff]   ;;  %v13380_v54 = vld [vmem:[%s16053_s7 + $0x30] sm:$0xff]  }
 0x415   : > { %v3304_v61 = vpack.c.bf16 %v12231_v59, %v12228_v57  ;;  %v3479_v62 = vpack.c.bf16 %v12253_v60, %v12250_v58 }
 0x417   : > { %12802 = vmatprep.subr.bf16.mxu0 %v3479_v62  ;;  %12808 = vmatprep.subr.bf16.mxu1 %v3304_v61 }
 0x418   : > { %12803 = vmatpush3.bf16.msra.mxu0 %v3479_v62  ;;  %12809 = vmatpush3.bf16.msra.mxu1 %v3304_v61 }
 0x419   : > { %12260 = vmatprep.subr.bf16.mxu0 %v13346_v63 }
 0x41b   : > { %12805 = vmatmul.mubr.msk.bf16.vlgmr.msra.gmra.mxu0 %vm3495_vm9, %v13344_v0  ;;  %12811 = vmatmul.mubr.msk.bf16.vlgmr.msra.gmra.mxu1 %vm3495_vm9, %v13345_v1 }
 0x41c   : > { %12261 = vmatpush3.bf16.msra.mxu0 %v13347_v3  ;;  %3777 = vmatprep.mubr.bf16.mxu0 %v14387_v47 }
 0x41d   : > { %12262 = vmatprep.subr.bf16.mxu0 %v13348_v4  ;;  %12816 = vmatprep.mubr.msk.bf16.mxu1 %vm3495_vm9, %v13362_v20  ;;  %v13392_v20 = vld [vmem:[%s16052_s6 + $0x250] sm:$0xff]  }
 0x420   : > { %12263 = vmatpush3.bf16.msra.mxu0 %v13349_v5 }
 0x421   : > { %12264 = vmatprep.subr.bf16.mxu0 %v13350_v6 }
 0x424   : > { %12265 = vmatpush3.bf16.msra.mxu0 %v13351_v7  ;;  %v13382_v7 = vld [vmem:[%s16052_s6 + $0x278] sm:$0xff]  }
 0x425   : > { %12266 = vmatprep.subr.bf16.mxu0 %v13352_v53  ;;  %v13381_v53 = vld [vmem:[%s16053_s7 + $0x38] sm:$0xff]  }
 0x428   : > { %12267 = vmatpush3.bf16.msra.mxu0 %v13353_v15  ;;  %v13383_v15 = vld [vmem:[%s16052_s6 + $0x238] sm:$0xff]  }
 0x429   : > { %12268 = vmatprep.subr.bf16.mxu0 %v13354_v8  ;;  %v13384_v8 = vld [vmem:[%s16052_s6 + $0x270] sm:$0xff]  }
 0x42c   : > { %12269 = vmatpush3.bf16.msra.mxu0 %v13355_v10  ;;  %v13385_v10 = vld [vmem:[%s16052_s6 + $0x230] sm:$0xff]  }
 0x42d   : > { %12270 = vmatprep.subr.bf16.mxu0 %v13356_v29  ;;  %v13386_v29 = vld [vmem:[%s16052_s6 + $0x268] sm:$0xff]  }
 0x430   : > { %12271 = vmatpush3.bf16.msra.mxu0 %v13357_v17  ;;  %v13387_v17 = vld [vmem:[%s16052_s6 + $0x228] sm:$0xff]  }
 0x431   : > { %12272 = vmatprep.subr.bf16.mxu0 %v13358_v33  ;;  %v13388_v33 = vld [vmem:[%s16052_s6 + $0x260] sm:$0xff]  }
 0x434   : > { %12273 = vmatpush3.bf16.msra.mxu0 %v13359_v18  ;;  %v13389_v18 = vld [vmem:[%s16052_s6 + $0x220] sm:$0xff]  }
 0x435   : > { %12274 = vmatprep.subr.bf16.mxu0 %v13360_v16  ;;  %v13390_v16 = vld [vmem:[%s16052_s6 + $0x258] sm:$0xff]  }
 0x438   : > { %12275 = vmatpush3.bf16.msra.mxu0 %v13361_v19  ;;  %v13391_v19 = vld [vmem:[%s16052_s6 + $0x218] sm:$0xff]  }
 0x43b   : > { %3778 = vmatmul.mubr.bf16.vlgmr.msra.gmra.mxu0 %v14385_v13 }
 0x43c   : > { %12822 = vmatprep.mubr.msk.bf16.mxu0 %vm3495_vm9, %v13380_v54  ;;  %v13412_v54 = vld [vmem:[%s16052_s6 + $0x2c8] sm:$0xff]  }
 0x4db   : > { %v12806_v21 = vpop.f32.mrf.mxu0  ;;  %v12812_v22 = vpop.f32.mrf.mxu1 }
 0x4dc   : > { %v3610_v23 = vadd.f32 %v12812_v22, %v12806_v21  ;;  %v13393_v21 = vld [vmem:[%s16052_s6 + $0x210] sm:$0xff]   ;;  %v13394_v22 = vld [vmem:[%s16052_s6 + $0x248] sm:$0xff]  }
 0x4dd   : > { %v3536_v24 = vpop.f32.mrf.mxu0  ;;  %v3601_v38 = vpop.f32.mrf.mxu1 }
 0x4de   : > { %v3602_v9 = vadd.f32 %v3601_v38, %v3536_v24  ;;  %v13396_v24 = vld [vmem:[%s16052_s6 + $0x240] sm:$0xff]  }
 0x4df   : > { %v12807_v25 = vpop.f32.mrf.mxu0  ;;  %v12813_v26 = vpop.f32.mrf.mxu1  ;;  %v13397_v38 = vld [vmem:[%s16052_s6 + $0x200] sm:$0xff]  }
 0x4e0   : > { %v3613_v27 = vadd.f32 %v12813_v26, %v12807_v25 }
 0x4e1   : > { %v14463_v28 = vpop.f32.mrf.mxu0  ;;  %v14523_v55 = vpop.f32.mrf.mxu1 }
 0x4fb   : > { %v12276_v2 = vpop.f32.mrf.mxu0 }
 0x4fd   : > { %v12277_v37 = vpop.f32.mrf.mxu0 }
 0x4fe   : > { %v12278_v36 = vadd.f32 %v12277_v37, %v12276_v2 }
 0x4ff   : > { %v12279_v31 = vpop.f32.mrf.mxu0 }
 0x501   : > { %v12280_v32 = vpop.f32.mrf.mxu0 }
 0x502   : > { %v12281_v39 = vadd.f32 %v12280_v32, %v12279_v31 }
 0x504   : > { %v3786_v11 = vpack.c.bf16 %v12281_v39, %v12278_v36 }
 0x506   : > { %12814 = vmatprep.subr.bf16.mxu1 %v3786_v11 }
 0x507   : > { %12815 = vmatpush3.bf16.msra.mxu1 %v3786_v11 }
 0x508   : > { %12285 = vmatprep.subr.bf16.mxu1 %v13364_v40 }
 0x50a   : > { %12817 = vmatmul.mubr.msk.bf16.vlgmr.msra.gmra.mxu1 %vm3495_vm9, %v13363_v42 }
 0x50b   : > { %12286 = vmatpush3.bf16.msra.mxu1 %v13365_v12  ;;  %4022 = vmatprep.mubr.bf16.mxu1 %v14387_v47 }
 0x50c   : > { %12287 = vmatprep.subr.bf16.mxu1 %v13366_v43 }
 0x50f   : > { %12288 = vmatpush3.bf16.msra.mxu1 %v13367_v34  ;;  %v13400_v34 = vld [vmem:[%s16052_s6 + $0x2f8] sm:$0xff]  }
 0x510   : > { %12289 = vmatprep.subr.bf16.mxu1 %v13368_v35  ;;  %v13399_v35 = vld [vmem:[%s16053_s7 + $0x48] sm:$0xff]  }
 0x513   : > { %12290 = vmatpush3.bf16.msra.mxu1 %v13369_v44  ;;  %v13401_v44 = vld [vmem:[%s16052_s6 + $0x2b8] sm:$0xff]  }
 0x514   : > { %12291 = vmatprep.subr.bf16.mxu1 %v13370_v45  ;;  %v13402_v45 = vld [vmem:[%s16052_s6 + $0x2f0] sm:$0xff]  }
 0x517   : > { %12292 = vmatpush3.bf16.msra.mxu1 %v13371_v41  ;;  %v13403_v41 = vld [vmem:[%s16052_s6 + $0x2b0] sm:$0xff]  }
 0x518   : > { %12293 = vmatprep.subr.bf16.mxu1 %v13372_v46  ;;  %v13404_v46 = vld [vmem:[%s16052_s6 + $0x2e8] sm:$0xff]  }
 0x51b   : > { %12294 = vmatpush3.bf16.msra.mxu1 %v13373_v48  ;;  %v13405_v48 = vld [vmem:[%s16052_s6 + $0x2a8] sm:$0xff]  }
 0x51c   : > { %12295 = vmatprep.subr.bf16.mxu1 %v13374_v49  ;;  %v13406_v49 = vld [vmem:[%s16052_s6 + $0x2e0] sm:$0xff]  }
 0x51f   : > { %12296 = vmatpush3.bf16.msra.mxu1 %v13375_v50  ;;  %v13407_v50 = vld [vmem:[%s16052_s6 + $0x2a0] sm:$0xff]  }
 0x520   : > { %12297 = vmatprep.subr.bf16.mxu1 %v13376_v14  ;;  %v13408_v14 = vld [vmem:[%s16052_s6 + $0x2d8] sm:$0xff]  }
 0x523   : > { %12298 = vmatpush3.bf16.msra.mxu1 %v13377_v51  ;;  %v13409_v51 = vld [vmem:[%s16052_s6 + $0x298] sm:$0xff]  }
 0x524   : > { %12299 = vmatprep.subr.bf16.mxu1 %v13378_v30  ;;  %v13410_v30 = vld [vmem:[%s16052_s6 + $0x2d0] sm:$0xff]  }
 0x527   : > { %12300 = vmatpush3.bf16.msra.mxu1 %v13379_v52  ;;  %v13411_v52 = vld [vmem:[%s16052_s6 + $0x290] sm:$0xff]  }
 0x52a   : > { %4023 = vmatmul.mubr.bf16.vlgmr.msra.gmra.mxu1 %v14385_v13 }
 0x5ca   : > { %v12818_v56 = vpop.f32.mrf.mxu1 }
 0x5cb   : > { %v3859_v57 = vadd.f32 %v12818_v56, %v3610_v23  ;;  %v13395_v23 = vld [vmem:[%s16052_s6 + $0x208] sm:$0xff]  }
 0x5cc   : > { %v3842_v58 = vpop.f32.mrf.mxu1  ;;  %v13413_v56 = vld [vmem:[%s16052_s6 + $0x288] sm:$0xff]  }
 0x5cd   : > { %v3857_v59 = vadd.f32 %v3842_v58, %v3602_v9  ;;  %v13398_v9 = vld [vmem:[%s16053_s7 + $0x40] sm:$0xff]  }
 0x5ce   : > { %v12819_v60 = vpop.f32.mrf.mxu1  ;;  %12828 = vmatprep.mubr.msk.bf16.mxu1 %vm3495_vm9, %v13398_v9  ;;  %v13415_v58 = vld [vmem:[%s16052_s6 + $0x280] sm:$0xff]   ;;  %v13429_v9 = vld [vmem:[%s16052_s6 + $0x310] sm:$0xff]  }
 0x5cf   : > { %v3860_v61 = vadd.f32 %v12819_v60, %v3613_v27 }
 0x5d0   : > { %v14525_v62 = vpop.f32.mrf.mxu1 }
 0x5ea   : > { %v12301_v63 = vpop.f32.mrf.mxu1 }
 0x5ec   : > { %v12302_v0 = vpop.f32.mrf.mxu1 }
 0x5ed   : > { %v12303_v4 = vadd.f32 %v12302_v0, %v12301_v63 }
 0x5ee   : > { %v12304_v1 = vpop.f32.mrf.mxu1 }
 0x5f0   : > { %v12305_v3 = vpop.f32.mrf.mxu1 }
 0x5f1   : > { %v12306_v5 = vadd.f32 %v12305_v3, %v12304_v1 }
 0x5f3   : > { %v4031_v6 = vpack.c.bf16 %v12306_v5, %v12303_v4 }
 0x5f5   : > { %12820 = vmatprep.subr.bf16.mxu0 %v4031_v6 }
 0x5f6   : > { %12821 = vmatpush3.bf16.msra.mxu0 %v4031_v6 }
 0x5f7   : > { %12310 = vmatprep.subr.bf16.mxu0 %v13382_v7 }
 0x5f9   : > { %12823 = vmatmul.mubr.msk.bf16.vlgmr.msra.gmra.mxu0 %vm3495_vm9, %v13381_v53 }
 0x5fa   : > { %12311 = vmatpush3.bf16.msra.mxu0 %v13383_v15  ;;  %4267 = vmatprep.mubr.bf16.mxu0 %v14387_v47 }
 0x5fb   : > { %12312 = vmatprep.subr.bf16.mxu0 %v13384_v8 }
 0x5fe   : > { %12313 = vmatpush3.bf16.msra.mxu0 %v13385_v10 }
 0x5ff   : > { %12314 = vmatprep.subr.bf16.mxu0 %v13386_v29  ;;  %v13418_v29 = vld [vmem:[%s16052_s6 + $0x378] sm:$0xff]  }
 0x602   : > { %12315 = vmatpush3.bf16.msra.mxu0 %v13387_v17  ;;  %v13417_v17 = vld [vmem:[%s16053_s7 + $0x58] sm:$0xff]  }
 0x603   : > { %12316 = vmatprep.subr.bf16.mxu0 %v13388_v33  ;;  %v13419_v33 = vld [vmem:[%s16052_s6 + $0x338] sm:$0xff]  }
 0x606   : > { %12317 = vmatpush3.bf16.msra.mxu0 %v13389_v18  ;;  %v13420_v18 = vld [vmem:[%s16052_s6 + $0x370] sm:$0xff]  }
 0x607   : > { %12318 = vmatprep.subr.bf16.mxu0 %v13390_v16  ;;  %v13421_v16 = vld [vmem:[%s16052_s6 + $0x330] sm:$0xff]  }
 0x60a   : > { %12319 = vmatpush3.bf16.msra.mxu0 %v13391_v19  ;;  %v13422_v19 = vld [vmem:[%s16052_s6 + $0x368] sm:$0xff]  }
 0x60b   : > { %12320 = vmatprep.subr.bf16.mxu0 %v13392_v20  ;;  %v13423_v20 = vld [vmem:[%s16052_s6 + $0x328] sm:$0xff]  }
 0x60e   : > { %12321 = vmatpush3.bf16.msra.mxu0 %v13393_v21  ;;  %v13424_v21 = vld [vmem:[%s16052_s6 + $0x360] sm:$0xff]  }
 0x60f   : > { %12322 = vmatprep.subr.bf16.mxu0 %v13394_v22  ;;  %v13425_v22 = vld [vmem:[%s16052_s6 + $0x320] sm:$0xff]  }
 0x612   : > { %12323 = vmatpush3.bf16.msra.mxu0 %v13395_v23  ;;  %v13426_v23 = vld [vmem:[%s16052_s6 + $0x358] sm:$0xff]  }
 0x613   : > { %12324 = vmatprep.subr.bf16.mxu0 %v13396_v24  ;;  %v13427_v24 = vld [vmem:[%s16052_s6 + $0x318] sm:$0xff]  }
 0x616   : > { %12325 = vmatpush3.bf16.msra.mxu0 %v13397_v38  ;;  %v13428_v38 = vld [vmem:[%s16052_s6 + $0x350] sm:$0xff]  }
 0x619   : > { %4268 = vmatmul.mubr.bf16.vlgmr.msra.gmra.mxu0 %v14385_v13 }
 0x6b9   : > { %v12824_v25 = vpop.f32.mrf.mxu0 }
 0x6ba   : > { %v4104_v26 = vadd.f32 %v12824_v25, %v3859_v57  ;;  %v13414_v57 = vld [vmem:[%s16052_s6 + $0x2c0] sm:$0xff]   ;;  %v13430_v25 = vld [vmem:[%s16052_s6 + $0x348] sm:$0xff]  }
 0x6bb   : > { %v4087_v27 = vpop.f32.mrf.mxu0 }
 0x6bc   : > { %v4102_v2 = vadd.f32 %v4087_v27, %v3857_v59  ;;  %v13416_v59 = vld [vmem:[%s16053_s7 + $0x50] sm:$0xff]   ;;  %v13432_v27 = vld [vmem:[%s16052_s6 + $0x340] sm:$0xff]  }
 0x6bd   : > { %v12825_v37 = vpop.f32.mrf.mxu0  ;;  %12834 = vmatprep.mubr.msk.bf16.mxu0 %vm3495_vm9, %v13416_v59  ;;  %v13446_v59 = vld [vmem:[%s16052_s6 + $0x3d0] sm:$0xff]  }
 0x6be   : > { %v4105_v31 = vadd.f32 %v12825_v37, %v3860_v61  ;;  %v13434_v37 = vld [vmem:[%s16053_s7 + $0x60] sm:$0xff]  }
 0x6bf   : > { %v14585_v32 = vpop.f32.mrf.mxu0 }
 0x6d9   : > { %v12326_v36 = vpop.f32.mrf.mxu0 }
 0x6db   : > { %v12327_v39 = vpop.f32.mrf.mxu0 }
 0x6dc   : > { %v12328_v42 = vadd.f32 %v12327_v39, %v12326_v36 }
 0x6dd   : > { %v12329_v11 = vpop.f32.mrf.mxu0 }
 0x6df   : > { %v12330_v40 = vpop.f32.mrf.mxu0 }
 0x6e0   : > { %v12331_v12 = vadd.f32 %v12330_v40, %v12329_v11 }
 0x6e2   : > { %v4276_v43 = vpack.c.bf16 %v12331_v12, %v12328_v42 }
 0x6e4   : > { %12826 = vmatprep.subr.bf16.mxu1 %v4276_v43 }
 0x6e5   : > { %12827 = vmatpush3.bf16.msra.mxu1 %v4276_v43 }
 0x6e6   : > { %12335 = vmatprep.subr.bf16.mxu1 %v13400_v34 }
 0x6e8   : > { %12829 = vmatmul.mubr.msk.bf16.vlgmr.msra.gmra.mxu1 %vm3495_vm9, %v13399_v35 }
 0x6e9   : > { %12336 = vmatpush3.bf16.msra.mxu1 %v13401_v44  ;;  %4512 = vmatprep.mubr.bf16.mxu1 %v14387_v47 }
 0x6ea   : > { %12337 = vmatprep.subr.bf16.mxu1 %v13402_v45 }
 0x6ed   : > { %12338 = vmatpush3.bf16.msra.mxu1 %v13403_v41 }
 0x6ee   : > { %12339 = vmatprep.subr.bf16.mxu1 %v13404_v46 }
 0x6f1   : > { %12340 = vmatpush3.bf16.msra.mxu1 %v13405_v48  ;;  %v13436_v48 = vld [vmem:[%s16052_s6 + $0x3f8] sm:$0xff]  }
 0x6f2   : > { %12341 = vmatprep.subr.bf16.mxu1 %v13406_v49  ;;  %v13435_v49 = vld [vmem:[%s16053_s7 + $0x68] sm:$0xff]  }
 0x6f5   : > { %12342 = vmatpush3.bf16.msra.mxu1 %v13407_v50  ;;  %v13437_v50 = vld [vmem:[%s16052_s6 + $0x3b8] sm:$0xff]  }
 0x6f6   : > { %12343 = vmatprep.subr.bf16.mxu1 %v13408_v14  ;;  %v13438_v14 = vld [vmem:[%s16052_s6 + $0x3f0] sm:$0xff]  }
 0x6f9   : > { %12344 = vmatpush3.bf16.msra.mxu1 %v13409_v51  ;;  %v13439_v51 = vld [vmem:[%s16052_s6 + $0x3b0] sm:$0xff]  }
 0x6fa   : > { %12345 = vmatprep.subr.bf16.mxu1 %v13410_v30  ;;  %v13440_v30 = vld [vmem:[%s16052_s6 + $0x3e8] sm:$0xff]  }
 0x6fd   : > { %12346 = vmatpush3.bf16.msra.mxu1 %v13411_v52  ;;  %v13441_v52 = vld [vmem:[%s16052_s6 + $0x3a8] sm:$0xff]  }
 0x6fe   : > { %12347 = vmatprep.subr.bf16.mxu1 %v13412_v54  ;;  %v13442_v54 = vld [vmem:[%s16052_s6 + $0x3e0] sm:$0xff]  }
 0x701   : > { %12348 = vmatpush3.bf16.msra.mxu1 %v13413_v56  ;;  %v13443_v56 = vld [vmem:[%s16052_s6 + $0x3a0] sm:$0xff]  }
 0x702   : > { %12349 = vmatprep.subr.bf16.mxu1 %v13414_v57  ;;  %v13444_v57 = vld [vmem:[%s16052_s6 + $0x3d8] sm:$0xff]  }
 0x705   : > { %12350 = vmatpush3.bf16.msra.mxu1 %v13415_v58  ;;  %v13445_v58 = vld [vmem:[%s16052_s6 + $0x398] sm:$0xff]  }
 0x708   : > { %4513 = vmatmul.mubr.bf16.vlgmr.msra.gmra.mxu1 %v14385_v13 }
 0x709   : > { %12840 = vmatprep.mubr.msk.bf16.mxu1 %vm3495_vm9, %v13434_v37  ;;  %v13463_v37 = vld [vmem:[%s16052_s6 + $0x418] sm:$0xff]  }
 0x7a8   : > { %v12830_v60 = vpop.f32.mrf.mxu1 }
 0x7a9   : > { %v4349_v61 = vadd.f32 %v12830_v60, %v4104_v26  ;;  %v13431_v26 = vld [vmem:[%s16052_s6 + $0x308] sm:$0xff]   ;;  %v13447_v60 = vld [vmem:[%s16052_s6 + $0x390] sm:$0xff]  }
 0x7aa   : > { %v4332_v63 = vpop.f32.mrf.mxu1 }
 0x7ab   : > { %v4347_v0 = vadd.f32 %v4332_v63, %v4102_v2  ;;  %v13433_v2 = vld [vmem:[%s16052_s6 + $0x300] sm:$0xff]   ;;  %v13449_v63 = vld [vmem:[%s16052_s6 + $0x388] sm:$0xff]  }
 0x7ac   : > { %v12831_v1 = vpop.f32.mrf.mxu1 }
 0x7ad   : > { %v4350_v3 = vadd.f32 %v12831_v1, %v4105_v31  ;;  %v13451_v1 = vld [vmem:[%s16052_s6 + $0x380] sm:$0xff]  }
 0x7ae   : > { %v14645_v4 = vpop.f32.mrf.mxu1 }
 0x7c8   : > { %v12351_v5 = vpop.f32.mrf.mxu1 }
 0x7ca   : > { %v12352_v6 = vpop.f32.mrf.mxu1 }
 0x7cb   : > { %v12353_v15 = vadd.f32 %v12352_v6, %v12351_v5 }
 0x7cc   : > { %v12354_v7 = vpop.f32.mrf.mxu1 }
 0x7ce   : > { %v12355_v53 = vpop.f32.mrf.mxu1 }
 0x7cf   : > { %v12356_v8 = vadd.f32 %v12355_v53, %v12354_v7 }
 0x7d1   : > { %v4521_v10 = vpack.c.bf16 %v12356_v8, %v12353_v15 }
 0x7d3   : > { %12832 = vmatprep.subr.bf16.mxu0 %v4521_v10 }
 0x7d4   : > { %12833 = vmatpush3.bf16.msra.mxu0 %v4521_v10 }
 0x7d5   : > { %12360 = vmatprep.subr.bf16.mxu0 %v13418_v29 }
 0x7d7   : > { %12835 = vmatmul.mubr.msk.bf16.vlgmr.msra.gmra.mxu0 %vm3495_vm9, %v13417_v17 }
 0x7d8   : > { %12361 = vmatpush3.bf16.msra.mxu0 %v13419_v33  ;;  %4757 = vmatprep.mubr.bf16.mxu0 %v14387_v47 }
 0x7d9   : > { %12362 = vmatprep.subr.bf16.mxu0 %v13420_v18 }
 0x7dc   : > { %12363 = vmatpush3.bf16.msra.mxu0 %v13421_v16 }
 0x7dd   : > { %12364 = vmatprep.subr.bf16.mxu0 %v13422_v19 }
 0x7e0   : > { %12365 = vmatpush3.bf16.msra.mxu0 %v13423_v20 }
 0x7e1   : > { %12366 = vmatprep.subr.bf16.mxu0 %v13424_v21  ;;  %v13454_v21 = vld [vmem:[%s16052_s6 + $0x478] sm:$0xff]  }
 0x7e4   : > { %12367 = vmatpush3.bf16.msra.mxu0 %v13425_v22  ;;  %v13453_v22 = vld [vmem:[%s16053_s7 + $0x78] sm:$0xff]  }
 0x7e5   : > { %12368 = vmatprep.subr.bf16.mxu0 %v13426_v23  ;;  %v13455_v23 = vld [vmem:[%s16052_s6 + $0x438] sm:$0xff]  }
 0x7e8   : > { %12369 = vmatpush3.bf16.msra.mxu0 %v13427_v24  ;;  %v13456_v24 = vld [vmem:[%s16052_s6 + $0x470] sm:$0xff]  }
 0x7e9   : > { %12370 = vmatprep.subr.bf16.mxu0 %v13428_v38  ;;  %v13457_v38 = vld [vmem:[%s16052_s6 + $0x430] sm:$0xff]  }
 0x7ec   : > { %12371 = vmatpush3.bf16.msra.mxu0 %v13429_v9  ;;  %v13458_v9 = vld [vmem:[%s16052_s6 + $0x468] sm:$0xff]  }
 0x7ed   : > { %12372 = vmatprep.subr.bf16.mxu0 %v13430_v25  ;;  %v13459_v25 = vld [vmem:[%s16052_s6 + $0x428] sm:$0xff]  }
 0x7f0   : > { %12373 = vmatpush3.bf16.msra.mxu0 %v13431_v26  ;;  %v13460_v26 = vld [vmem:[%s16052_s6 + $0x460] sm:$0xff]  }
 0x7f1   : > { %12374 = vmatprep.subr.bf16.mxu0 %v13432_v27  ;;  %v13461_v27 = vld [vmem:[%s16052_s6 + $0x420] sm:$0xff]  }
 0x7f4   : > { %12375 = vmatpush3.bf16.msra.mxu0 %v13433_v2  ;;  %v13462_v2 = vld [vmem:[%s16052_s6 + $0x458] sm:$0xff]  }
 0x7f7   : > { %4758 = vmatmul.mubr.bf16.vlgmr.msra.gmra.mxu0 %v14385_v13 }
 0x897   : > { %v12836_v31 = vpop.f32.mrf.mxu0 }
 0x898   : > { %v4594_v36 = vadd.f32 %v12836_v31, %v4349_v61  ;;  %v13448_v61 = vld [vmem:[%s16052_s6 + $0x3c8] sm:$0xff]   ;;  %v13464_v31 = vld [vmem:[%s16052_s6 + $0x450] sm:$0xff]  }
 0x899   : > { %v4577_v39 = vpop.f32.mrf.mxu0 }
 0x89a   : > { %v4592_v11 = vadd.f32 %v4577_v39, %v4347_v0  ;;  %v13450_v0 = vld [vmem:[%s16052_s6 + $0x3c0] sm:$0xff]   ;;  %v13466_v39 = vld [vmem:[%s16052_s6 + $0x448] sm:$0xff]  }
 0x89b   : > { %v12837_v40 = vpop.f32.mrf.mxu0 }
 0x89c   : > { %v4595_v42 = vadd.f32 %v12837_v40, %v4350_v3  ;;  %v13452_v3 = vld [vmem:[%s16053_s7 + $0x70] sm:$0xff]   ;;  %v13468_v40 = vld [vmem:[%s16052_s6 + $0x440] sm:$0xff]  }
 0x89d   : > { %v14705_v12 = vpop.f32.mrf.mxu0  ;;  %12846 = vmatprep.mubr.msk.bf16.mxu0 %vm3495_vm9, %v13452_v3  ;;  %v13479_v3 = vld [vmem:[%s16052_s6 + $0x4a0] sm:$0xff]  }
 0x8b7   : > { %v12376_v43 = vpop.f32.mrf.mxu0 }
 0x8b9   : > { %v12377_v34 = vpop.f32.mrf.mxu0 }
 0x8ba   : > { %v12378_v45 = vadd.f32 %v12377_v34, %v12376_v43  ;;  %v13470_v43 = vld [vmem:[%s16053_s7 + $0x80] sm:$0xff]   ;;  %v3605_v34 = vadd.f32 %v14523_v55, %v14463_v28 }
 0x8bb   : > { %v12379_v35 = vpop.f32.mrf.mxu0 }
 0x8bd   : > { %v12380_v44 = vpop.f32.mrf.mxu0 }
 0x8be   : > { %v12381_v41 = vadd.f32 %v12380_v44, %v12379_v35  ;;  %v3858_v35 = vadd.f32 %v14525_v62, %v3605_v34  ;;  %v13498_v34 = vld [vmem:[%s16052_s6 + $0x558] sm:$0xff]  }
 0x8c0   : > { %v4766_v46 = vpack.c.bf16 %v12381_v41, %v12378_v45  ;;  %v4103_v44 = vadd.f32 %v14585_v32, %v3858_v35  ;;  %v13499_v35 = vld [vmem:[%s16052_s6 + $0x518] sm:$0xff]  }
 0x8c2   : > { %12838 = vmatprep.subr.bf16.mxu1 %v4766_v46  ;;  %v4348_v41 = vadd.f32 %v14645_v4, %v4103_v44  ;;  %v13472_v4 = vld [vmem:[%s16052_s6 + $0x4f8] sm:$0xff]   ;;  %v13500_v44 = vld [vmem:[%s16052_s6 + $0x550] sm:$0xff]  }
 0x8c3   : > { %12839 = vmatpush3.bf16.msra.mxu1 %v4766_v46 }
 0x8c4   : > { %12385 = vmatprep.subr.bf16.mxu1 %v13436_v48 }
 0x8c6   : > { %12841 = vmatmul.mubr.msk.bf16.vlgmr.msra.gmra.mxu1 %vm3495_vm9, %v13435_v49  ;;  %v4593_v49 = vadd.f32 %v14705_v12, %v4348_v41  ;;  %v13471_v12 = vld [vmem:[%s16053_s7 + $0x88] sm:$0xff]  }
 0x8c7   : > { %12386 = vmatpush3.bf16.msra.mxu1 %v13437_v50  ;;  %5002 = vmatprep.mubr.bf16.mxu1 %v14387_v47  ;;  %v13502_v41 = vld [vmem:[%s16052_s6 + $0x548] sm:$0xff]  }
 0x8c8   : > { %12387 = vmatprep.subr.bf16.mxu1 %v13438_v14 }
 0x8cb   : > { %12388 = vmatpush3.bf16.msra.mxu1 %v13439_v51 }
 0x8cc   : > { %12389 = vmatprep.subr.bf16.mxu1 %v13440_v30 }
 0x8cf   : > { %12390 = vmatpush3.bf16.msra.mxu1 %v13441_v52 }
 0x8d0   : > { %12391 = vmatprep.subr.bf16.mxu1 %v13442_v54 }
 0x8d3   : > { %12392 = vmatpush3.bf16.msra.mxu1 %v13443_v56 }
 0x8d4   : > { %12393 = vmatprep.subr.bf16.mxu1 %v13444_v57 }
 0x8d7   : > { %12394 = vmatpush3.bf16.msra.mxu1 %v13445_v58 }
 0x8d8   : > { %12395 = vmatprep.subr.bf16.mxu1 %v13446_v59  ;;  %v13473_v59 = vld [vmem:[%s16052_s6 + $0x4b8] sm:$0xff]  }
 0x8db   : > { %12396 = vmatpush3.bf16.msra.mxu1 %v13447_v60  ;;  %v13474_v60 = vld [vmem:[%s16052_s6 + $0x4f0] sm:$0xff]  }
 0x8dc   : > { %12397 = vmatprep.subr.bf16.mxu1 %v13448_v61  ;;  %v13475_v61 = vld [vmem:[%s16052_s6 + $0x4b0] sm:$0xff]  }
 0x8df   : > { %12398 = vmatpush3.bf16.msra.mxu1 %v13449_v63  ;;  %v13476_v63 = vld [vmem:[%s16052_s6 + $0x4e8] sm:$0xff]  }
 0x8e0   : > { %12399 = vmatprep.subr.bf16.mxu1 %v13450_v0  ;;  %v13477_v0 = vld [vmem:[%s16052_s6 + $0x4a8] sm:$0xff]  }
 0x8e3   : > { %12400 = vmatpush3.bf16.msra.mxu1 %v13451_v1  ;;  %v13478_v1 = vld [vmem:[%s16052_s6 + $0x4e0] sm:$0xff]  }
 0x8e6   : > { %5003 = vmatmul.mubr.bf16.vlgmr.msra.gmra.mxu1 %v14385_v13 }
 0x8e7   : > { %12852 = vmatprep.mubr.msk.bf16.mxu1 %vm3495_vm9, %v13470_v43  ;;  %v13497_v43 = vld [vmem:[%s16052_s6 + $0x520] sm:$0xff]  }
 0x986   : > { %v12842_v5 = vpop.f32.mrf.mxu1 }
 0x987   : > { %v4839_v6 = vadd.f32 %v12842_v5, %v4594_v36  ;;  %v13465_v36 = vld [vmem:[%s16052_s6 + $0x410] sm:$0xff]   ;;  %v13480_v5 = vld [vmem:[%s16052_s6 + $0x4d8] sm:$0xff]  }
 0x988   : > { %v4822_v7 = vpop.f32.mrf.mxu1 }
 0x989   : > { %v4837_v53 = vadd.f32 %v4822_v7, %v4592_v11  ;;  %v13467_v11 = vld [vmem:[%s16052_s6 + $0x408] sm:$0xff]   ;;  %v13482_v7 = vld [vmem:[%s16052_s6 + $0x4d0] sm:$0xff]  }
 0x98a   : > { %v12843_v15 = vpop.f32.mrf.mxu1 }
 0x98b   : > { %v4840_v8 = vadd.f32 %v12843_v15, %v4595_v42  ;;  %v13469_v42 = vld [vmem:[%s16052_s6 + $0x400] sm:$0xff]   ;;  %v13484_v15 = vld [vmem:[%s16052_s6 + $0x4c8] sm:$0xff]  }
 0x98c   : > { %v4825_v10 = vpop.f32.mrf.mxu1 }
 0x98d   : > { %v4838_v51 = vadd.f32 %v4825_v10, %v4593_v49  ;;  %v13486_v10 = vld [vmem:[%s16052_s6 + $0x4c0] sm:$0xff]  }
 0x98e   : > { %v13505_v49 = vld [vmem:[%s16052_s6 + $0x500] sm:$0xff]  }
 0x9a6   : > { %v12401_v29 = vpop.f32.mrf.mxu1 }
 0x9a8   : > { %v12402_v17 = vpop.f32.mrf.mxu1 }
 0x9a9   : > { %v12403_v16 = vadd.f32 %v12402_v17, %v12401_v29  ;;  %v13487_v29 = vld [vmem:[%s16052_s6 + $0x480] sm:$0xff]   ;;  %v13488_v17 = vld [vmem:[%s16053_s7 + $0x90] sm:$0xff]  }
 0x9aa   : > { %v12404_v33 = vpop.f32.mrf.mxu1 }
 0x9ac   : > { %v12405_v18 = vpop.f32.mrf.mxu1 }
 0x9ad   : > { %v12406_v19 = vadd.f32 %v12405_v18, %v12404_v33 }
 0x9af   : > { %v5011_v20 = vpack.c.bf16 %v12406_v19, %v12403_v16 }
 0x9b1   : > { %12844 = vmatprep.subr.bf16.mxu0 %v5011_v20 }
 0x9b2   : > { %12845 = vmatpush3.bf16.msra.mxu0 %v5011_v20 }
 0x9b3   : > { %12410 = vmatprep.subr.bf16.mxu0 %v13454_v21 }
 0x9b5   : > { %12847 = vmatmul.mubr.msk.bf16.vlgmr.msra.gmra.mxu0 %vm3495_vm9, %v13453_v22 }
 0x9b6   : > { %12411 = vmatpush3.bf16.msra.mxu0 %v13455_v23  ;;  %5247 = vmatprep.mubr.bf16.mxu0 %v14387_v47 }
 0x9b7   : > { %12412 = vmatprep.subr.bf16.mxu0 %v13456_v24 }
 0x9ba   : > { %12413 = vmatpush3.bf16.msra.mxu0 %v13457_v38 }
 0x9bb   : > { %12414 = vmatprep.subr.bf16.mxu0 %v13458_v9 }
 0x9be   : > { %12415 = vmatpush3.bf16.msra.mxu0 %v13459_v25 }
 0x9bf   : > { %12416 = vmatprep.subr.bf16.mxu0 %v13460_v26 }
 0x9c2   : > { %12417 = vmatpush3.bf16.msra.mxu0 %v13461_v27 }
 0x9c3   : > { %12418 = vmatprep.subr.bf16.mxu0 %v13462_v2  ;;  %v13490_v2 = vld [vmem:[%s16052_s6 + $0x578] sm:$0xff]  }
 0x9c6   : > { %12419 = vmatpush3.bf16.msra.mxu0 %v13463_v37  ;;  %v13489_v37 = vld [vmem:[%s16053_s7 + $0x98] sm:$0xff]  }
 0x9c7   : > { %12420 = vmatprep.subr.bf16.mxu0 %v13464_v31  ;;  %v13491_v31 = vld [vmem:[%s16052_s6 + $0x538] sm:$0xff]  }
 0x9ca   : > { %12421 = vmatpush3.bf16.msra.mxu0 %v13465_v36  ;;  %v13492_v36 = vld [vmem:[%s16052_s6 + $0x570] sm:$0xff]  }
 0x9cb   : > { %12422 = vmatprep.subr.bf16.mxu0 %v13466_v39  ;;  %v13493_v39 = vld [vmem:[%s16052_s6 + $0x530] sm:$0xff]  }
 0x9ce   : > { %12423 = vmatpush3.bf16.msra.mxu0 %v13467_v11  ;;  %v13494_v11 = vld [vmem:[%s16052_s6 + $0x568] sm:$0xff]  }
 0x9cf   : > { %12424 = vmatprep.subr.bf16.mxu0 %v13468_v40  ;;  %v13495_v40 = vld [vmem:[%s16052_s6 + $0x528] sm:$0xff]  }
 0x9d2   : > { %12425 = vmatpush3.bf16.msra.mxu0 %v13469_v42  ;;  %v13496_v42 = vld [vmem:[%s16052_s6 + $0x560] sm:$0xff]  }
 0x9d5   : > { %5248 = vmatmul.mubr.bf16.vlgmr.msra.gmra.mxu0 %v14385_v13 }
 0x9d6   : > { %12858 = vmatprep.mubr.msk.bf16.mxu0 %vm3495_vm9, %v13488_v17  ;;  %v13520_v17 = vld [vmem:[%s16052_s6 + $0x5c8] sm:$0xff]  }
 0xa75   : > { %v12848_v45 = vpop.f32.mrf.mxu0 }
 0xa76   : > { %v5084_v46 = vadd.f32 %v12848_v45, %v4839_v6  ;;  %v13481_v6 = vld [vmem:[%s16052_s6 + $0x498] sm:$0xff]   ;;  %v13501_v45 = vld [vmem:[%s16052_s6 + $0x510] sm:$0xff]  }
 0xa77   : > { %v5067_v48 = vpop.f32.mrf.mxu0 }
 0xa78   : > { %v5082_v50 = vadd.f32 %v5067_v48, %v4837_v53  ;;  %v13483_v53 = vld [vmem:[%s16052_s6 + $0x490] sm:$0xff]   ;;  %v13504_v48 = vld [vmem:[%s16052_s6 + $0x540] sm:$0xff]  }
 0xa79   : > { %v12849_v14 = vpop.f32.mrf.mxu0 }
 0xa7a   : > { %v5085_v30 = vadd.f32 %v12849_v14, %v4840_v8  ;;  %v13485_v8 = vld [vmem:[%s16052_s6 + $0x488] sm:$0xff]  }
 0xa7b   : > { %v5070_v52 = vpop.f32.mrf.mxu0 }
 0xa7c   : > { %v14829_v54 = vadd.f32 %v5070_v52, %v4838_v51 }
 0xa95   : > { %v12426_v56 = vpop.f32.mrf.mxu0 }
 0xa97   : > { %v12427_v28 = vpop.f32.mrf.mxu0 }
 0xa98   : > { %v12428_v57 = vadd.f32 %v12427_v28, %v12426_v56 }
 0xa99   : > { %v12429_v55 = vpop.f32.mrf.mxu0 }
 0xa9b   : > { %v12430_v62 = vpop.f32.mrf.mxu0 }
 0xa9c   : > { %v12431_v32 = vadd.f32 %v12430_v62, %v12429_v55 }
 0xa9e   : > { %v5256_v58 = vpack.c.bf16 %v12431_v32, %v12428_v57 }
 0xaa0   : > { %12850 = vmatprep.subr.bf16.mxu1 %v5256_v58 }
 0xaa1   : > { %12851 = vmatpush3.bf16.msra.mxu1 %v5256_v58 }
 0xaa2   : > { %12435 = vmatprep.subr.bf16.mxu1 %v13472_v4 }
 0xaa4   : > { %12853 = vmatmul.mubr.msk.bf16.vlgmr.msra.gmra.mxu1 %vm3495_vm9, %v13471_v12 }
 0xaa5   : > { %12436 = vmatpush3.bf16.msra.mxu1 %v13473_v59  ;;  %5492 = vmatprep.mubr.bf16.mxu1 %v14387_v47 }
 0xaa6   : > { %12437 = vmatprep.subr.bf16.mxu1 %v13474_v60 }
 0xaa9   : > { %12438 = vmatpush3.bf16.msra.mxu1 %v13475_v61 }
 0xaaa   : > { %12439 = vmatprep.subr.bf16.mxu1 %v13476_v63  ;;  %v13508_v63 = vld [vmem:[%s16052_s6 + $0x5f8] sm:$0xff]  }
 0xaad   : > { %12440 = vmatpush3.bf16.msra.mxu1 %v13477_v0  ;;  %v13509_v0 = vld [vmem:[%s16052_s6 + $0x5b8] sm:$0xff]  }
 0xaae   : > { %12441 = vmatprep.subr.bf16.mxu1 %v13478_v1  ;;  %v13510_v1 = vld [vmem:[%s16052_s6 + $0x5f0] sm:$0xff]  }
 0xab1   : > { %12442 = vmatpush3.bf16.msra.mxu1 %v13479_v3  ;;  %v13511_v3 = vld [vmem:[%s16052_s6 + $0x5b0] sm:$0xff]  }
 0xab2   : > { %12443 = vmatprep.subr.bf16.mxu1 %v13480_v5  ;;  %v13512_v5 = vld [vmem:[%s16052_s6 + $0x5e8] sm:$0xff]  }
 0xab5   : > { %12444 = vmatpush3.bf16.msra.mxu1 %v13481_v6  ;;  %v13513_v6 = vld [vmem:[%s16052_s6 + $0x5a8] sm:$0xff]  }
 0xab6   : > { %12445 = vmatprep.subr.bf16.mxu1 %v13482_v7  ;;  %v13514_v7 = vld [vmem:[%s16052_s6 + $0x5e0] sm:$0xff]  }
 0xab9   : > { %12446 = vmatpush3.bf16.msra.mxu1 %v13483_v53  ;;  %v13515_v53 = vld [vmem:[%s16052_s6 + $0x5a0] sm:$0xff]  }
 0xaba   : > { %12447 = vmatprep.subr.bf16.mxu1 %v13484_v15  ;;  %v13516_v15 = vld [vmem:[%s16052_s6 + $0x5d8] sm:$0xff]  }
 0xabd   : > { %12448 = vmatpush3.bf16.msra.mxu1 %v13485_v8  ;;  %v13517_v8 = vld [vmem:[%s16052_s6 + $0x598] sm:$0xff]  }
 0xabe   : > { %12449 = vmatprep.subr.bf16.mxu1 %v13486_v10  ;;  %v13518_v10 = vld [vmem:[%s16052_s6 + $0x5d0] sm:$0xff]  }
 0xac1   : > { %12450 = vmatpush3.bf16.msra.mxu1 %v13487_v29  ;;  %v13519_v29 = vld [vmem:[%s16052_s6 + $0x590] sm:$0xff]  }
 0xac4   : > { %5493 = vmatmul.mubr.bf16.vlgmr.msra.gmra.mxu1 %v14385_v13 }
 0xb64   : > { %v12854_v33 = vpop.f32.mrf.mxu1 }
 0xb65   : > { %v5329_v18 = vadd.f32 %v12854_v33, %v5084_v46  ;;  %v13503_v46 = vld [vmem:[%s16052_s6 + $0x508] sm:$0xff]  }
 0xb66   : > { %v5312_v16 = vpop.f32.mrf.mxu1  ;;  %v13521_v33 = vld [vmem:[%s16052_s6 + $0x588] sm:$0xff]  }
 0xb67   : > { %v5327_v19 = vadd.f32 %v5312_v16, %v5082_v50  ;;  %v13506_v50 = vld [vmem:[%s16053_s7 + $0xa0] sm:$0xff]  }
 0xb68   : > { %v12855_v20 = vpop.f32.mrf.mxu1  ;;  %12864 = vmatprep.mubr.msk.bf16.mxu1 %vm3495_vm9, %v13506_v50  ;;  %v13523_v16 = vld [vmem:[%s16052_s6 + $0x580] sm:$0xff]   ;;  %v13538_v50 = vld [vmem:[%s16052_s6 + $0x648] sm:$0xff]  }
 0xb69   : > { %v5330_v21 = vadd.f32 %v12855_v20, %v5085_v30 }
 0xb6a   : > { %v5315_v22 = vpop.f32.mrf.mxu1 }
 0xb6b   : > { %v5328_v28 = vadd.f32 %v5315_v22, %v14829_v54  ;;  %v13507_v54 = vld [vmem:[%s16053_s7 + $0xa8] sm:$0xff]  }
 0xb84   : > { %v12451_v23 = vpop.f32.mrf.mxu1 }
 0xb86   : > { %v12452_v24 = vpop.f32.mrf.mxu1 }
 0xb87   : > { %v12453_v25 = vadd.f32 %v12452_v24, %v12451_v23 }
 0xb88   : > { %v12454_v38 = vpop.f32.mrf.mxu1 }
 0xb8a   : > { %v12455_v9 = vpop.f32.mrf.mxu1 }
 0xb8b   : > { %v12456_v26 = vadd.f32 %v12455_v9, %v12454_v38 }
 0xb8d   : > { %v5501_v27 = vpack.c.bf16 %v12456_v26, %v12453_v25 }
 0xb8f   : > { %12856 = vmatprep.subr.bf16.mxu0 %v5501_v27 }
 0xb90   : > { %12857 = vmatpush3.bf16.msra.mxu0 %v5501_v27 }
 0xb91   : > { %12460 = vmatprep.subr.bf16.mxu0 %v13490_v2 }
 0xb93   : > { %12859 = vmatmul.mubr.msk.bf16.vlgmr.msra.gmra.mxu0 %vm3495_vm9, %v13489_v37 }
 0xb94   : > { %12461 = vmatpush3.bf16.msra.mxu0 %v13491_v31  ;;  %5737 = vmatprep.mubr.bf16.mxu0 %v14387_v47 }
 0xb95   : > { %12462 = vmatprep.subr.bf16.mxu0 %v13492_v36 }
 0xb98   : > { %12463 = vmatpush3.bf16.msra.mxu0 %v13493_v39  ;;  %v13526_v39 = vld [vmem:[%s16052_s6 + $0x678] sm:$0xff]  }
 0xb99   : > { %12464 = vmatprep.subr.bf16.mxu0 %v13494_v11  ;;  %v13525_v11 = vld [vmem:[%s16053_s7 + $0xb8] sm:$0xff]  }
 0xb9c   : > { %12465 = vmatpush3.bf16.msra.mxu0 %v13495_v40  ;;  %v13527_v40 = vld [vmem:[%s16052_s6 + $0x638] sm:$0xff]  }
 0xb9d   : > { %12466 = vmatprep.subr.bf16.mxu0 %v13496_v42  ;;  %v13528_v42 = vld [vmem:[%s16052_s6 + $0x670] sm:$0xff]  }
 0xba0   : > { %12467 = vmatpush3.bf16.msra.mxu0 %v13497_v43  ;;  %v13529_v43 = vld [vmem:[%s16052_s6 + $0x630] sm:$0xff]  }
 0xba1   : > { %12468 = vmatprep.subr.bf16.mxu0 %v13498_v34  ;;  %v13530_v34 = vld [vmem:[%s16052_s6 + $0x668] sm:$0xff]  }
 0xba4   : > { %12469 = vmatpush3.bf16.msra.mxu0 %v13499_v35  ;;  %v13531_v35 = vld [vmem:[%s16052_s6 + $0x628] sm:$0xff]  }
 0xba5   : > { %12470 = vmatprep.subr.bf16.mxu0 %v13500_v44  ;;  %v13532_v44 = vld [vmem:[%s16052_s6 + $0x660] sm:$0xff]  }
 0xba8   : > { %12471 = vmatpush3.bf16.msra.mxu0 %v13501_v45  ;;  %v13533_v45 = vld [vmem:[%s16052_s6 + $0x620] sm:$0xff]  }
 0xba9   : > { %12472 = vmatprep.subr.bf16.mxu0 %v13502_v41  ;;  %v13534_v41 = vld [vmem:[%s16052_s6 + $0x658] sm:$0xff]  }
 0xbac   : > { %12473 = vmatpush3.bf16.msra.mxu0 %v13503_v46  ;;  %v13535_v46 = vld [vmem:[%s16052_s6 + $0x618] sm:$0xff]  }
 0xbad   : > { %12474 = vmatprep.subr.bf16.mxu0 %v13504_v48  ;;  %v13536_v48 = vld [vmem:[%s16052_s6 + $0x650] sm:$0xff]  }
 0xbb0   : > { %12475 = vmatpush3.bf16.msra.mxu0 %v13505_v49  ;;  %v13537_v49 = vld [vmem:[%s16052_s6 + $0x610] sm:$0xff]  }
 0xbb3   : > { %5738 = vmatmul.mubr.bf16.vlgmr.msra.gmra.mxu0 %v14385_v13 }
 0xc53   : > { %v12860_v14 = vpop.f32.mrf.mxu0 }
 0xc54   : > { %v5574_v51 = vadd.f32 %v12860_v14, %v5329_v18  ;;  %v13522_v18 = vld [vmem:[%s16052_s6 + $0x5c0] sm:$0xff]   ;;  %v13539_v14 = vld [vmem:[%s16052_s6 + $0x608] sm:$0xff]  }
 0xc55   : > { %v5557_v30 = vpop.f32.mrf.mxu0 }
 0xc56   : > { %v5572_v52 = vadd.f32 %v5557_v30, %v5327_v19  ;;  %v13524_v19 = vld [vmem:[%s16053_s7 + $0xb0] sm:$0xff]   ;;  %v13541_v30 = vld [vmem:[%s16052_s6 + $0x600] sm:$0xff]  }
 0xc57   : > { %v12861_v56 = vpop.f32.mrf.mxu0  ;;  %12870 = vmatprep.mubr.msk.bf16.mxu0 %vm3495_vm9, %v13524_v19  ;;  %v13556_v19 = vld [vmem:[%s16052_s6 + $0x6c8] sm:$0xff]  }
 0xc58   : > { %v5575_v55 = vadd.f32 %v12861_v56, %v5330_v21 }
 0xc59   : > { %v5560_v62 = vpop.f32.mrf.mxu0 }
 0xc5a   : > { %v14948_v57 = vadd.f32 %v5560_v62, %v5328_v28 }
 0xc73   : > { %v12476_v32 = vpop.f32.mrf.mxu0 }
 0xc75   : > { %v12477_v58 = vpop.f32.mrf.mxu0 }
 0xc76   : > { %v12478_v59 = vadd.f32 %v12477_v58, %v12476_v32 }
 0xc77   : > { %v12479_v4 = vpop.f32.mrf.mxu0 }
 0xc79   : > { %v12480_v12 = vpop.f32.mrf.mxu0 }
 0xc7a   : > { %v12481_v60 = vadd.f32 %v12480_v12, %v12479_v4 }
 0xc7c   : > { %v5746_v61 = vpack.c.bf16 %v12481_v60, %v12478_v59 }
 0xc7e   : > { %12862 = vmatprep.subr.bf16.mxu1 %v5746_v61 }
 0xc7f   : > { %12863 = vmatpush3.bf16.msra.mxu1 %v5746_v61 }
 0xc80   : > { %12485 = vmatprep.subr.bf16.mxu1 %v13508_v63 }
 0xc82   : > { %12865 = vmatmul.mubr.msk.bf16.vlgmr.msra.gmra.mxu1 %vm3495_vm9, %v13507_v54 }
 0xc83   : > { %12486 = vmatpush3.bf16.msra.mxu1 %v13509_v0  ;;  %5982 = vmatprep.mubr.bf16.mxu1 %v14387_v47 }
 0xc84   : > { %12487 = vmatprep.subr.bf16.mxu1 %v13510_v1 }
 0xc87   : > { %12488 = vmatpush3.bf16.msra.mxu1 %v13511_v3 }
 0xc88   : > { %12489 = vmatprep.subr.bf16.mxu1 %v13512_v5  ;;  %v13544_v5 = vld [vmem:[%s16052_s6 + $0x6f8] sm:$0xff]  }
 0xc8b   : > { %12490 = vmatpush3.bf16.msra.mxu1 %v13513_v6  ;;  %v13545_v6 = vld [vmem:[%s16052_s6 + $0x6b8] sm:$0xff]  }
 0xc8c   : > { %12491 = vmatprep.subr.bf16.mxu1 %v13514_v7  ;;  %v13546_v7 = vld [vmem:[%s16052_s6 + $0x6f0] sm:$0xff]  }
 0xc8f   : > { %12492 = vmatpush3.bf16.msra.mxu1 %v13515_v53  ;;  %v13547_v53 = vld [vmem:[%s16052_s6 + $0x6b0] sm:$0xff]  }
 0xc90   : > { %12493 = vmatprep.subr.bf16.mxu1 %v13516_v15  ;;  %v13548_v15 = vld [vmem:[%s16052_s6 + $0x6e8] sm:$0xff]  }
 0xc93   : > { %12494 = vmatpush3.bf16.msra.mxu1 %v13517_v8  ;;  %v13549_v8 = vld [vmem:[%s16052_s6 + $0x6a8] sm:$0xff]  }
 0xc94   : > { %12495 = vmatprep.subr.bf16.mxu1 %v13518_v10  ;;  %v13550_v10 = vld [vmem:[%s16052_s6 + $0x6e0] sm:$0xff]  }
 0xc97   : > { %12496 = vmatpush3.bf16.msra.mxu1 %v13519_v29  ;;  %v13551_v29 = vld [vmem:[%s16052_s6 + $0x6a0] sm:$0xff]  }
 0xc98   : > { %12497 = vmatprep.subr.bf16.mxu1 %v13520_v17  ;;  %v13552_v17 = vld [vmem:[%s16052_s6 + $0x6d8] sm:$0xff]  }
 0xc9b   : > { %12498 = vmatpush3.bf16.msra.mxu1 %v13521_v33  ;;  %v13553_v33 = vld [vmem:[%s16052_s6 + $0x698] sm:$0xff]  }
 0xc9c   : > { %12499 = vmatprep.subr.bf16.mxu1 %v13522_v18  ;;  %v13554_v18 = vld [vmem:[%s16052_s6 + $0x6d0] sm:$0xff]  }
 0xc9f   : > { %12500 = vmatpush3.bf16.msra.mxu1 %v13523_v16  ;;  %v13555_v16 = vld [vmem:[%s16052_s6 + $0x690] sm:$0xff]  }
 0xca2   : > { %5983 = vmatmul.mubr.bf16.vlgmr.msra.gmra.mxu1 %v14385_v13 }
 0xd42   : > { %v12866_v20 = vpop.f32.mrf.mxu1 }
 0xd43   : > { %v5819_v21 = vadd.f32 %v12866_v20, %v5574_v51  ;;  %v13540_v51 = vld [vmem:[%s16052_s6 + $0x640] sm:$0xff]   ;;  %v13557_v20 = vld [vmem:[%s16052_s6 + $0x688] sm:$0xff]  }
 0xd44   : > { %v5802_v22 = vpop.f32.mrf.mxu1 }
 0xd45   : > { %v5817_v23 = vadd.f32 %v5802_v22, %v5572_v52  ;;  %v13542_v52 = vld [vmem:[%s16053_s7 + $0xc0] sm:$0xff]  }
 0xd46   : > { %v12867_v24 = vpop.f32.mrf.mxu1  ;;  %12876 = vmatprep.mubr.msk.bf16.mxu1 %vm3495_vm9, %v13542_v52  ;;  %v13559_v22 = vld [vmem:[%s16052_s6 + $0x680] sm:$0xff]   ;;  %v13574_v52 = vld [vmem:[%s16052_s6 + $0x748] sm:$0xff]  }
 0xd47   : > { %v5820_v38 = vadd.f32 %v12867_v24, %v5575_v55 }
 0xd48   : > { %v5805_v9 = vpop.f32.mrf.mxu1 }
 0xd49   : > { %v5818_v58 = vadd.f32 %v5805_v9, %v14948_v57  ;;  %v13543_v57 = vld [vmem:[%s16053_s7 + $0xc8] sm:$0xff]  }
 0xd62   : > { %v12501_v25 = vpop.f32.mrf.mxu1 }
 0xd64   : > { %v12502_v26 = vpop.f32.mrf.mxu1 }
 0xd65   : > { %v12503_v37 = vadd.f32 %v12502_v26, %v12501_v25 }
 0xd66   : > { %v12504_v27 = vpop.f32.mrf.mxu1 }
 0xd68   : > { %v12505_v2 = vpop.f32.mrf.mxu1 }
 0xd69   : > { %v12506_v31 = vadd.f32 %v12505_v2, %v12504_v27 }
 0xd6b   : > { %v5991_v36 = vpack.c.bf16 %v12506_v31, %v12503_v37 }
 0xd6d   : > { %12868 = vmatprep.subr.bf16.mxu0 %v5991_v36 }
 0xd6e   : > { %12869 = vmatpush3.bf16.msra.mxu0 %v5991_v36 }
 0xd6f   : > { %12510 = vmatprep.subr.bf16.mxu0 %v13526_v39 }
 0xd71   : > { %12871 = vmatmul.mubr.msk.bf16.vlgmr.msra.gmra.mxu0 %vm3495_vm9, %v13525_v11 }
 0xd72   : > { %12511 = vmatpush3.bf16.msra.mxu0 %v13527_v40  ;;  %6227 = vmatprep.mubr.bf16.mxu0 %v14387_v47 }
 0xd73   : > { %12512 = vmatprep.subr.bf16.mxu0 %v13528_v42 }
 0xd76   : > { %12513 = vmatpush3.bf16.msra.mxu0 %v13529_v43  ;;  %v13562_v43 = vld [vmem:[%s16052_s6 + $0x778] sm:$0xff]  }
 0xd77   : > { %12514 = vmatprep.subr.bf16.mxu0 %v13530_v34  ;;  %v13561_v34 = vld [vmem:[%s16053_s7 + $0xd8] sm:$0xff]  }
 0xd7a   : > { %12515 = vmatpush3.bf16.msra.mxu0 %v13531_v35  ;;  %v13563_v35 = vld [vmem:[%s16052_s6 + $0x738] sm:$0xff]  }
 0xd7b   : > { %12516 = vmatprep.subr.bf16.mxu0 %v13532_v44  ;;  %v13564_v44 = vld [vmem:[%s16052_s6 + $0x770] sm:$0xff]  }
 0xd7e   : > { %12517 = vmatpush3.bf16.msra.mxu0 %v13533_v45  ;;  %v13565_v45 = vld [vmem:[%s16052_s6 + $0x730] sm:$0xff]  }
 0xd7f   : > { %12518 = vmatprep.subr.bf16.mxu0 %v13534_v41  ;;  %v13566_v41 = vld [vmem:[%s16052_s6 + $0x768] sm:$0xff]  }
 0xd82   : > { %12519 = vmatpush3.bf16.msra.mxu0 %v13535_v46  ;;  %v13567_v46 = vld [vmem:[%s16052_s6 + $0x728] sm:$0xff]  }
 0xd83   : > { %12520 = vmatprep.subr.bf16.mxu0 %v13536_v48  ;;  %v13568_v48 = vld [vmem:[%s16052_s6 + $0x760] sm:$0xff]  }
 0xd86   : > { %12521 = vmatpush3.bf16.msra.mxu0 %v13537_v49  ;;  %v13569_v49 = vld [vmem:[%s16052_s6 + $0x720] sm:$0xff]  }
 0xd87   : > { %12522 = vmatprep.subr.bf16.mxu0 %v13538_v50  ;;  %v13570_v50 = vld [vmem:[%s16052_s6 + $0x758] sm:$0xff]  }
 0xd8a   : > { %12523 = vmatpush3.bf16.msra.mxu0 %v13539_v14  ;;  %v13571_v14 = vld [vmem:[%s16052_s6 + $0x718] sm:$0xff]  }
 0xd8b   : > { %12524 = vmatprep.subr.bf16.mxu0 %v13540_v51  ;;  %v13572_v51 = vld [vmem:[%s16052_s6 + $0x750] sm:$0xff]  }
 0xd8e   : > { %12525 = vmatpush3.bf16.msra.mxu0 %v13541_v30  ;;  %v13573_v30 = vld [vmem:[%s16052_s6 + $0x710] sm:$0xff]  }
 0xd91   : > { %6228 = vmatmul.mubr.bf16.vlgmr.msra.gmra.mxu0 %v14385_v13 }
 0xe31   : > { %v12872_v56 = vpop.f32.mrf.mxu0 }
 0xe32   : > { %v6064_v28 = vadd.f32 %v12872_v56, %v5819_v21  ;;  %v13558_v21 = vld [vmem:[%s16052_s6 + $0x6c0] sm:$0xff]   ;;  %v13575_v56 = vld [vmem:[%s16052_s6 + $0x708] sm:$0xff]  }
 0xe33   : > { %v6047_v55 = vpop.f32.mrf.mxu0 }
 0xe34   : > { %v6062_v62 = vadd.f32 %v6047_v55, %v5817_v23  ;;  %v13560_v23 = vld [vmem:[%s16053_s7 + $0xd0] sm:$0xff]   ;;  %v13577_v55 = vld [vmem:[%s16052_s6 + $0x700] sm:$0xff]  }
 0xe35   : > { %v12873_v32 = vpop.f32.mrf.mxu0  ;;  %12882 = vmatprep.mubr.msk.bf16.mxu0 %vm3495_vm9, %v13560_v23  ;;  %v13593_v23 = vld [vmem:[%s16052_s6 + $0x788] sm:$0xff]  }
 0xe36   : > { %v6065_v4 = vadd.f32 %v12873_v32, %v5820_v38 }
 0xe37   : > { %v6050_v12 = vpop.f32.mrf.mxu0 }
 0xe38   : > { %v15067_v59 = vadd.f32 %v6050_v12, %v5818_v58 }
 0xe51   : > { %v12526_v60 = vpop.f32.mrf.mxu0 }
 0xe53   : > { %v12527_v61 = vpop.f32.mrf.mxu0 }
 0xe54   : > { %v12528_v0 = vadd.f32 %v12527_v61, %v12526_v60 }
 0xe55   : > { %v12529_v63 = vpop.f32.mrf.mxu0 }
 0xe57   : > { %v12530_v54 = vpop.f32.mrf.mxu0 }
 0xe58   : > { %v12531_v1 = vadd.f32 %v12530_v54, %v12529_v63 }
 0xe5a   : > { %v6236_v3 = vpack.c.bf16 %v12531_v1, %v12528_v0 }
 0xe5c   : > { %12874 = vmatprep.subr.bf16.mxu1 %v6236_v3 }
 0xe5d   : > { %12875 = vmatpush3.bf16.msra.mxu1 %v6236_v3 }
 0xe5e   : > { %12535 = vmatprep.subr.bf16.mxu1 %v13544_v5 }
 0xe60   : > { %12877 = vmatmul.mubr.msk.bf16.vlgmr.msra.gmra.mxu1 %vm3495_vm9, %v13543_v57 }
 0xe61   : > { %12536 = vmatpush3.bf16.msra.mxu1 %v13545_v6  ;;  %6472 = vmatprep.mubr.bf16.mxu1 %v14387_v47 }
 0xe62   : > { %12537 = vmatprep.subr.bf16.mxu1 %v13546_v7 }
 0xe65   : > { %12538 = vmatpush3.bf16.msra.mxu1 %v13547_v53 }
 0xe66   : > { %12539 = vmatprep.subr.bf16.mxu1 %v13548_v15  ;;  %v13580_v15 = vld [vmem:[%s16052_s6 + $0x7f8] sm:$0xff]  }
 0xe69   : > { %12540 = vmatpush3.bf16.msra.mxu1 %v13549_v8  ;;  %v13581_v8 = vld [vmem:[%s16052_s6 + $0x7b8] sm:$0xff]  }
 0xe6a   : > { %12541 = vmatprep.subr.bf16.mxu1 %v13550_v10  ;;  %v13582_v10 = vld [vmem:[%s16052_s6 + $0x7f0] sm:$0xff]  }
 0xe6d   : > { %12542 = vmatpush3.bf16.msra.mxu1 %v13551_v29  ;;  %v13583_v29 = vld [vmem:[%s16052_s6 + $0x7b0] sm:$0xff]  }
 0xe6e   : > { %12543 = vmatprep.subr.bf16.mxu1 %v13552_v17  ;;  %v13584_v17 = vld [vmem:[%s16052_s6 + $0x7e8] sm:$0xff]  }
 0xe71   : > { %12544 = vmatpush3.bf16.msra.mxu1 %v13553_v33  ;;  %v13585_v33 = vld [vmem:[%s16052_s6 + $0x7a8] sm:$0xff]  }
 0xe72   : > { %12545 = vmatprep.subr.bf16.mxu1 %v13554_v18  ;;  %v13586_v18 = vld [vmem:[%s16052_s6 + $0x7e0] sm:$0xff]  }
 0xe75   : > { %12546 = vmatpush3.bf16.msra.mxu1 %v13555_v16  ;;  %v13588_v16 = vld [vmem:[%s16052_s6 + $0x7d8] sm:$0xff]  }
 0xe76   : > { %12547 = vmatprep.subr.bf16.mxu1 %v13556_v19  ;;  %v13589_v19 = vld [vmem:[%s16052_s6 + $0x798] sm:$0xff]  }
 0xe79   : > { %12548 = vmatpush3.bf16.msra.mxu1 %v13557_v20  ;;  %v13590_v20 = vld [vmem:[%s16052_s6 + $0x7d0] sm:$0xff]  }
 0xe7a   : > { %12549 = vmatprep.subr.bf16.mxu1 %v13558_v21  ;;  %v13591_v21 = vld [vmem:[%s16052_s6 + $0x790] sm:$0xff]  }
 0xe7d   : > { %12550 = vmatpush3.bf16.msra.mxu1 %v13559_v22  ;;  %v13592_v22 = vld [vmem:[%s16052_s6 + $0x7c8] sm:$0xff]  }
 0xe80   : > { %6473 = vmatmul.mubr.bf16.vlgmr.msra.gmra.mxu1 %v14385_v13 }
 0xf20   : > { %v12878_v24 = vpop.f32.mrf.mxu1 }
 0xf21   : > { %v6309_v38 = vadd.f32 %v12878_v24, %v6064_v28  ;;  %v13576_v28 = vld [vmem:[%s16052_s6 + $0x740] sm:$0xff]  }
 0xf22   : > { %v6292_v9 = vpop.f32.mrf.mxu1  ;;  %v13594_v24 = vld [vmem:[%s16052_s6 + $0x7c0] sm:$0xff]  }
 0xf23   : > { %v6307_v25 = vadd.f32 %v6292_v9, %v6062_v62  ;;  %v13578_v62 = vld [vmem:[%s16053_s7 + $0xe0] sm:$0xff]   ;;  %v13596_v9 = vld [vmem:[%s16053_s7 + $0xf0] sm:$0xff]  }
 0xf24   : > { %v12879_v26 = vpop.f32.mrf.mxu1  ;;  %12888 = vmatprep.mubr.msk.bf16.mxu1 %vm3495_vm9, %v13578_v62  ;;  %v7046_v62 = vld [vmem:[%s16054_s8] sm:$0xff] }
 0xf25   : > { %v6310_v27 = vadd.f32 %v12879_v26, %v6065_v4 }
 0xf26   : > { %v6295_v2 = vpop.f32.mrf.mxu1 }
 0xf27   : > { %v6308_v61 = vadd.f32 %v6295_v2, %v15067_v59  ;;  %v13579_v59 = vld [vmem:[%s16053_s7 + $0xe8] sm:$0xff]  }
 0xf40   : > { %v12551_v37 = vpop.f32.mrf.mxu1 }
 0xf42   : > { %v12552_v31 = vpop.f32.mrf.mxu1 }
 0xf43   : > { %v12553_v11 = vadd.f32 %v12552_v31, %v12551_v37 }
 0xf44   : > { %v12554_v36 = vpop.f32.mrf.mxu1 }
 0xf46   : > { %v12555_v39 = vpop.f32.mrf.mxu1 }
 0xf47   : > { %v12556_v40 = vadd.f32 %v12555_v39, %v12554_v36 }
 0xf49   : > { %v6481_v42 = vpack.c.bf16 %v12556_v40, %v12553_v11 }
 0xf4b   : > { %12880 = vmatprep.subr.bf16.mxu0 %v6481_v42 }
 0xf4c   : > { %12881 = vmatpush3.bf16.msra.mxu0 %v6481_v42 }
 0xf4d   : > { %12560 = vmatprep.subr.bf16.mxu0 %v13562_v43 }
 0xf4f   : > { %12883 = vmatmul.mubr.msk.bf16.vlgmr.msra.gmra.mxu0 %vm3495_vm9, %v13561_v34 }
 0xf50   : > { %12561 = vmatpush3.bf16.msra.mxu0 %v13563_v35  ;;  %6717 = vmatprep.mubr.bf16.mxu0 %v14387_v47  ;;  %v13597_v35 = vld [vmem:[%s16053_s7 + $0xf8] sm:$0xff]  }
 0xf51   : > { %12562 = vmatprep.subr.bf16.mxu0 %v13564_v44 }
 0xf54   : > { %12563 = vmatpush3.bf16.msra.mxu0 %v13565_v45 }
 0xf55   : > { %12564 = vmatprep.subr.bf16.mxu0 %v13566_v41 }
 0xf58   : > { %12565 = vmatpush3.bf16.msra.mxu0 %v13567_v46 }
 0xf59   : > { %12566 = vmatprep.subr.bf16.mxu0 %v13568_v48 }
 0xf5c   : > { %12567 = vmatpush3.bf16.msra.mxu0 %v13569_v49 }
 0xf5d   : > { %12568 = vmatprep.subr.bf16.mxu0 %v13570_v50 }
 0xf60   : > { %12569 = vmatpush3.bf16.msra.mxu0 %v13571_v14 }
 0xf61   : > { %12570 = vmatprep.subr.bf16.mxu0 %v13572_v51 }
 0xf64   : > { %12571 = vmatpush3.bf16.msra.mxu0 %v13573_v30 }
 0xf65   : > { %12572 = vmatprep.subr.bf16.mxu0 %v13574_v52 }
 0xf68   : > { %12573 = vmatpush3.bf16.msra.mxu0 %v13575_v56 }
 0xf69   : > { %12574 = vmatprep.subr.bf16.mxu0 %v13576_v28 }
 0xf6c   : > { %12575 = vmatpush3.bf16.msra.mxu0 %v13577_v55  ;;  %v7047_v55 = vld [vmem:[%s16054_s8 + $0x8] sm:$0xff] }
 0xf6f   : > { %6718 = vmatmul.mubr.bf16.vlgmr.msra.gmra.mxu0 %v14385_v13 }
 0xf70   : > { %12894 = vmatprep.mubr.msk.bf16.mxu0 %vm3495_vm9, %v13596_v9  ;;  %v13600_v9 = vld [vmem:[%s16055_s9 + $0x10] sm:$0xff]  }
0x100f   : > { %v12884_v32 = vpop.f32.mrf.mxu0 }
0x1010   : > { %v6554_v58 = vadd.f32 %v12884_v32, %v6309_v38  ;;  %v13595_v38 = vld [vmem:[%s16052_s6 + $0x780] sm:$0xff]   ;;  %v7048_v32 = vld [vmem:[%s16054_s8 + $0x10] sm:$0xff] }
0x1011   : > { %v6537_v4 = vpop.f32.mrf.mxu0 }
0x1012   : > { %v6552_v12 = vadd.f32 %v6537_v4, %v6307_v25  ;;  %v11732_v4 = vld [vmem:[%s16054_s8 + $0x20] sm:$0xff] }
0x1013   : > { %v12885_v60 = vpop.f32.mrf.mxu0 }
0x1014   : > { %v6555_v63 = vadd.f32 %v12885_v60, %v6310_v27 }
0x1015   : > { %v6540_v54 = vpop.f32.mrf.mxu0 }
0x1016   : > { %v15186_v0 = vadd.f32 %v6540_v54, %v6308_v61 }
0x102f   : > { %v12576_v1 = vpop.f32.mrf.mxu0 }
0x1031   : > { %v12577_v3 = vpop.f32.mrf.mxu0 }
0x1032   : > { %v12578_v6 = vadd.f32 %v12577_v3, %v12576_v1 }
0x1033   : > { %v12579_v5 = vpop.f32.mrf.mxu0 }
0x1035   : > { %v12580_v57 = vpop.f32.mrf.mxu0 }
0x1036   : > { %v12581_v7 = vadd.f32 %v12580_v57, %v12579_v5 }
0x1038   : > { %v6726_v53 = vpack.c.bf16 %v12581_v7, %v12578_v6 }
0x103a   : > { %12886 = vmatprep.subr.bf16.mxu1 %v6726_v53 }
0x103b   : > { %12887 = vmatpush3.bf16.msra.mxu1 %v6726_v53 }
0x103c   : > { %12585 = vmatprep.subr.bf16.mxu1 %v13580_v15 }
0x103e   : > { %12889 = vmatmul.mubr.msk.bf16.vlgmr.msra.gmra.mxu1 %vm3495_vm9, %v13579_v59 }
0x103f   : > { %12586 = vmatpush3.bf16.msra.mxu1 %v13581_v8  ;;  %6962 = vmatprep.mubr.bf16.mxu1 %v14387_v47  ;;  %v13587_v47 = vld [vmem:[%s16052_s6 + $0x7a0] sm:$0xff]  }
0x1040   : > { %12587 = vmatprep.subr.bf16.mxu1 %v13582_v10 }
0x1043   : > { %12588 = vmatpush3.bf16.msra.mxu1 %v13583_v29 }
0x1044   : > { %12589 = vmatprep.subr.bf16.mxu1 %v13584_v17 }
0x1047   : > { %12590 = vmatpush3.bf16.msra.mxu1 %v13585_v33 }
0x1048   : > { %12591 = vmatprep.subr.bf16.mxu1 %v13586_v18 }
0x104b   : > { %12592 = vmatpush3.bf16.msra.mxu1 %v13587_v47  ;;  %v11735_v47 = vld [vmem:[%s16054_s8 + $0x38] sm:$0xff] }
0x104c   : > { %12593 = vmatprep.subr.bf16.mxu1 %v13588_v16  ;;  %v11734_v16 = vld [vmem:[%s16054_s8 + $0x30] sm:$0xff] }
0x104f   : > { %12594 = vmatpush3.bf16.msra.mxu1 %v13589_v19  ;;  %v10328_v19 = vld [vmem:[%s16057_s11] sm:$0xff] }
0x1050   : > { %12595 = vmatprep.subr.bf16.mxu1 %v13590_v20  ;;  %v10329_v20 = vld [vmem:[%s16057_s11 + $0x8] sm:$0xff] }
0x1053   : > { %12596 = vmatpush3.bf16.msra.mxu1 %v13591_v21  ;;  %v12200_v21 = vld [vmem:[%s16057_s11 + $0x40] sm:$0xff] }
0x1054   : > { %12597 = vmatprep.subr.bf16.mxu1 %v13592_v22  ;;  %v10330_v22 = vld [vmem:[%s16057_s11 + $0x10] sm:$0xff] }
0x1057   : > { %12598 = vmatpush3.bf16.msra.mxu1 %v13593_v23  ;;  %v13598_v23 = vld [vmem:[%s16055_s9 + $0x18] sm:$0xff]  }
0x1058   : > { %12599 = vmatprep.subr.bf16.mxu1 %v13594_v24  ;;  %v13599_v24 = vld [vmem:[%s16055_s9 + $0x38] sm:$0xff]  }
0x105b   : > { %12600 = vmatpush3.bf16.msra.mxu1 %v13595_v38  ;;  %v12201_v38 = vld [vmem:[%s16057_s11 + $0x48] sm:$0xff] }
0x105c   : > { %12910 = vmatprep.subr.bf16.mxu1 %v13599_v24 }
0x105e   : > { %6963 = vmatmul.mubr.bf16.vlgmr.msra.gmra.mxu1 %v14385_v13 }
0x105f   : > { %12911 = vmatpush3.bf16.msra.mxu1 %v13599_v24 }
0x10fe   : > { %v12890_v25 = vpop.f32.mrf.mxu1 }
0x10ff   : > { %v6799_v26 = vadd.f32 %v12890_v25, %v6554_v58  ;;  %v7049_v58 = vld [vmem:[%s16054_s8 + $0x18] sm:$0xff]  ;;  %v13601_v25 = vld [vmem:[%s16055_s9 + $0x30] sm:$0xff]  }
0x1100   : > { %v6782_v27 = vpop.f32.mrf.mxu1  ;;  %12912 = vmatprep.subr.bf16.mxu1 %v13601_v25 }
0x1101   : > { %v6797_v2 = vadd.f32 %v6782_v27, %v6552_v12  ;;  %v11733_v12 = vld [vmem:[%s16054_s8 + $0x28] sm:$0xff]  ;;  %12913 = vmatpush3.bf16.msra.mxu1 %v13601_v25 }
0x1102   : > { %v12891_v37 = vpop.f32.mrf.mxu1  ;;  %v13603_v27 = vld [vmem:[%s16055_s9 + $0x28] sm:$0xff]  }
0x1103   : > { %v6800_v31 = vadd.f32 %v12891_v37, %v6555_v63  ;;  %12914 = vmatprep.subr.bf16.mxu1 %v13603_v27  ;;  %v13605_v37 = vld [vmem:[%s16055_s9 + $0x20] sm:$0xff]  }
0x1104   : > { %v6785_v36 = vpop.f32.mrf.mxu1 }
0x1105   : > { %v6798_v48 = vadd.f32 %v6785_v36, %v15186_v0  ;;  %12915 = vmatpush3.bf16.msra.mxu1 %v13603_v27  ;;  %v13608_v27 = vld [vmem:[%s16056_s10 + $0x28] sm:$0xff]  }
0x1106   : > { %12916 = vmatprep.subr.bf16.mxu1 %v13605_v37 }
0x1109   : > { %12917 = vmatpush3.bf16.msra.mxu1 %v13605_v37  ;;  %v13612_v37 = vld [vmem:[%s16056_s10 + $0x30] sm:$0xff]  }
0x111e   : > { %v12601_v39 = vpop.f32.mrf.mxu1 }
0x1120   : > { %v12602_v11 = vpop.f32.mrf.mxu1 }
0x1121   : > { %v12603_v43 = vadd.f32 %v12602_v11, %v12601_v39 }
0x1122   : > { %v12604_v40 = vpop.f32.mrf.mxu1 }
0x1124   : > { %v12605_v42 = vpop.f32.mrf.mxu1 }
0x1125   : > { %v12606_v34 = vadd.f32 %v12605_v42, %v12604_v40 }
0x1127   : > { %v6971_v13 = vpack.c.bf16 %v12606_v34, %v12603_v43 }
0x1129   : > { %12892 = vmatprep.subr.bf16.mxu0 %v6971_v13 }
0x112a   : > { %12893 = vmatpush3.bf16.msra.mxu0 %v6971_v13 }
0x112b   : > { %12898 = vmatprep.subr.bf16.mxu0 %v13598_v23 }
0x112d   : > { %12895 = vmatmul.mubr.msk.bf16.vlgmr.msra.gmra.mxu0 %vm3495_vm9, %v13597_v35 }
0x112e   : > { %12899 = vmatpush3.bf16.msra.mxu0 %v13598_v23 }
0x112f   : > { %12900 = vmatprep.subr.bf16.mxu0 %v13600_v9 }
0x1132   : > { %12901 = vmatpush3.bf16.msra.mxu0 %v13600_v9 }
0x11ed   : > { %v12896_v44 = vpop.f32.mrf.mxu0 }
0x11ee   : > { %v7044_v49 = vadd.f32 %v12896_v44, %v6799_v26  ;;  %v13602_v26 = vld [vmem:[%s16055_s9 + $0x8] sm:$0xff]  }
0x11ef   : > { %v7027_v45 = vpop.f32.mrf.mxu0  ;;  %12902 = vmatprep.subr.bf16.mxu0 %v13602_v26 }
0x11f0   : > { %v7042_v41 = vadd.f32 %v7027_v45, %v6797_v2  ;;  %v7062_v56 = vsel %vm7055_vm10, %v7044_v49, 0.0  ;;  %12903 = vmatpush3.bf16.msra.mxu0 %v13602_v26  ;;  %v13604_v2 = vld [vmem:[%s16055_s9] sm:$0xff]   ;;  %v13610_v26 = vld [vmem:[%s16055_s9 + $0x58] sm:$0xff]  }
0x11f1   : > { %v12897_v46 = vpop.f32.mrf.mxu0  ;;  %12904 = vmatprep.subr.bf16.mxu0 %v13604_v2 }
0x11f2   : > { %v7056_v50 = vsel %vm7055_vm10, %v7042_v41, 0.0  ;;  %v7045_v30 = vadd.f32 %v12897_v46, %v6800_v31 }
0x11f3   : > { %v7030_v14 = vpop.f32.mrf.mxu0  ;;  %7057 = vadd.xlane.f32.xlu1 %v7056_v50 }
0x11f4   : > { %v7043_v51 = vadd.f32 %v7030_v14, %v6798_v48  ;;  %v7065_v28 = vsel %vm7055_vm10, %v7045_v30, 0.0  ;;  %12905 = vmatpush3.bf16.msra.mxu0 %v13604_v2  ;;  %v13609_v2 = vld [vmem:[%s16056_s10 + $0x8] sm:$0xff]  }
0x11f6   : > { %v7059_v52 = vsel %vm7055_vm10, %v7043_v51, 0.0 }
0x11f7   : > { %7060 = vadd.xlane.f32.xlu0 %v7059_v52  ;;  %7063 = vadd.xlane.f32.xlu1 %v7062_v56 }
0x11fb   : > { %7066 = vadd.xlane.f32.xlu1 %v7065_v28 }
0x120c   : > { %7116 = vperm.xlu1 %13293, %v7047_v55  }
0x120d   : > { %7111 = vperm.xlu0 %13292, %v7046_v62  }
0x1210   : > { %7121 = vperm.xlu1 %13293, %v7048_v32  }
0x1211   : > { %7126 = vperm.xlu0 %13292, %v7049_v58  }
0x1214   : > { %7135 = vperm.xlu1 %13293, %v11732_v4  }
0x1215   : > { %7140 = vperm.xlu0 %13292, %v11733_v12  }
0x127c   : > { %v7058_v60 = vpop.xlane.xlu1 %7057 }
0x127d   : > { %v7069_v61 = vmul.f32 0.015625, %v7058_v60 }
0x127f   : > { %v15273_v63 = vsub.f32 %v7042_v41, %v7069_v61 }
0x1280   : > { %v7061_v54 = vpop.xlane.xlu0 %7060  ;;  %v7064_v0 = vpop.xlane.xlu1 %7063 }
0x1281   : > { %v7071_v1 = vmul.f32 0.015625, %v7064_v0  ;;  %v7077_v3 = vmul.f32 %v15273_v63, %v15273_v63  ;;  %v7070_v5 = vmul.f32 0.015625, %v7061_v54 }
0x1283   : > { %v15277_v57 = vsub.f32 %v7044_v49, %v7071_v1  ;;  %v7081_v6 = vsel %vm7055_vm10, %v7077_v3, 0.0  ;;  %v15282_v59 = vsub.f32 %v7043_v51, %v7070_v5 }
0x1284   : > { %7082 = vadd.xlane.f32.xlu1 %v7081_v6  ;;  %v7067_v7 = vpop.xlane.xlu1 %7066 }
0x1285   : > { %v7072_v53 = vmul.f32 0.015625, %v7067_v7  ;;  %v7079_v15 = vmul.f32 %v15277_v57, %v15277_v57  ;;  %v7078_v33 = vmul.f32 %v15282_v59, %v15282_v59 }
0x1287   : > { %v15284_v8 = vsub.f32 %v7045_v30, %v7072_v53  ;;  %v7087_v10 = vsel %vm7055_vm10, %v7079_v15, 0.0  ;;  %v7084_v18 = vsel %vm7055_vm10, %v7078_v33, 0.0  ;;  %v13607_v33 = vld [vmem:[%s16056_s10] sm:$0xff]  }
0x1288   : > { %7088 = vadd.xlane.f32.xlu0 %v7087_v10  ;;  %v7117_v31 = vpop.permute.xlu1 %7116  ;;  %v7112_v36 = vpop.permute.xlu0 %7111 }
0x1289   : > { %v7080_v29 = vmul.f32 %v15284_v8, %v15284_v8 }
0x128b   : > { %v7090_v17 = vsel %vm7055_vm10, %v7080_v29, 0.0 }
0x128c   : > { %7091 = vadd.xlane.f32.xlu1 %v7090_v17  ;;  %v7122_v39 = vpop.permute.xlu1 %7121  ;;  %v7127_v11 = vpop.permute.xlu0 %7126 }
0x1290   : > { %7085 = vadd.xlane.f32.xlu1 %v7084_v18  ;;  %v7136_v40 = vpop.permute.xlu1 %7135  ;;  %v7141_v42 = vpop.permute.xlu0 %7140 }
0x129e   : > { %7150 = vperm.xlu0 %13292, %v11735_v47  }
0x12a1   : > { %7145 = vperm.xlu1 %13293, %v11734_v16  }
0x12a2   : > { %10452 = vperm.xlu0 %13292, %v10328_v19  }
0x12a5   : > { %10457 = vperm.xlu1 %13293, %v10329_v20  }
0x12a6   : > { %10500 = vperm.xlu0 %13292, %v12200_v21  }
0x12a9   : > { %10462 = vperm.xlu1 %13293, %v10330_v22  }
0x12ad   : > { %10505 = vperm.xlu1 %13293, %v12201_v38  }
0x130d   : > { %v7083_v43 = vpop.xlane.xlu1 %7082 }
0x130e   : > { %v7093_v34 = vmul.f32 0.015625, %v7083_v43  ;;  %v13618_v43 = vld [vmem:[%s16055_s9 + $0x78] sm:$0xff]  }
0x1310   : > { %v7097_v13 = vadd.f32 1e-05, %v7093_v34  ;;  %v13619_v34 = vld [vmem:[%s16055_s9 + $0x70] sm:$0xff]  }
0x1311   : > { %v7089_v35 = vpop.xlane.xlu0 %7088 }
0x1312   : > { %v7095_v44 = vmul.f32 0.015625, %v7089_v35  ;;  %13730 = vrsqrt.f32 %v7097_v13  ;;  %v13620_v13 = vld [vmem:[%s16055_s9 + $0x68] sm:$0xff]   ;;  %v13621_v35 = vld [vmem:[%s16055_s9 + $0x60] sm:$0xff]  }
0x1314   : > { %v7099_v45 = vadd.f32 1e-05, %v7095_v44  ;;  %v13622_v44 = vld [vmem:[%s16055_s9 + $0x98] sm:$0xff]  }
0x1315   : > { %v7092_v41 = vpop.xlane.xlu1 %7091 }
0x1316   : > { %13732 = vrsqrt.f32 %v7099_v45  ;;  %v7096_v46 = vmul.f32 0.015625, %v7092_v41  ;;  %v13623_v45 = vld [vmem:[%s16055_s9 + $0x90] sm:$0xff]   ;;  %v13624_v41 = vld [vmem:[%s16055_s9 + $0x88] sm:$0xff]  }
0x1318   : > { %v7100_v48 = vadd.f32 1e-05, %v7096_v46  ;;  %v13625_v46 = vld [vmem:[%s16055_s9 + $0x80] sm:$0xff]  }
0x1319   : > { %v7086_v49 = vpop.xlane.xlu1 %7085  ;;  %v7151_v12 = vpop.permute.xlu0 %7150 }
0x131a   : > { %13734 = vrsqrt.f32 %v7100_v48  ;;  %v7094_v50 = vmul.f32 0.015625, %v7086_v49  ;;  %v13626_v48 = vld [vmem:[%s16055_s9 + $0xb8] sm:$0xff]   ;;  %v13627_v49 = vld [vmem:[%s16055_s9 + $0xb0] sm:$0xff]  }
0x131c   : > { %v7098_v14 = vadd.f32 1e-05, %v7094_v50  ;;  %v13628_v50 = vld [vmem:[%s16055_s9 + $0xa8] sm:$0xff]  }
0x131d   : > { %v7146_v0 = vpop.permute.xlu1 %7145 }
0x131e   : > { %13736 = vrsqrt.f32 %v7098_v14  ;;  %v13629_v14 = vld [vmem:[%s16055_s9 + $0xa0] sm:$0xff]  }
0x131f   : > { %v13731_v51 = vpop.eup %13730 }
0x1320   : > { %v7105_v52 = vmul.f32 %v13731_v51, %v15273_v63  ;;  %v13630_v51 = vld [vmem:[%s16055_s9 + $0xd8] sm:$0xff]  }
0x1322   : > { %v7129_v55 = vmul.f32 %v7112_v36, %v7105_v52  ;;  %v13613_v36 = vld [vmem:[%s16056_s10 + $0x10] sm:$0xff]   ;;  %v13632_v52 = vld [vmem:[%s16055_s9 + $0xc8] sm:$0xff]  }
0x1323   : > { %v13733_v30 = vpop.eup %13732 }
0x1324   : > { %v7107_v56 = vmul.f32 %v13733_v30, %v15277_v57  ;;  %v7153_v60 = vadd.f32 %v7136_v40, %v7129_v55  ;;  %v13615_v40 = vld [vmem:[%s16056_s10 + $0x18] sm:$0xff]   ;;  %v13631_v30 = vld [vmem:[%s16055_s9 + $0xd0] sm:$0xff]  }
0x1325   : > { %v13635_v55 = vld [vmem:[%s16055_s9 + $0xf0] sm:$0xff]  }
0x1326   : > { %v7131_v32 = vmul.f32 %v7122_v39, %v7107_v56  ;;  %v7161_v6 = vmul.f32 0.2, %v7153_v60  ;;  %vm7157_vm12 = vcmp.ge.f32.partialorder %v7153_v60, 0.0  ;;  %v13616_v39 = vld [vmem:[%s16055_s9 + $0x48] sm:$0xff]   ;;  %v13633_v56 = vld [vmem:[%s16055_s9 + $0xc0] sm:$0xff]  }
0x1327   : > { %v13735_v28 = vpop.eup %13734 }
0x1328   : > { %v7108_v62 = vmul.f32 %v13735_v28, %v15284_v8  ;;  %v7155_v1 = vadd.f32 %v7146_v0, %v7131_v32  ;;  %v7165_v15 = vsel %vm7157_vm12, %v7153_v60, %v7161_v6  ;;  %v13634_v28 = vld [vmem:[%s16055_s9 + $0xf8] sm:$0xff]   ;;  %v13637_v32 = vld [vmem:[%s16055_s9 + $0xe0] sm:$0xff]   ;;  %v13640_v60 = vld [vmem:[%s16055_s9 + $0x108] sm:$0xff]  }
0x1329   : > { %v13643_v0 = vld [vmem:[%s16055_s9 + $0x130] sm:$0xff]  }
0x132a   : > { %v7132_v58 = vmul.f32 %v7127_v11, %v7108_v62  ;;  %v7163_v57 = vmul.f32 0.2, %v7155_v1  ;;  %vm7159_vm14 = vcmp.ge.f32.partialorder %v7155_v1, 0.0  ;;  %v13614_v11 = vld [vmem:[%s16056_s10 + $0x38] sm:$0xff]   ;;  %v13636_v62 = vld [vmem:[%s16055_s9 + $0xe8] sm:$0xff]   ;;  %v13647_v6 = vld [vmem:[%s16055_s9 + $0x150] sm:$0xff]  }
0x132b   : > { %v13737_v4 = vpop.eup %13736 }
0x132c   : > { %v7156_v61 = vadd.f32 %v7151_v12, %v7132_v58  ;;  %v7106_v54 = vmul.f32 %v13737_v4, %v15282_v59  ;;  %v7167_v29 = vsel %vm7159_vm14, %v7155_v1, %v7163_v57  ;;  %v13606_v59 = vld [vmem:[%s16056_s10 + $0x20] sm:$0xff]   ;;  %v13638_v58 = vld [vmem:[%s16055_s9 + $0x118] sm:$0xff]   ;;  %v13639_v12 = vld [vmem:[%s16055_s9 + $0x110] sm:$0xff]  }
0x132d   : > { %v13670_v4 = vld [vmem:[%s16056_s10 + $0x40] sm:$0xff]   ;;  %v13644_v1 = vld [vmem:[%s16055_s9 + $0x128] sm:$0xff]  }
0x132e   : > { %v7130_v3 = vmul.f32 %v7117_v31, %v7106_v54  ;;  %v7164_v5 = vmul.f32 0.2, %v7156_v61  ;;  %vm7160_vm11 = vcmp.ge.f32.partialorder %v7156_v61, 0.0  ;;  %v13611_v31 = vld [vmem:[%s16055_s9 + $0x50] sm:$0xff]   ;;  %v13642_v54 = vld [vmem:[%s16055_s9 + $0x138] sm:$0xff]   ;;  %v13649_v57 = vld [vmem:[%s16055_s9 + $0x140] sm:$0xff]  }
0x1330   : > { %v7154_v63 = vadd.f32 %v7141_v42, %v7130_v3  ;;  %v7168_v53 = vsel %vm7160_vm11, %v7156_v61, %v7164_v5  ;;  %v13617_v42 = vld [vmem:[%s16055_s9 + $0x40] sm:$0xff]   ;;  %v13646_v5 = vld [vmem:[%s16055_s9 + $0x158] sm:$0xff]  }
0x1331   : > { %v15344_v17 = vpack.c.bf16 %v7168_v53, %v7167_v29  ;;  %v13641_v61 = vld [vmem:[%s16055_s9 + $0x100] sm:$0xff]   ;;  %v13651_v53 = vld [vmem:[%s16055_s9 + $0x170] sm:$0xff]   ;;  %v13654_v29 = vld [vmem:[%s16055_s9 + $0x198] sm:$0xff]  }
0x1332   : > { %vm7158_vm13 = vcmp.ge.f32.partialorder %v7154_v63, 0.0  ;;  %v7162_v7 = vmul.f32 0.2, %v7154_v63  ;;  %v13645_v3 = vld [vmem:[%s16055_s9 + $0x120] sm:$0xff]  }
0x1334   : > { %v7166_v8 = vsel %vm7158_vm13, %v7154_v63, %v7162_v7  ;;  %v13648_v63 = vld [vmem:[%s16055_s9 + $0x148] sm:$0xff]   ;;  %v13650_v7 = vld [vmem:[%s16055_s9 + $0x178] sm:$0xff]  }
0x1335   : > { %v15342_v10 = vpack.c.bf16 %v7166_v8, %v7165_v15  ;;  %v13652_v15 = vld [vmem:[%s16055_s9 + $0x168] sm:$0xff]   ;;  %v13653_v8 = vld [vmem:[%s16055_s9 + $0x160] sm:$0xff]  }
0x1337   : > { %12906 = vmatprep.mubr.msk.bf16.mxu0 %vm7055_vm10, %v15342_v10  ;;  %12918 = vmatprep.mubr.msk.bf16.mxu1 %vm7055_vm10, %v15342_v10 }
0x1338   : > { %12907 = vmatmul.mubr.msk.bf16.vlgmr.msra.gmra.mxu0 %vm7055_vm10, %v15344_v17  ;;  %12919 = vmatmul.mubr.msk.bf16.vlgmr.msra.gmra.mxu1 %vm7055_vm10, %v15344_v17 }
0x1339   : > { %12926 = vmatprep.mubr.msk.bf16.mxu0 %vm7381_vm15, %v13606_v59  ;;  %12938 = vmatprep.mubr.msk.bf16.mxu1 %vm7381_vm15, %v13607_v33  ;;  %v13655_v59 = vld [vmem:[%s16055_s9 + $0x190] sm:$0xff]   ;;  %v13656_v33 = vld [vmem:[%s16055_s9 + $0x188] sm:$0xff]  }
0x13f8   : > { %v12908_v18 = vpop.f32.mrf.mxu0  ;;  %v12920_v47 = vpop.f32.mrf.mxu1 }
0x13fa   : > { %v7243_v16 = vpop.f32.mrf.mxu0  ;;  %v7335_v19 = vpop.f32.mrf.mxu1 }
0x13fc   : > { %v12909_v20 = vpop.f32.mrf.mxu0  ;;  %v12921_v21 = vpop.f32.mrf.mxu1 }
0x13fd   : > { %v7259_v22 = vpack.c.bf16 %v12909_v20, %v12908_v18  ;;  %v7351_v23 = vpack.c.bf16 %v12921_v21, %v12920_v47  ;;  %v13657_v18 = vld [vmem:[%s16055_s9 + $0x180] sm:$0xff]   ;;  %v13658_v47 = vld [vmem:[%s16055_s9 + $0x1b8] sm:$0xff]  }
0x13fe   : > { %v7246_v24 = vpop.f32.mrf.mxu0  ;;  %v7338_v38 = vpop.f32.mrf.mxu1  ;;  %v13661_v20 = vld [vmem:[%s16055_s9 + $0x1a0] sm:$0xff]   ;;  %v13662_v21 = vld [vmem:[%s16055_s9 + $0x1d8] sm:$0xff]  }
0x13ff   : > { %v7258_v9 = vpack.c.bf16 %v7246_v24, %v7243_v16  ;;  %v7350_v25 = vpack.c.bf16 %v7338_v38, %v7335_v19  ;;  %12922 = vmatprep.subr.bf16.mxu0 %v7351_v23  ;;  %12934 = vmatprep.subr.bf16.mxu1 %v7259_v22  ;;  %v13659_v16 = vld [vmem:[%s16055_s9 + $0x1b0] sm:$0xff]   ;;  %v13660_v19 = vld [vmem:[%s16055_s9 + $0x1a8] sm:$0xff]  }
0x1400   : > { %12923 = vmatpush3.bf16.msra.mxu0 %v7351_v23  ;;  %12935 = vmatpush3.bf16.msra.mxu1 %v7259_v22  ;;  %v13663_v22 = vld [vmem:[%s16055_s9 + $0x1d0] sm:$0xff]  }
0x1401   : > { %12924 = vmatprep.subr.bf16.mxu0 %v7350_v25  ;;  %12936 = vmatprep.subr.bf16.mxu1 %v7258_v9 }
0x1404   : > { %12925 = vmatpush3.bf16.msra.mxu0 %v7350_v25  ;;  %12937 = vmatpush3.bf16.msra.mxu1 %v7258_v9 }
0x1405   : > { %12946 = vmatprep.subr.bf16.mxu0 %v13610_v26 }
0x1407   : > { %12927 = vmatmul.mubr.msk.bf16.vlgmr.msra.gmra.mxu0 %vm7381_vm15, %v13608_v27  ;;  %12939 = vmatmul.mubr.msk.bf16.vlgmr.msra.gmra.mxu1 %vm7381_vm15, %v13609_v2 }
0x1408   : > { %12947 = vmatpush3.bf16.msra.mxu0 %v13610_v26  ;;  %12930 = vmatprep.mubr.msk.bf16.mxu0 %vm7381_vm15, %v13612_v37  ;;  %v13664_v26 = vld [vmem:[%s16055_s9 + $0x1c8] sm:$0xff]  }
0x1409   : > { %12948 = vmatprep.subr.bf16.mxu0 %v13611_v31  ;;  %12942 = vmatprep.mubr.msk.bf16.mxu1 %vm7381_vm15, %v13613_v36 }
0x140c   : > { %12949 = vmatpush3.bf16.msra.mxu0 %v13611_v31 }
0x140d   : > { %12950 = vmatprep.subr.bf16.mxu0 %v13616_v39 }
0x140f   : > { %12931 = vmatmul.mubr.msk.bf16.gmra.mxu0 %vm7381_vm15, %v13614_v11  ;;  %12943 = vmatmul.mubr.msk.bf16.gmra.mxu1 %vm7381_vm15, %v13615_v40  ;;  %v13665_v11 = vld [vmem:[%s16055_s9 + $0x1c0] sm:$0xff]  }
0x1410   : > { %12951 = vmatpush3.bf16.msra.mxu0 %v13616_v39  ;;  %12954 = vmatprep.mubr.msk.bf16.mxu0 %vm7055_vm10, %v15342_v10 }
0x1411   : > { %12952 = vmatprep.subr.bf16.mxu0 %v13617_v42  ;;  %12962 = vmatprep.mubr.msk.bf16.mxu1 %vm7381_vm15, %v13670_v4  ;;  %v13673_v4 = vld [vmem:[%s16056_s10 + $0x58] sm:$0xff]  }
0x1414   : > { %12953 = vmatpush3.bf16.msra.mxu0 %v13617_v42 }
0x1415   : > { %12970 = vmatprep.subr.bf16.mxu0 %v13618_v43 }
0x1417   : > { %12955 = vmatmul.mubr.msk.bf16.vlgmr.msra.gmra.mxu0 %vm7055_vm10, %v15344_v17 }
0x1418   : > { %12971 = vmatpush3.bf16.msra.mxu0 %v13618_v43  ;;  %12978 = vmatprep.mubr.msk.bf16.mxu0 %vm7055_vm10, %v15342_v10 }
0x1419   : > { %12972 = vmatprep.subr.bf16.mxu0 %v13619_v34 }
0x141c   : > { %12973 = vmatpush3.bf16.msra.mxu0 %v13619_v34 }
0x141d   : > { %12974 = vmatprep.subr.bf16.mxu0 %v13620_v13 }
0x1420   : > { %12975 = vmatpush3.bf16.msra.mxu0 %v13620_v13 }
0x1421   : > { %12976 = vmatprep.subr.bf16.mxu0 %v13621_v35 }
0x1424   : > { %12977 = vmatpush3.bf16.msra.mxu0 %v13621_v35  ;;  %v13666_v35 = vld [vmem:[%s16055_s9 + $0x1f8] sm:$0xff]  }
0x1425   : > { %12994 = vmatprep.subr.bf16.mxu0 %v13622_v44 }
0x1427   : > { %12979 = vmatmul.mubr.msk.bf16.vlgmr.msra.gmra.mxu0 %vm7055_vm10, %v15344_v17 }
0x1428   : > { %12995 = vmatpush3.bf16.msra.mxu0 %v13622_v44  ;;  %13002 = vmatprep.mubr.msk.bf16.mxu0 %vm7055_vm10, %v15342_v10 }
0x1429   : > { %12996 = vmatprep.subr.bf16.mxu0 %v13623_v45 }
0x142c   : > { %12997 = vmatpush3.bf16.msra.mxu0 %v13623_v45 }
0x142d   : > { %12998 = vmatprep.subr.bf16.mxu0 %v13624_v41 }
0x1430   : > { %12999 = vmatpush3.bf16.msra.mxu0 %v13624_v41 }
0x1431   : > { %13000 = vmatprep.subr.bf16.mxu0 %v13625_v46 }
0x1434   : > { %13001 = vmatpush3.bf16.msra.mxu0 %v13625_v46 }
0x1435   : > { %13018 = vmatprep.subr.bf16.mxu0 %v13626_v48 }
0x1437   : > { %13003 = vmatmul.mubr.msk.bf16.vlgmr.msra.gmra.mxu0 %vm7055_vm10, %v15344_v17 }
0x1438   : > { %13019 = vmatpush3.bf16.msra.mxu0 %v13626_v48  ;;  %13026 = vmatprep.mubr.msk.bf16.mxu0 %vm7055_vm10, %v15342_v10 }
0x1439   : > { %13020 = vmatprep.subr.bf16.mxu0 %v13627_v49 }
0x143c   : > { %13021 = vmatpush3.bf16.msra.mxu0 %v13627_v49  ;;  %v13667_v49 = vld [vmem:[%s16055_s9 + $0x1f0] sm:$0xff]  }
0x143d   : > { %13022 = vmatprep.subr.bf16.mxu0 %v13628_v50 }
0x1440   : > { %13023 = vmatpush3.bf16.msra.mxu0 %v13628_v50 }
0x1441   : > { %13024 = vmatprep.subr.bf16.mxu0 %v13629_v14 }
0x1444   : > { %13025 = vmatpush3.bf16.msra.mxu0 %v13629_v14 }
0x1445   : > { %13042 = vmatprep.subr.bf16.mxu0 %v13630_v51 }
0x1447   : > { %13027 = vmatmul.mubr.msk.bf16.vlgmr.msra.gmra.mxu0 %vm7055_vm10, %v15344_v17 }
0x1448   : > { %13043 = vmatpush3.bf16.msra.mxu0 %v13630_v51  ;;  %13050 = vmatprep.mubr.msk.bf16.mxu0 %vm7055_vm10, %v15342_v10  ;;  %v13668_v51 = vld [vmem:[%s16055_s9 + $0x1e8] sm:$0xff]  }
0x1449   : > { %13044 = vmatprep.subr.bf16.mxu0 %v13631_v30 }
0x144c   : > { %13045 = vmatpush3.bf16.msra.mxu0 %v13631_v30 }
0x144d   : > { %13046 = vmatprep.subr.bf16.mxu0 %v13632_v52 }
0x1450   : > { %13047 = vmatpush3.bf16.msra.mxu0 %v13632_v52 }
0x1451   : > { %13048 = vmatprep.subr.bf16.mxu0 %v13633_v56 }
0x1454   : > { %13049 = vmatpush3.bf16.msra.mxu0 %v13633_v56 }
0x1455   : > { %13066 = vmatprep.subr.bf16.mxu0 %v13634_v28 }
0x1457   : > { %13051 = vmatmul.mubr.msk.bf16.vlgmr.msra.gmra.mxu0 %vm7055_vm10, %v15344_v17 }
0x1458   : > { %13067 = vmatpush3.bf16.msra.mxu0 %v13634_v28  ;;  %13074 = vmatprep.mubr.msk.bf16.mxu0 %vm7055_vm10, %v15342_v10  ;;  %v13669_v28 = vld [vmem:[%s16055_s9 + $0x1e0] sm:$0xff]  }
0x1459   : > { %13068 = vmatprep.subr.bf16.mxu0 %v13635_v55 }
0x145c   : > { %13069 = vmatpush3.bf16.msra.mxu0 %v13635_v55 }
0x145d   : > { %13070 = vmatprep.subr.bf16.mxu0 %v13636_v62 }
0x1460   : > { %13071 = vmatpush3.bf16.msra.mxu0 %v13636_v62  ;;  %v13672_v62 = vld [vmem:[%s16056_s10 + $0x50] sm:$0xff]  }
0x1461   : > { %13072 = vmatprep.subr.bf16.mxu0 %v13637_v32 }
0x1464   : > { %13073 = vmatpush3.bf16.msra.mxu0 %v13637_v32 }
0x1465   : > { %13090 = vmatprep.subr.bf16.mxu0 %v13638_v58 }
0x1467   : > { %13075 = vmatmul.mubr.msk.bf16.vlgmr.msra.gmra.mxu0 %vm7055_vm10, %v15344_v17 }
0x1468   : > { %13091 = vmatpush3.bf16.msra.mxu0 %v13638_v58  ;;  %13098 = vmatprep.mubr.msk.bf16.mxu0 %vm7055_vm10, %v15342_v10 }
0x1469   : > { %13092 = vmatprep.subr.bf16.mxu0 %v13639_v12 }
0x146c   : > { %13093 = vmatpush3.bf16.msra.mxu0 %v13639_v12 }
0x146d   : > { %13094 = vmatprep.subr.bf16.mxu0 %v13640_v60 }
0x1470   : > { %13095 = vmatpush3.bf16.msra.mxu0 %v13640_v60  ;;  %v13674_v60 = vld [vmem:[%s16056_s10 + $0x60] sm:$0xff]  }
0x1471   : > { %13096 = vmatprep.subr.bf16.mxu0 %v13641_v61 }
0x1474   : > { %13097 = vmatpush3.bf16.msra.mxu0 %v13641_v61 }
0x1475   : > { %13114 = vmatprep.subr.bf16.mxu0 %v13642_v54 }
0x1477   : > { %13099 = vmatmul.mubr.msk.bf16.vlgmr.msra.gmra.mxu0 %vm7055_vm10, %v15344_v17 }
0x1478   : > { %13115 = vmatpush3.bf16.msra.mxu0 %v13642_v54  ;;  %13122 = vmatprep.mubr.msk.bf16.mxu0 %vm7055_vm10, %v15342_v10 }
0x1479   : > { %13116 = vmatprep.subr.bf16.mxu0 %v13643_v0 }
0x147c   : > { %13117 = vmatpush3.bf16.msra.mxu0 %v13643_v0 }
0x147d   : > { %13118 = vmatprep.subr.bf16.mxu0 %v13644_v1 }
0x1480   : > { %13119 = vmatpush3.bf16.msra.mxu0 %v13644_v1  ;;  %v13676_v1 = vld [vmem:[%s16056_s10 + $0x70] sm:$0xff]  }
0x1481   : > { %13120 = vmatprep.subr.bf16.mxu0 %v13645_v3 }
0x1484   : > { %13121 = vmatpush3.bf16.msra.mxu0 %v13645_v3 }
0x1485   : > { %13138 = vmatprep.subr.bf16.mxu0 %v13646_v5 }
0x1487   : > { %13123 = vmatmul.mubr.msk.bf16.vlgmr.msra.gmra.mxu0 %vm7055_vm10, %v15344_v17 }
0x1488   : > { %13139 = vmatpush3.bf16.msra.mxu0 %v13646_v5  ;;  %13146 = vmatprep.mubr.msk.bf16.mxu0 %vm7055_vm10, %v15342_v10 }
0x1489   : > { %13140 = vmatprep.subr.bf16.mxu0 %v13647_v6 }
0x148c   : > { %13141 = vmatpush3.bf16.msra.mxu0 %v13647_v6  ;;  %v13677_v6 = vld [vmem:[%s16056_s10 + $0x78] sm:$0xff]  }
0x148d   : > { %13142 = vmatprep.subr.bf16.mxu0 %v13648_v63 }
0x1490   : > { %13143 = vmatpush3.bf16.msra.mxu0 %v13648_v63 }
0x1491   : > { %13144 = vmatprep.subr.bf16.mxu0 %v13649_v57 }
0x1494   : > { %13145 = vmatpush3.bf16.msra.mxu0 %v13649_v57  ;;  %v13678_v57 = vld [vmem:[%s16056_s10 + $0x80] sm:$0xff]  }
0x1495   : > { %13162 = vmatprep.subr.bf16.mxu0 %v13650_v7 }
0x1497   : > { %13147 = vmatmul.mubr.msk.bf16.vlgmr.msra.gmra.mxu0 %vm7055_vm10, %v15344_v17 }
0x1498   : > { %13163 = vmatpush3.bf16.msra.mxu0 %v13650_v7  ;;  %13170 = vmatprep.mubr.msk.bf16.mxu0 %vm7055_vm10, %v15342_v10 }
0x1499   : > { %13164 = vmatprep.subr.bf16.mxu0 %v13651_v53 }
0x149c   : > { %13165 = vmatpush3.bf16.msra.mxu0 %v13651_v53 }
0x149d   : > { %13166 = vmatprep.subr.bf16.mxu0 %v13652_v15 }
0x14a0   : > { %13167 = vmatpush3.bf16.msra.mxu0 %v13652_v15 }
0x14a1   : > { %13168 = vmatprep.subr.bf16.mxu0 %v13653_v8 }
0x14a4   : > { %13169 = vmatpush3.bf16.msra.mxu0 %v13653_v8  ;;  %v13679_v8 = vld [vmem:[%s16056_s10 + $0x88] sm:$0xff]  }
0x14a5   : > { %13186 = vmatprep.subr.bf16.mxu0 %v13654_v29 }
0x14a7   : > { %13171 = vmatmul.mubr.msk.bf16.vlgmr.msra.gmra.mxu0 %vm7055_vm10, %v15344_v17 }
0x14a8   : > { %13187 = vmatpush3.bf16.msra.mxu0 %v13654_v29  ;;  %13194 = vmatprep.mubr.msk.bf16.mxu0 %vm7055_vm10, %v15342_v10  ;;  %v13680_v29 = vld [vmem:[%s16056_s10 + $0x90] sm:$0xff]  }
0x14a9   : > { %13188 = vmatprep.subr.bf16.mxu0 %v13655_v59 }
0x14ac   : > { %13189 = vmatpush3.bf16.msra.mxu0 %v13655_v59 }
0x14ad   : > { %13190 = vmatprep.subr.bf16.mxu0 %v13656_v33 }
0x14b0   : > { %13191 = vmatpush3.bf16.msra.mxu0 %v13656_v33 }
0x14b1   : > { %13192 = vmatprep.subr.bf16.mxu0 %v13657_v18 }
0x14b4   : > { %13193 = vmatpush3.bf16.msra.mxu0 %v13657_v18  ;;  %v13681_v18 = vld [vmem:[%s16056_s10 + $0x98] sm:$0xff]  }
0x14b5   : > { %13210 = vmatprep.subr.bf16.mxu0 %v13658_v47 }
0x14b7   : > { %13195 = vmatmul.mubr.msk.bf16.vlgmr.msra.gmra.mxu0 %vm7055_vm10, %v15344_v17 }
0x14b8   : > { %13211 = vmatpush3.bf16.msra.mxu0 %v13658_v47  ;;  %13218 = vmatprep.mubr.msk.bf16.mxu0 %vm7055_vm10, %v15342_v10 }
0x14b9   : > { %13212 = vmatprep.subr.bf16.mxu0 %v13659_v16 }
0x14bc   : > { %13213 = vmatpush3.bf16.msra.mxu0 %v13659_v16  ;;  %v13682_v16 = vld [vmem:[%s16056_s10 + $0xa0] sm:$0xff]  }
0x14bd   : > { %13214 = vmatprep.subr.bf16.mxu0 %v13660_v19 }
0x14c0   : > { %13215 = vmatpush3.bf16.msra.mxu0 %v13660_v19 }
0x14c1   : > { %13216 = vmatprep.subr.bf16.mxu0 %v13661_v20 }
0x14c4   : > { %13217 = vmatpush3.bf16.msra.mxu0 %v13661_v20 }
0x14c5   : > { %13234 = vmatprep.subr.bf16.mxu0 %v13662_v21 }
0x14c7   : > { %v12928_v23 = vpop.f32.mrf.mxu0  ;;  %v12940_v24 = vpop.f32.mrf.mxu1  ;;  %13219 = vmatmul.mubr.msk.bf16.vlgmr.msra.gmra.mxu0 %vm7055_vm10, %v15344_v17 }
0x14c8   : > { %v15588_v38 = vadd.f32 %v12940_v24, %v12928_v23  ;;  %13235 = vmatpush3.bf16.msra.mxu0 %v13662_v21  ;;  %13242 = vmatprep.mubr.msk.bf16.mxu0 %vm7055_vm10, %v15342_v10  ;;  %v13684_v23 = vld [vmem:[%s16056_s10 + $0xb0] sm:$0xff]  }
0x14c9   : > { %v7428_v9 = vpop.f32.mrf.mxu0  ;;  %v7525_v25 = vpop.f32.mrf.mxu1  ;;  %13236 = vmatprep.subr.bf16.mxu0 %v13663_v22 }
0x14ca   : > { %v15595_v27 = vadd.f32 %v7525_v25, %v7428_v9  ;;  %v13685_v25 = vld [vmem:[%s16056_s10 + $0xb8] sm:$0xff]  }
0x14cb   : > { %v12929_v2 = vpop.f32.mrf.mxu0  ;;  %v12941_v37 = vpop.f32.mrf.mxu1 }
0x14cc   : > { %v15597_v31 = vadd.f32 %v12941_v37, %v12929_v2  ;;  %13237 = vmatpush3.bf16.msra.mxu0 %v13663_v22  ;;  %v13683_v22 = vld [vmem:[%s16056_s10 + $0xa8] sm:$0xff]   ;;  %v13686_v2 = vld [vmem:[%s16056_s10 + $0xc0] sm:$0xff]  }
0x14cd   : > { %v15599_v36 = vpop.f32.mrf.mxu0  ;;  %v15601_v39 = vpop.f32.mrf.mxu1  ;;  %13238 = vmatprep.subr.bf16.mxu0 %v13664_v26 }
0x14cf   : > { %v12932_v40 = vpop.f32.mrf.mxu0  ;;  %v12944_v42 = vpop.f32.mrf.mxu1 }
0x14d0   : > { %v15606_v43 = vadd.f32 %v12944_v42, %v12932_v40  ;;  %13239 = vmatpush3.bf16.msra.mxu0 %v13664_v26  ;;  %v13687_v42 = vld [vmem:[%s16056_s10 + $0xc8] sm:$0xff]  }
0x14d1   : > { %v7444_v34 = vpop.f32.mrf.mxu0  ;;  %v7541_v13 = vpop.f32.mrf.mxu1  ;;  %13240 = vmatprep.subr.bf16.mxu0 %v13665_v11 }
0x14d2   : > { %v15611_v44 = vadd.f32 %v7541_v13, %v7444_v34  ;;  %v13688_v34 = vld [vmem:[%s16056_s10 + $0xd0] sm:$0xff]  }
0x14d3   : > { %v12933_v45 = vpop.f32.mrf.mxu0  ;;  %v12945_v41 = vpop.f32.mrf.mxu1 }
0x14d4   : > { %v15613_v46 = vadd.f32 %v12945_v41, %v12933_v45  ;;  %13241 = vmatpush3.bf16.msra.mxu0 %v13665_v11  ;;  %v13689_v45 = vld [vmem:[%s16056_s10 + $0xd8] sm:$0xff]  }
0x14d5   : > { %v15615_v48 = vpop.f32.mrf.mxu0  ;;  %13258 = vmatprep.subr.bf16.mxu0 %v13666_v35 }
0x14d7   : > { %v12956_v50 = vpop.f32.mrf.mxu0  ;;  %13243 = vmatmul.mubr.msk.bf16.vlgmr.msra.gmra.mxu0 %vm7055_vm10, %v15344_v17 }
0x14d8   : > { %13259 = vmatpush3.bf16.msra.mxu0 %v13666_v35  ;;  %13266 = vmatprep.mubr.msk.bf16.mxu0 %vm7055_vm10, %v15342_v10  ;;  %v13671_v10 = vld [vmem:[%s16056_s10 + $0x48] sm:$0xff]  }
0x14d9   : > { %v7623_v14 = vpop.f32.mrf.mxu0  ;;  %13260 = vmatprep.subr.bf16.mxu0 %v13667_v49 }
0x14db   : > { %v12957_v30 = vpop.f32.mrf.mxu0 }
0x14dc   : > { %v7639_v52 = vpack.c.bf16 %v12957_v30, %v12956_v50  ;;  %13261 = vmatpush3.bf16.msra.mxu0 %v13667_v49  ;;  %v13690_v49 = vld [vmem:[%s16056_s10 + $0xe0] sm:$0xff]   ;;  %v13691_v30 = vld [vmem:[%s16056_s10 + $0xe8] sm:$0xff]  }
0x14dd   : > { %v7626_v56 = vpop.f32.mrf.mxu0  ;;  %13262 = vmatprep.subr.bf16.mxu0 %v13668_v51 }
0x14de   : > { %v7638_v55 = vpack.c.bf16 %v7626_v56, %v7623_v14  ;;  %12958 = vmatprep.subr.bf16.mxu1 %v7639_v52 }
0x14df   : > { %12959 = vmatpush3.bf16.msra.mxu1 %v7639_v52  ;;  %v13692_v52 = vld [vmem:[%s16056_s10 + $0xf0] sm:$0xff]  }
0x14e0   : > { %12960 = vmatprep.subr.bf16.mxu1 %v7638_v55  ;;  %13263 = vmatpush3.bf16.msra.mxu0 %v13668_v51 }
0x14e1   : > { %13264 = vmatprep.subr.bf16.mxu0 %v13669_v28 }
0x14e3   : > { %12961 = vmatpush3.bf16.msra.mxu1 %v7638_v55  ;;  %v13693_v55 = vld [vmem:[%s16056_s10 + $0xf8] sm:$0xff]  }
0x14e4   : > { %13265 = vmatpush3.bf16.msra.mxu0 %v13669_v28 }
0x14e6   : > { %12963 = vmatmul.mubr.msk.bf16.vlgmr.msra.gmra.mxu1 %vm7381_vm15, %v13671_v10 }
0x14e7   : > { %v12980_v32 = vpop.f32.mrf.mxu0  ;;  %13267 = vmatmul.mubr.msk.bf16.vlgmr.msra.gmra.mxu0 %vm7055_vm10, %v15344_v17  ;;  %12966 = vmatprep.mubr.msk.bf16.mxu1 %vm7381_vm15, %v13672_v62  ;;  %v13675_v17 = vld [vmem:[%s16056_s10 + $0x68] sm:$0xff]   ;;  %v13694_v62 = vld [vmem:[%s16056_s10 + $0x100] sm:$0xff]  }
0x14e9   : > { %v7821_v58 = vpop.f32.mrf.mxu0 }
0x14eb   : > { %v12981_v12 = vpop.f32.mrf.mxu0 }
0x14ec   : > { %v7837_v61 = vpack.c.bf16 %v12981_v12, %v12980_v32  ;;  %v13695_v12 = vld [vmem:[%s16056_s10 + $0x108] sm:$0xff]  }
0x14ed   : > { %v7824_v54 = vpop.f32.mrf.mxu0 }
0x14ee   : > { %v7836_v0 = vpack.c.bf16 %v7824_v54, %v7821_v58  ;;  %12967 = vmatmul.mubr.msk.bf16.gmra.mxu1 %vm7381_vm15, %v13673_v4  ;;  %12982 = vmatprep.subr.bf16.mxu1 %v7837_v61 }
0x14ef   : > { %12983 = vmatpush3.bf16.msra.mxu1 %v7837_v61  ;;  %12986 = vmatprep.mubr.msk.bf16.mxu1 %vm7381_vm15, %v13674_v60  ;;  %v13696_v60 = vld [vmem:[%s16056_s10 + $0x110] sm:$0xff]  }
0x14f0   : > { %12984 = vmatprep.subr.bf16.mxu1 %v7836_v0 }
0x14f3   : > { %12985 = vmatpush3.bf16.msra.mxu1 %v7836_v0  ;;  %v13697_v0 = vld [vmem:[%s16056_s10 + $0x118] sm:$0xff]  }
0x14f6   : > { %12987 = vmatmul.mubr.msk.bf16.vlgmr.msra.gmra.mxu1 %vm7381_vm15, %v13675_v17 }
0x14f7   : > { %v13004_v3 = vpop.f32.mrf.mxu0  ;;  %12990 = vmatprep.mubr.msk.bf16.mxu1 %vm7381_vm15, %v13676_v1  ;;  %v13698_v1 = vld [vmem:[%s16056_s10 + $0x120] sm:$0xff]  }
0x14f9   : > { %v8019_v5 = vpop.f32.mrf.mxu0 }
0x14fb   : > { %v13005_v63 = vpop.f32.mrf.mxu0 }
0x14fc   : > { %v8035_v7 = vpack.c.bf16 %v13005_v63, %v13004_v3  ;;  %v13699_v63 = vld [vmem:[%s16056_s10 + $0x128] sm:$0xff]  }
0x14fd   : > { %v8022_v53 = vpop.f32.mrf.mxu0 }
0x14fe   : > { %v8034_v15 = vpack.c.bf16 %v8022_v53, %v8019_v5  ;;  %12991 = vmatmul.mubr.msk.bf16.gmra.mxu1 %vm7381_vm15, %v13677_v6  ;;  %13006 = vmatprep.subr.bf16.mxu1 %v8035_v7 }
0x14ff   : > { %13007 = vmatpush3.bf16.msra.mxu1 %v8035_v7  ;;  %13010 = vmatprep.mubr.msk.bf16.mxu1 %vm7381_vm15, %v13678_v57  ;;  %v13700_v57 = vld [vmem:[%s16056_s10 + $0x130] sm:$0xff]  }
0x1500   : > { %13008 = vmatprep.subr.bf16.mxu1 %v8034_v15 }
0x1503   : > { %13009 = vmatpush3.bf16.msra.mxu1 %v8034_v15  ;;  %v13701_v15 = vld [vmem:[%s16056_s10 + $0x138] sm:$0xff]  }
0x1506   : > { %13011 = vmatmul.mubr.msk.bf16.vlgmr.msra.gmra.mxu1 %vm7381_vm15, %v13679_v8 }
0x1507   : > { %v13028_v59 = vpop.f32.mrf.mxu0  ;;  %13014 = vmatprep.mubr.msk.bf16.mxu1 %vm7381_vm15, %v13680_v29  ;;  %v13702_v29 = vld [vmem:[%s16056_s10 + $0x140] sm:$0xff]  }
0x1509   : > { %v8217_v33 = vpop.f32.mrf.mxu0 }
0x150b   : > { %v13029_v47 = vpop.f32.mrf.mxu0 }
0x150c   : > { %v8233_v19 = vpack.c.bf16 %v13029_v47, %v13028_v59  ;;  %v13703_v47 = vld [vmem:[%s16056_s10 + $0x148] sm:$0xff]  }
0x150d   : > { %v8220_v20 = vpop.f32.mrf.mxu0 }
0x150e   : > { %v8232_v21 = vpack.c.bf16 %v8220_v20, %v8217_v33  ;;  %13015 = vmatmul.mubr.msk.bf16.gmra.mxu1 %vm7381_vm15, %v13681_v18  ;;  %13030 = vmatprep.subr.bf16.mxu1 %v8233_v19 }
0x150f   : > { %13031 = vmatpush3.bf16.msra.mxu1 %v8233_v19  ;;  %13034 = vmatprep.mubr.msk.bf16.mxu1 %vm7381_vm15, %v13682_v16  ;;  %v13704_v16 = vld [vmem:[%s16056_s10 + $0x150] sm:$0xff]  }
0x1510   : > { %13032 = vmatprep.subr.bf16.mxu1 %v8232_v21 }
0x1513   : > { %13033 = vmatpush3.bf16.msra.mxu1 %v8232_v21  ;;  %v13705_v21 = vld [vmem:[%s16056_s10 + $0x158] sm:$0xff]  }
0x1516   : > { %13035 = vmatmul.mubr.msk.bf16.vlgmr.msra.gmra.mxu1 %vm7381_vm15, %v13683_v22 }
0x1517   : > { %v13052_v24 = vpop.f32.mrf.mxu0  ;;  %13038 = vmatprep.mubr.msk.bf16.mxu1 %vm7381_vm15, %v13684_v23  ;;  %v13706_v23 = vld [vmem:[%s16056_s10 + $0x160] sm:$0xff]  }
0x1519   : > { %v8415_v9 = vpop.f32.mrf.mxu0 }
0x151b   : > { %v13053_v26 = vpop.f32.mrf.mxu0 }
0x151c   : > { %v8431_v37 = vpack.c.bf16 %v13053_v26, %v13052_v24  ;;  %v13707_v26 = vld [vmem:[%s16056_s10 + $0x168] sm:$0xff]  }
0x151d   : > { %v8418_v11 = vpop.f32.mrf.mxu0 }
0x151e   : > { %v8430_v40 = vpack.c.bf16 %v8418_v11, %v8415_v9  ;;  %13039 = vmatmul.mubr.msk.bf16.gmra.mxu1 %vm7381_vm15, %v13685_v25  ;;  %13054 = vmatprep.subr.bf16.mxu1 %v8431_v37 }
0x151f   : > { %13055 = vmatpush3.bf16.msra.mxu1 %v8431_v37  ;;  %13058 = vmatprep.mubr.msk.bf16.mxu1 %vm7381_vm15, %v13686_v2  ;;  %v13708_v2 = vld [vmem:[%s16056_s10 + $0x170] sm:$0xff]  }
0x1520   : > { %13056 = vmatprep.subr.bf16.mxu1 %v8430_v40 }
0x1523   : > { %13057 = vmatpush3.bf16.msra.mxu1 %v8430_v40  ;;  %v13709_v40 = vld [vmem:[%s16056_s10 + $0x178] sm:$0xff]  }
0x1526   : > { %13059 = vmatmul.mubr.msk.bf16.vlgmr.msra.gmra.mxu1 %vm7381_vm15, %v13687_v42 }
0x1527   : > { %v13076_v13 = vpop.f32.mrf.mxu0  ;;  %13062 = vmatprep.mubr.msk.bf16.mxu1 %vm7381_vm15, %v13688_v34  ;;  %v13710_v34 = vld [vmem:[%s16056_s10 + $0x180] sm:$0xff]  }
0x1529   : > { %v8613_v35 = vpop.f32.mrf.mxu0 }
0x152b   : > { %v13077_v41 = vpop.f32.mrf.mxu0 }
0x152c   : > { %v8629_v50 = vpack.c.bf16 %v13077_v41, %v13076_v13  ;;  %v13711_v41 = vld [vmem:[%s16056_s10 + $0x188] sm:$0xff]  }
0x152d   : > { %v8616_v14 = vpop.f32.mrf.mxu0 }
0x152e   : > { %v8628_v51 = vpack.c.bf16 %v8616_v14, %v8613_v35  ;;  %13063 = vmatmul.mubr.msk.bf16.gmra.mxu1 %vm7381_vm15, %v13689_v45  ;;  %13078 = vmatprep.subr.bf16.mxu1 %v8629_v50 }
0x152f   : > { %13079 = vmatpush3.bf16.msra.mxu1 %v8629_v50  ;;  %13082 = vmatprep.mubr.msk.bf16.mxu1 %vm7381_vm15, %v13690_v49  ;;  %v13712_v49 = vld [vmem:[%s16056_s10 + $0x190] sm:$0xff]  }
0x1530   : > { %13080 = vmatprep.subr.bf16.mxu1 %v8628_v51 }
0x1533   : > { %13081 = vmatpush3.bf16.msra.mxu1 %v8628_v51  ;;  %v13713_v51 = vld [vmem:[%s16056_s10 + $0x198] sm:$0xff]  }
0x1536   : > { %13083 = vmatmul.mubr.msk.bf16.vlgmr.msra.gmra.mxu1 %vm7381_vm15, %v13691_v30 }
0x1537   : > { %v13100_v56 = vpop.f32.mrf.mxu0  ;;  %13086 = vmatprep.mubr.msk.bf16.mxu1 %vm7381_vm15, %v13692_v52  ;;  %v13714_v52 = vld [vmem:[%s16056_s10 + $0x1a0] sm:$0xff]  }
0x1539   : > { %v8811_v28 = vpop.f32.mrf.mxu0 }
0x153b   : > { %v13101_v10 = vpop.f32.mrf.mxu0 }
0x153c   : > { %v8827_v32 = vpack.c.bf16 %v13101_v10, %v13100_v56  ;;  %v13715_v10 = vld [vmem:[%s16056_s10 + $0x1a8] sm:$0xff]  }
0x153d   : > { %v8814_v58 = vpop.f32.mrf.mxu0 }
0x153e   : > { %v8826_v4 = vpack.c.bf16 %v8814_v58, %v8811_v28  ;;  %13087 = vmatmul.mubr.msk.bf16.gmra.mxu1 %vm7381_vm15, %v13693_v55  ;;  %13102 = vmatprep.subr.bf16.mxu1 %v8827_v32 }
0x153f   : > { %13103 = vmatpush3.bf16.msra.mxu1 %v8827_v32  ;;  %13106 = vmatprep.mubr.msk.bf16.mxu1 %vm7381_vm15, %v13694_v62  ;;  %v13716_v62 = vld [vmem:[%s16056_s10 + $0x1b0] sm:$0xff]  }
0x1540   : > { %13104 = vmatprep.subr.bf16.mxu1 %v8826_v4 }
0x1543   : > { %13105 = vmatpush3.bf16.msra.mxu1 %v8826_v4  ;;  %v13717_v4 = vld [vmem:[%s16056_s10 + $0x1b8] sm:$0xff]  }
0x1546   : > { %13107 = vmatmul.mubr.msk.bf16.vlgmr.msra.gmra.mxu1 %vm7381_vm15, %v13695_v12 }
0x1547   : > { %v13124_v61 = vpop.f32.mrf.mxu0  ;;  %13110 = vmatprep.mubr.msk.bf16.mxu1 %vm7381_vm15, %v13696_v60  ;;  %v13718_v60 = vld [vmem:[%s16056_s10 + $0x1c0] sm:$0xff]  }
0x1549   : > { %v9009_v54 = vpop.f32.mrf.mxu0 }
0x154b   : > { %v13125_v17 = vpop.f32.mrf.mxu0 }
0x154c   : > { %v9025_v3 = vpack.c.bf16 %v13125_v17, %v13124_v61  ;;  %v13719_v17 = vld [vmem:[%s16056_s10 + $0x1c8] sm:$0xff]  }
0x154d   : > { %v9012_v5 = vpop.f32.mrf.mxu0 }
0x154e   : > { %v9024_v6 = vpack.c.bf16 %v9012_v5, %v9009_v54  ;;  %13111 = vmatmul.mubr.msk.bf16.gmra.mxu1 %vm7381_vm15, %v13697_v0  ;;  %13126 = vmatprep.subr.bf16.mxu1 %v9025_v3 }
0x154f   : > { %13127 = vmatpush3.bf16.msra.mxu1 %v9025_v3  ;;  %13130 = vmatprep.mubr.msk.bf16.mxu1 %vm7381_vm15, %v13698_v1  ;;  %v13720_v1 = vld [vmem:[%s16056_s10 + $0x1d0] sm:$0xff]   ;;  %v7544_v3 = vpop.f32.mrf.mxu1 }
0x1550   : > { %13128 = vmatprep.subr.bf16.mxu1 %v9024_v6 }
0x1553   : > { %13129 = vmatpush3.bf16.msra.mxu1 %v9024_v6 }
0x1556   : > { %13131 = vmatmul.mubr.msk.bf16.vlgmr.msra.gmra.mxu1 %vm7381_vm15, %v13699_v63 }
0x1557   : > { %v13148_v7 = vpop.f32.mrf.mxu0  ;;  %13134 = vmatprep.mubr.msk.bf16.mxu1 %vm7381_vm15, %v13700_v57 }
0x1559   : > { %v9207_v53 = vpop.f32.mrf.mxu0 }
0x155b   : > { %v13149_v8 = vpop.f32.mrf.mxu0 }
0x155c   : > { %v9223_v59 = vpack.c.bf16 %v13149_v8, %v13148_v7  ;;  %v13721_v8 = vld [vmem:[%s16056_s10 + $0x1d8] sm:$0xff]  }
0x155d   : > { %v9210_v33 = vpop.f32.mrf.mxu0 }
0x155e   : > { %v9222_v18 = vpack.c.bf16 %v9210_v33, %v9207_v53  ;;  %13135 = vmatmul.mubr.msk.bf16.gmra.mxu1 %vm7381_vm15, %v13701_v15  ;;  %13150 = vmatprep.subr.bf16.mxu1 %v9223_v59 }
0x155f   : > { %13151 = vmatpush3.bf16.msra.mxu1 %v9223_v59  ;;  %13154 = vmatprep.mubr.msk.bf16.mxu1 %vm7381_vm15, %v13702_v29  ;;  %v7529_v29 = vadd.f32 %v15601_v39, %v15599_v36 }
0x1560   : > { %13152 = vmatprep.subr.bf16.mxu1 %v9222_v18 }
0x1563   : > { %13153 = vmatpush3.bf16.msra.mxu1 %v9222_v18 }
0x1566   : > { %13155 = vmatmul.mubr.msk.bf16.vlgmr.msra.gmra.mxu1 %vm7381_vm15, %v13703_v47 }
0x1567   : > { %v13172_v19 = vpop.f32.mrf.mxu0  ;;  %13158 = vmatprep.mubr.msk.bf16.mxu1 %vm7381_vm15, %v13704_v16 }
0x1569   : > { %v9405_v20 = vpop.f32.mrf.mxu0 }
0x156b   : > { %v13173_v22 = vpop.f32.mrf.mxu0 }
0x156c   : > { %v9421_v24 = vpack.c.bf16 %v13173_v22, %v13172_v19  ;;  %v13723_v22 = vld [vmem:[%s16056_s10 + $0x1e8] sm:$0xff]  }
0x156d   : > { %v9408_v9 = vpop.f32.mrf.mxu0 }
0x156e   : > { %v9420_v25 = vpack.c.bf16 %v9408_v9, %v9405_v20  ;;  %13159 = vmatmul.mubr.msk.bf16.gmra.mxu1 %vm7381_vm15, %v13705_v21  ;;  %13174 = vmatprep.subr.bf16.mxu1 %v9421_v24 }
0x156f   : > { %13175 = vmatpush3.bf16.msra.mxu1 %v9421_v24  ;;  %13178 = vmatprep.mubr.msk.bf16.mxu1 %vm7381_vm15, %v13706_v23  ;;  %v7545_v23 = vadd.f32 %v7544_v3, %v15615_v48 }
0x1570   : > { %13176 = vmatprep.subr.bf16.mxu1 %v9420_v25 }
0x1573   : > { %13177 = vmatpush3.bf16.msra.mxu1 %v9420_v25 }
0x1576   : > { %13179 = vmatmul.mubr.msk.bf16.vlgmr.msra.gmra.mxu1 %vm7381_vm15, %v13707_v26 }
0x1577   : > { %v13196_v37 = vpop.f32.mrf.mxu0  ;;  %13182 = vmatprep.mubr.msk.bf16.mxu1 %vm7381_vm15, %v13708_v2 }
0x1579   : > { %v9603_v11 = vpop.f32.mrf.mxu0 }
0x157b   : > { %v13197_v42 = vpop.f32.mrf.mxu0 }
0x157c   : > { %v9619_v13 = vpack.c.bf16 %v13197_v42, %v13196_v37 }
0x157d   : > { %v9606_v35 = vpop.f32.mrf.mxu0 }
0x157e   : > { %v9618_v45 = vpack.c.bf16 %v9606_v35, %v9603_v11  ;;  %13183 = vmatmul.mubr.msk.bf16.gmra.mxu1 %vm7381_vm15, %v13709_v40  ;;  %13198 = vmatprep.subr.bf16.mxu1 %v9619_v13 }
0x157f   : > { %13199 = vmatpush3.bf16.msra.mxu1 %v9619_v13  ;;  %13202 = vmatprep.mubr.msk.bf16.mxu1 %vm7381_vm15, %v13710_v34 }
0x1580   : > { %13200 = vmatprep.subr.bf16.mxu1 %v9618_v45 }
0x1583   : > { %13201 = vmatpush3.bf16.msra.mxu1 %v9618_v45 }
0x1586   : > { %13203 = vmatmul.mubr.msk.bf16.vlgmr.msra.gmra.mxu1 %vm7381_vm15, %v13711_v41 }
0x1587   : > { %v13220_v50 = vpop.f32.mrf.mxu0  ;;  %13206 = vmatprep.mubr.msk.bf16.mxu1 %vm7381_vm15, %v13712_v49 }
0x1589   : > { %v9801_v14 = vpop.f32.mrf.mxu0 }
0x158b   : > { %v13221_v30 = vpop.f32.mrf.mxu0 }
0x158c   : > { %v9817_v56 = vpack.c.bf16 %v13221_v30, %v13220_v50 }
0x158d   : > { %v9804_v28 = vpop.f32.mrf.mxu0 }
0x158e   : > { %v9816_v55 = vpack.c.bf16 %v9804_v28, %v9801_v14  ;;  %13207 = vmatmul.mubr.msk.bf16.gmra.mxu1 %vm7381_vm15, %v13713_v51  ;;  %13222 = vmatprep.subr.bf16.mxu1 %v9817_v56 }
0x158f   : > { %13223 = vmatpush3.bf16.msra.mxu1 %v9817_v56  ;;  %13226 = vmatprep.mubr.msk.bf16.mxu1 %vm7381_vm15, %v13714_v52 }
0x1590   : > { %13224 = vmatprep.subr.bf16.mxu1 %v9816_v55 }
0x1593   : > { %13225 = vmatpush3.bf16.msra.mxu1 %v9816_v55 }
0x1596   : > { %13227 = vmatmul.mubr.msk.bf16.vlgmr.msra.gmra.mxu1 %vm7381_vm15, %v13715_v10 }
0x1597   : > { %v13244_v32 = vpop.f32.mrf.mxu0  ;;  %13230 = vmatprep.mubr.msk.bf16.mxu1 %vm7381_vm15, %v13716_v62 }
0x1599   : > { %v9999_v58 = vpop.f32.mrf.mxu0 }
0x159b   : > { %v13245_v12 = vpop.f32.mrf.mxu0 }
0x159c   : > { %v10015_v61 = vpack.c.bf16 %v13245_v12, %v13244_v32 }
0x159d   : > { %v10002_v54 = vpop.f32.mrf.mxu0 }
0x159e   : > { %v10014_v0 = vpack.c.bf16 %v10002_v54, %v9999_v58  ;;  %13231 = vmatmul.mubr.msk.bf16.gmra.mxu1 %vm7381_vm15, %v13717_v4  ;;  %13246 = vmatprep.subr.bf16.mxu1 %v10015_v61 }
0x159f   : > { %13247 = vmatpush3.bf16.msra.mxu1 %v10015_v61  ;;  %13250 = vmatprep.mubr.msk.bf16.mxu1 %vm7381_vm15, %v13718_v60 }
0x15a0   : > { %13248 = vmatprep.subr.bf16.mxu1 %v10014_v0 }
0x15a3   : > { %13249 = vmatpush3.bf16.msra.mxu1 %v10014_v0 }
0x15a6   : > { %v12964_v5 = vpop.f32.mrf.mxu1  ;;  %13251 = vmatmul.mubr.msk.bf16.vlgmr.msra.gmra.mxu1 %vm7381_vm15, %v13719_v17 }
0x15a7   : > { %v7748_v6 = vadd.f32 %v12964_v5, %v15588_v38  ;;  %v13268_v63 = vpop.f32.mrf.mxu0  ;;  %13254 = vmatprep.mubr.msk.bf16.mxu1 %vm7381_vm15, %v13720_v1  ;;  %v13722_v38 = vld [vmem:[%s16056_s10 + $0x1e0] sm:$0xff]  }
0x15a8   : > { %v7715_v57 = vpop.f32.mrf.mxu1 }
0x15a9   : > { %v7746_v7 = vadd.f32 %v7715_v57, %v15595_v27  ;;  %v10197_v53 = vpop.f32.mrf.mxu0 }
0x15aa   : > { %v12965_v15 = vpop.f32.mrf.mxu1 }
0x15ab   : > { %v7749_v59 = vadd.f32 %v12965_v15, %v15597_v31  ;;  %v13269_v33 = vpop.f32.mrf.mxu0 }
0x15ac   : > { %v10213_v18 = vpack.c.bf16 %v13269_v33, %v13268_v63  ;;  %v7718_v47 = vpop.f32.mrf.mxu1 }
0x15ad   : > { %v7747_v16 = vadd.f32 %v7718_v47, %v7529_v29  ;;  %v10200_v27 = vpop.f32.mrf.mxu0 }
0x15ae   : > { %v10212_v19 = vpack.c.bf16 %v10200_v27, %v10197_v53  ;;  %v12968_v20 = vpop.f32.mrf.mxu1  ;;  %13255 = vmatmul.mubr.msk.bf16.gmra.mxu1 %vm7381_vm15, %v13721_v8  ;;  %13270 = vmatprep.subr.bf16.mxu1 %v10213_v18 }
0x15af   : > { %v7752_v21 = vadd.f32 %v12968_v20, %v15606_v43  ;;  %13271 = vmatpush3.bf16.msra.mxu1 %v10213_v18  ;;  %13274 = vmatprep.mubr.msk.bf16.mxu1 %vm7381_vm15, %v13722_v38  ;;  %v13724_v43 = vld [vmem:[%s16056_s10 + $0x1f0] sm:$0xff]  }
0x15b0   : > { %v7731_v31 = vpop.f32.mrf.mxu1  ;;  %13272 = vmatprep.subr.bf16.mxu1 %v10212_v19 }
0x15b1   : > { %v7750_v36 = vadd.f32 %v7731_v31, %v15611_v44 }
0x15b2   : > { %v12969_v39 = vpop.f32.mrf.mxu1 }
0x15b3   : > { %v7753_v24 = vadd.f32 %v12969_v39, %v15613_v46  ;;  %13273 = vmatpush3.bf16.msra.mxu1 %v10212_v19  ;;  %v13725_v46 = vld [vmem:[%s16056_s10 + $0x1f8] sm:$0xff]  }
0x15b4   : > { %v7734_v9 = vpop.f32.mrf.mxu1 }
0x15b5   : > { %v7751_v25 = vadd.f32 %v7734_v9, %v7545_v23 }
0x15b6   : > { %v12988_v26 = vpop.f32.mrf.mxu1  ;;  %13275 = vmatmul.mubr.msk.bf16.vlgmr.msra.gmra.mxu1 %vm7381_vm15, %v13723_v22 }
0x15b7   : > { %v7946_v44 = vadd.f32 %v12988_v26, %v7748_v6  ;;  %13278 = vmatprep.mubr.msk.bf16.mxu1 %vm7381_vm15, %v13724_v43 }
0x15b8   : > { %v7913_v2 = vpop.f32.mrf.mxu1 }
0x15b9   : > { %v7944_v37 = vadd.f32 %v7913_v2, %v7746_v7 }
0x15ba   : > { %v12989_v11 = vpop.f32.mrf.mxu1 }
0x15bb   : > { %v7947_v48 = vadd.f32 %v12989_v11, %v7749_v59 }
0x15bc   : > { %v7916_v40 = vpop.f32.mrf.mxu1 }
0x15bd   : > { %v7945_v42 = vadd.f32 %v7916_v40, %v7747_v16 }
0x15be   : > { %v12992_v34 = vpop.f32.mrf.mxu1  ;;  %13279 = vmatmul.mubr.msk.bf16.gmra.mxu1 %vm7381_vm15, %v13725_v46 }
0x15bf   : > { %v7950_v13 = vadd.f32 %v12992_v34, %v7752_v21 }
0x15c0   : > { %v7929_v35 = vpop.f32.mrf.mxu1 }
0x15c1   : > { %v7948_v45 = vadd.f32 %v7929_v35, %v7750_v36 }
0x15c2   : > { %v12993_v41 = vpop.f32.mrf.mxu1 }
0x15c3   : > { %v7951_v49 = vadd.f32 %v12993_v41, %v7753_v24 }
0x15c4   : > { %v7932_v50 = vpop.f32.mrf.mxu1 }
0x15c5   : > { %v7949_v14 = vadd.f32 %v7932_v50, %v7751_v25 }
0x15c6   : > { %v13012_v51 = vpop.f32.mrf.mxu1 }
0x15c7   : > { %v8144_v30 = vadd.f32 %v13012_v51, %v7946_v44 }
0x15c8   : > { %v8111_v52 = vpop.f32.mrf.mxu1 }
0x15c9   : > { %v8142_v56 = vadd.f32 %v8111_v52, %v7944_v37 }
0x15ca   : > { %v13013_v28 = vpop.f32.mrf.mxu1 }
0x15cb   : > { %v8145_v55 = vadd.f32 %v13013_v28, %v7947_v48 }
0x15cc   : > { %v8114_v10 = vpop.f32.mrf.mxu1 }
0x15cd   : > { %v8143_v62 = vadd.f32 %v8114_v10, %v7945_v42 }
0x15ce   : > { %v13016_v32 = vpop.f32.mrf.mxu1 }
0x15cf   : > { %v8148_v58 = vadd.f32 %v13016_v32, %v7950_v13 }
0x15d0   : > { %v8127_v4 = vpop.f32.mrf.mxu1 }
0x15d1   : > { %v8146_v12 = vadd.f32 %v8127_v4, %v7948_v45 }
0x15d2   : > { %v13017_v60 = vpop.f32.mrf.mxu1 }
0x15d3   : > { %v8149_v61 = vadd.f32 %v13017_v60, %v7951_v49 }
0x15d4   : > { %v8130_v54 = vpop.f32.mrf.mxu1 }
0x15d5   : > { %v8147_v0 = vadd.f32 %v8130_v54, %v7949_v14 }
0x15d6   : > { %v13036_v17 = vpop.f32.mrf.mxu1 }
0x15d7   : > { %v8342_v1 = vadd.f32 %v13036_v17, %v8144_v30 }
0x15d8   : > { %v8309_v3 = vpop.f32.mrf.mxu1 }
0x15d9   : > { %v8340_v5 = vadd.f32 %v8309_v3, %v8142_v56 }
0x15da   : > { %v13037_v6 = vpop.f32.mrf.mxu1 }
0x15db   : > { %v8343_v63 = vadd.f32 %v13037_v6, %v8145_v55 }
0x15dc   : > { %v8312_v57 = vpop.f32.mrf.mxu1 }
0x15dd   : > { %v8341_v7 = vadd.f32 %v8312_v57, %v8143_v62 }
0x15de   : > { %v13040_v53 = vpop.f32.mrf.mxu1 }
0x15df   : > { %v8346_v15 = vadd.f32 %v13040_v53, %v8148_v58 }
0x15e0   : > { %v8325_v8 = vpop.f32.mrf.mxu1 }
0x15e1   : > { %v8344_v29 = vadd.f32 %v8325_v8, %v8146_v12 }
0x15e2   : > { %v13041_v59 = vpop.f32.mrf.mxu1 }
0x15e3   : > { %v8347_v33 = vadd.f32 %v13041_v59, %v8149_v61 }
0x15e4   : > { %v8328_v38 = vpop.f32.mrf.mxu1 }
0x15e5   : > { %v8345_v18 = vadd.f32 %v8328_v38, %v8147_v0 }
0x15e6   : > { %v13060_v47 = vpop.f32.mrf.mxu1 }
0x15e7   : > { %v8540_v16 = vadd.f32 %v13060_v47, %v8342_v1 }
0x15e8   : > { %v8507_v27 = vpop.f32.mrf.mxu1 }
0x15e9   : > { %v8538_v19 = vadd.f32 %v8507_v27, %v8340_v5 }
0x15ea   : > { %v13061_v20 = vpop.f32.mrf.mxu1 }
0x15eb   : > { %v8541_v21 = vadd.f32 %v13061_v20, %v8343_v63 }
0x15ec   : > { %v8510_v31 = vpop.f32.mrf.mxu1 }
0x15ed   : > { %v8539_v36 = vadd.f32 %v8510_v31, %v8341_v7 }
0x15ee   : > { %v13064_v39 = vpop.f32.mrf.mxu1 }
0x15ef   : > { %v8544_v22 = vadd.f32 %v13064_v39, %v8346_v15 }
0x15f0   : > { %v8523_v23 = vpop.f32.mrf.mxu1 }
0x15f1   : > { %v8542_v24 = vadd.f32 %v8523_v23, %v8344_v29 }
0x15f2   : > { %v13065_v43 = vpop.f32.mrf.mxu1 }
0x15f3   : > { %v8545_v9 = vadd.f32 %v13065_v43, %v8347_v33 }
0x15f4   : > { %v8526_v25 = vpop.f32.mrf.mxu1 }
0x15f5   : > { %v8543_v26 = vadd.f32 %v8526_v25, %v8345_v18 }
0x15f6   : > { %v13084_v44 = vpop.f32.mrf.mxu1 }
0x15f7   : > { %v8738_v2 = vadd.f32 %v13084_v44, %v8540_v16 }
0x15f8   : > { %v8705_v37 = vpop.f32.mrf.mxu1 }
0x15f9   : > { %v8736_v11 = vadd.f32 %v8705_v37, %v8538_v19 }
0x15fa   : > { %v13085_v46 = vpop.f32.mrf.mxu1 }
0x15fb   : > { %v8739_v48 = vadd.f32 %v13085_v46, %v8541_v21 }
0x15fc   : > { %v8708_v40 = vpop.f32.mrf.mxu1 }
0x15fd   : > { %v8737_v42 = vadd.f32 %v8708_v40, %v8539_v36 }
0x15fe   : > { %v13088_v34 = vpop.f32.mrf.mxu1 }
0x15ff   : > { %v8742_v13 = vadd.f32 %v13088_v34, %v8544_v22 }
0x1600   : > { %v8721_v35 = vpop.f32.mrf.mxu1 }
0x1601   : > { %v8740_v45 = vadd.f32 %v8721_v35, %v8542_v24 }
0x1602   : > { %v13089_v41 = vpop.f32.mrf.mxu1 }
0x1603   : > { %v8743_v49 = vadd.f32 %v13089_v41, %v8545_v9 }
0x1604   : > { %v8724_v50 = vpop.f32.mrf.mxu1 }
0x1605   : > { %v8741_v14 = vadd.f32 %v8724_v50, %v8543_v26 }
0x1606   : > { %v13108_v51 = vpop.f32.mrf.mxu1 }
0x1607   : > { %v8936_v30 = vadd.f32 %v13108_v51, %v8738_v2 }
0x1608   : > { %v8903_v52 = vpop.f32.mrf.mxu1 }
0x1609   : > { %v8934_v56 = vadd.f32 %v8903_v52, %v8736_v11 }
0x160a   : > { %v13109_v28 = vpop.f32.mrf.mxu1 }
0x160b   : > { %v8937_v55 = vadd.f32 %v13109_v28, %v8739_v48 }
0x160c   : > { %v8906_v10 = vpop.f32.mrf.mxu1 }
0x160d   : > { %v8935_v62 = vadd.f32 %v8906_v10, %v8737_v42 }
0x160e   : > { %v13112_v32 = vpop.f32.mrf.mxu1 }
0x160f   : > { %v8940_v58 = vadd.f32 %v13112_v32, %v8742_v13 }
0x1610   : > { %v8919_v4 = vpop.f32.mrf.mxu1 }
0x1611   : > { %v8938_v12 = vadd.f32 %v8919_v4, %v8740_v45 }
0x1612   : > { %v13113_v60 = vpop.f32.mrf.mxu1 }
0x1613   : > { %v8941_v61 = vadd.f32 %v13113_v60, %v8743_v49 }
0x1614   : > { %v8922_v54 = vpop.f32.mrf.mxu1 }
0x1615   : > { %v8939_v0 = vadd.f32 %v8922_v54, %v8741_v14 }
0x1616   : > { %v13132_v17 = vpop.f32.mrf.mxu1 }
0x1617   : > { %v9134_v1 = vadd.f32 %v13132_v17, %v8936_v30 }
0x1618   : > { %v9101_v3 = vpop.f32.mrf.mxu1 }
0x1619   : > { %v9132_v5 = vadd.f32 %v9101_v3, %v8934_v56 }
0x161a   : > { %v13133_v6 = vpop.f32.mrf.mxu1 }
0x161b   : > { %v9135_v63 = vadd.f32 %v13133_v6, %v8937_v55 }
0x161c   : > { %v9104_v57 = vpop.f32.mrf.mxu1 }
0x161d   : > { %v9133_v7 = vadd.f32 %v9104_v57, %v8935_v62 }
0x161e   : > { %v13136_v53 = vpop.f32.mrf.mxu1 }
0x161f   : > { %v9138_v15 = vadd.f32 %v13136_v53, %v8940_v58 }
0x1620   : > { %v9117_v8 = vpop.f32.mrf.mxu1 }
0x1621   : > { %v9136_v29 = vadd.f32 %v9117_v8, %v8938_v12 }
0x1622   : > { %v13137_v59 = vpop.f32.mrf.mxu1 }
0x1623   : > { %v9139_v33 = vadd.f32 %v13137_v59, %v8941_v61 }
0x1624   : > { %v9120_v38 = vpop.f32.mrf.mxu1 }
0x1625   : > { %v9137_v18 = vadd.f32 %v9120_v38, %v8939_v0 }
0x1626   : > { %v13156_v47 = vpop.f32.mrf.mxu1 }
0x1627   : > { %v9332_v16 = vadd.f32 %v13156_v47, %v9134_v1 }
0x1628   : > { %v9299_v27 = vpop.f32.mrf.mxu1 }
0x1629   : > { %v9330_v19 = vadd.f32 %v9299_v27, %v9132_v5 }
0x162a   : > { %v13157_v20 = vpop.f32.mrf.mxu1 }
0x162b   : > { %v9333_v21 = vadd.f32 %v13157_v20, %v9135_v63 }
0x162c   : > { %v9302_v31 = vpop.f32.mrf.mxu1 }
0x162d   : > { %v9331_v36 = vadd.f32 %v9302_v31, %v9133_v7 }
0x162e   : > { %v13160_v39 = vpop.f32.mrf.mxu1 }
0x162f   : > { %v9336_v22 = vadd.f32 %v13160_v39, %v9138_v15 }
0x1630   : > { %v9315_v23 = vpop.f32.mrf.mxu1 }
0x1631   : > { %v15861_v24 = vadd.f32 %v9315_v23, %v9136_v29 }
0x1632   : > { %v13161_v43 = vpop.f32.mrf.mxu1 }
0x1633   : > { %v9337_v9 = vadd.f32 %v13161_v43, %v9139_v33 }
0x1634   : > { %v9318_v25 = vpop.f32.mrf.mxu1 }
0x1635   : > { %v9335_v26 = vadd.f32 %v9318_v25, %v9137_v18 }
0x1636   : > { %v13180_v44 = vpop.f32.mrf.mxu1 }
0x1637   : > { %v9530_v5 = vadd.f32 %v13180_v44, %v9332_v16 }
0x1638   : > { %v9497_v2 = vpop.f32.mrf.mxu1 }
0x1639   : > { %v9528_v63 = vadd.f32 %v9497_v2, %v9330_v19 }
0x163a   : > { %v13181_v37 = vpop.f32.mrf.mxu1 }
0x163b   : > { %v9531_v53 = vadd.f32 %v13181_v37, %v9333_v21 }
0x163c   : > { %v9500_v11 = vpop.f32.mrf.mxu1 }
0x163d   : > { %v9529_v59 = vadd.f32 %v9500_v11, %v9331_v36 }
0x163e   : > { %v13184_v46 = vpop.f32.mrf.mxu1 }
0x163f   : > { %v9534_v47 = vadd.f32 %v13184_v46, %v9336_v22 }
0x1640   : > { %v9513_v48 = vpop.f32.mrf.mxu1 }
0x1641   : > { %v9532_v36 = vadd.f32 %v9513_v48, %v15861_v24 }
0x1642   : > { %v13185_v40 = vpop.f32.mrf.mxu1 }
0x1643   : > { %v9535_v42 = vadd.f32 %v13185_v40, %v9337_v9 }
0x1644   : > { %v9516_v34 = vpop.f32.mrf.mxu1 }
0x1645   : > { %v9533_v13 = vadd.f32 %v9516_v34, %v9335_v26 }
0x1646   : > { %v13204_v35 = vpop.f32.mrf.mxu1 }
0x1647   : > { %v9728_v57 = vadd.f32 %v13204_v35, %v9530_v5 }
0x1648   : > { %v9695_v45 = vpop.f32.mrf.mxu1 }
0x1649   : > { %v9726_v15 = vadd.f32 %v9695_v45, %v9528_v63 }
0x164a   : > { %v13205_v41 = vpop.f32.mrf.mxu1 }
0x164b   : > { %v9729_v33 = vadd.f32 %v13205_v41, %v9531_v53 }
0x164c   : > { %v9698_v49 = vpop.f32.mrf.mxu1 }
0x164d   : > { %v9727_v20 = vadd.f32 %v9698_v49, %v9529_v59 }
0x164e   : > { %v13208_v50 = vpop.f32.mrf.mxu1 }
0x164f   : > { %v9732_v16 = vadd.f32 %v13208_v50, %v9534_v47 }
0x1650   : > { %v9711_v14 = vpop.f32.mrf.mxu1 }
0x1651   : > { %v9730_v46 = vadd.f32 %v9711_v14, %v9532_v36 }
0x1652   : > { %v13209_v51 = vpop.f32.mrf.mxu1 }
0x1653   : > { %v9733_v30 = vadd.f32 %v13209_v51, %v9535_v42  ;;  %v12202_v51 = vld [vmem:[%s16057_s11 + $0x50] sm:$0xff] }
0x1654   : > { %v9714_v52 = vpop.f32.mrf.mxu1 }
0x1655   : > { %v9731_v56 = vadd.f32 %v9714_v52, %v9533_v13  ;;  %v10332_v52 = vld [vmem:[%s16057_s11 + $0x20] sm:$0xff] }
0x1656   : > { %v13228_v28 = vpop.f32.mrf.mxu1 }
0x1657   : > { %v9926_v8 = vadd.f32 %v13228_v28, %v9728_v57  ;;  %v10334_v28 = vld [vmem:[%s16057_s11 + $0x30] sm:$0xff] }
0x1658   : > { %v9893_v55 = vpop.f32.mrf.mxu1 }
0x1659   : > { %v9924_v38 = vadd.f32 %v9893_v55, %v9726_v15 }
0x165a   : > { %v13229_v10 = vpop.f32.mrf.mxu1 }
0x165b   : > { %v9927_v31 = vadd.f32 %v13229_v10, %v9729_v33 }
0x165c   : > { %v9896_v62 = vpop.f32.mrf.mxu1 }
0x165d   : > { %v9925_v19 = vadd.f32 %v9896_v62, %v9727_v20 }
0x165e   : > { %v13232_v32 = vpop.f32.mrf.mxu1 }
0x165f   : > { %v9930_v22 = vadd.f32 %v13232_v32, %v9732_v16 }
0x1660   : > { %v9909_v58 = vpop.f32.mrf.mxu1 }
0x1661   : > { %v9928_v13 = vadd.f32 %v9909_v58, %v9730_v46  ;;  %v10335_v46 = vld [vmem:[%s16057_s11 + $0x38] sm:$0xff] }
0x1662   : > { %v13233_v4 = vpop.f32.mrf.mxu1 }
0x1663   : > { %v15863_v12 = vadd.f32 %v13233_v4, %v9733_v30  ;;  %v10331_v30 = vld [vmem:[%s16057_s11 + $0x18] sm:$0xff] }
0x1664   : > { %v9912_v60 = vpop.f32.mrf.mxu1 }
0x1665   : > { %v15865_v61 = vadd.f32 %v9912_v60, %v9731_v56  ;;  %v10333_v56 = vld [vmem:[%s16057_s11 + $0x28] sm:$0xff] }
0x1666   : > { %v13252_v54 = vpop.f32.mrf.mxu1 }
0x1667   : > { %v10124_v18 = vadd.f32 %v13252_v54, %v9926_v8 }
0x1668   : > { %v10091_v0 = vpop.f32.mrf.mxu1 }
0x1669   : > { %v10122_v39 = vadd.f32 %v10091_v0, %v9924_v38  ;;  %v12203_v0 = vld [vmem:[%s16057_s11 + $0x58] sm:$0xff] }
0x166a   : > { %v13253_v17 = vpop.f32.mrf.mxu1 }
0x166b   : > { %v10125_v9 = vadd.f32 %v13253_v17, %v9927_v31  ;;  %v15920_v17 = vpop.permute.xlu1 %10457 }
0x166c   : > { %v10094_v1 = vpop.f32.mrf.mxu1 }
0x166d   : > { %v10123_v44 = vadd.f32 %v10094_v1, %v9925_v19  ;;  %v15922_v1 = vpop.permute.xlu0 %10452 }
0x166e   : > { %v13256_v3 = vpop.f32.mrf.mxu1 }
0x166f   : > { %v10128_v40 = vadd.f32 %v13256_v3, %v9930_v22  ;;  %v15924_v3 = vpop.permute.xlu1 %10462 }
0x1670   : > { %v10107_v6 = vpop.f32.mrf.mxu1 }
0x1671   : > { %v10126_v41 = vadd.f32 %v10107_v6, %v9928_v13  ;;  %v15926_v5 = vpop.permute.xlu0 %10500 }
0x1672   : > { %v13257_v7 = vpop.f32.mrf.mxu1 }
0x1673   : > { %v10129_v10 = vadd.f32 %v13257_v7, %v15863_v12  ;;  %v12204_v12 = vld [vmem:[%s16057_s11 + $0x60] sm:$0xff]  ;;  %v15928_v6 = vpop.permute.xlu1 %10505 }
0x1674   : > { %v10110_v29 = vpop.f32.mrf.mxu1 }
0x1675   : > { %v10127_v58 = vadd.f32 %v10110_v29, %v15865_v61  ;;  %v12205_v61 = vld [vmem:[%s16057_s11 + $0x68] sm:$0xff] }
0x1676   : > { %v13276_v27 = vpop.f32.mrf.mxu1 }
0x1677   : > { %v15867_v23 = vadd.f32 %v13276_v27, %v10124_v18 }
0x1678   : > { %v10289_v43 = vpop.f32.mrf.mxu1 }
0x1679   : > { %v15869_v25 = vadd.f32 %v10289_v43, %v10122_v39  ;;  %v10351_v21 = vsel %vm3495_vm9, %v15867_v23, 0.0 }
0x167a   : > { %10352 = vadd.xlane.f32.xlu0 %v10351_v21  ;;  %v13277_v26 = vpop.f32.mrf.mxu1 }
0x167b   : > { %v15874_v2 = vadd.f32 %v13277_v26, %v10125_v9  ;;  %v10345_v37 = vsel %vm3495_vm9, %v15869_v25, 0.0 }
0x167c   : > { %v10292_v11 = vpop.f32.mrf.mxu1  ;;  %10346 = vadd.xlane.f32.xlu1 %v10345_v37 }
0x167d   : > { %v10321_v42 = vadd.f32 %v10292_v11, %v10123_v44  ;;  %v10354_v48 = vsel %vm3495_vm9, %v15874_v2, 0.0 }
0x167e   : > { %v13280_v34 = vpop.f32.mrf.mxu1 }
0x167f   : > { %v15878_v35 = vadd.f32 %v13280_v34, %v10128_v40  ;;  %v10348_v24 = vsel %vm3495_vm9, %v10321_v42, 0.0  ;;  %v12207_v40 = vld [vmem:[%s16057_s11 + $0x78] sm:$0xff] }
0x1680   : > { %v10305_v45 = vpop.f32.mrf.mxu1  ;;  %10349 = vadd.xlane.f32.xlu0 %v10348_v24  ;;  %10355 = vadd.xlane.f32.xlu1 %v10354_v48 }
0x1681   : > { %v15883_v49 = vadd.f32 %v10305_v45, %v10126_v41  ;;  %v10363_v50 = vsel %vm3495_vm9, %v15878_v35, 0.0 }
0x1682   : > { %v13281_v55 = vpop.f32.mrf.mxu1 }
0x1683   : > { %v10357_v14 = vsel %vm3495_vm9, %v15883_v49, 0.0  ;;  %v10327_v62 = vadd.f32 %v13281_v55, %v10129_v10 }
0x1684   : > { %10364 = vadd.xlane.f32.xlu0 %v10363_v50  ;;  %v10308_v32 = vpop.f32.mrf.mxu1 }
0x1685   : > { %v15906_v4 = vadd.f32 %v10308_v32, %v10127_v58  ;;  %v10366_v60 = vsel %vm3495_vm9, %v10327_v62, 0.0 }
0x1687   : > { %v10360_v54 = vsel %vm3495_vm9, %v15906_v4, 0.0 }
0x1688   : > { %10358 = vadd.xlane.f32.xlu0 %v10357_v14 }
0x1691   : > { %10510 = vperm.xlu1 %13293, %v12202_v51   ;;  %v12206_v51 = vld [vmem:[%s16057_s11 + $0x70] sm:$0xff] }
0x169e   : > { %10467 = vperm.xlu0 %13292, %v10331_v30  }
0x16a2   : > { %10472 = vperm.xlu0 %13292, %v10332_v52  }
0x16a6   : > { %10477 = vperm.xlu0 %13292, %v10333_v56  }
0x16aa   : > { %10482 = vperm.xlu0 %13292, %v10334_v28  }
0x16b5   : > { %10367 = vadd.xlane.f32.xlu1 %v10366_v60 }
0x16b9   : > { %10361 = vadd.xlane.f32.xlu1 %v10360_v54 }
0x16ca   : > { %10515 = vperm.xlu1 %13293, %v12203_v0  }
0x16ce   : > { %10520 = vperm.xlu1 %13293, %v12204_v12  }
0x16d2   : > { %10525 = vperm.xlu1 %13293, %v12205_v61  }
0x1703   : > { %v10353_v63 = vpop.xlane.xlu0 %10352 }
0x1704   : > { %v10372_v57 = vmul.f32 0.0625, %v10353_v63 }
0x1705   : > { %v10347_v7 = vpop.xlane.xlu1 %10346 }
0x1706   : > { %v15931_v53 = vsub.f32 %v15867_v23, %v10372_v57  ;;  %v10370_v15 = vmul.f32 0.0625, %v10347_v7 }
0x1708   : > { %v15934_v8 = vsub.f32 %v15869_v25, %v10370_v15  ;;  %v10388_v29 = vmul.f32 %v15931_v53, %v15931_v53 }
0x1709   : > { %v10350_v59 = vpop.xlane.xlu0 %10349  ;;  %v10356_v33 = vpop.xlane.xlu1 %10355 }
0x170a   : > { %v10371_v38 = vmul.f32 0.0625, %v10350_v59  ;;  %v10373_v18 = vmul.f32 0.0625, %v10356_v33  ;;  %v10400_v47 = vsel %vm3495_vm9, %v10388_v29, 0.0  ;;  %v10386_v27 = vmul.f32 %v15934_v8, %v15934_v8 }
0x170b   : > { %10401 = vadd.xlane.f32.xlu0 %v10400_v47 }
0x170c   : > { %v15941_v20 = vsub.f32 %v10321_v42, %v10371_v38  ;;  %v15944_v31 = vsub.f32 %v15874_v2, %v10373_v18  ;;  %v10394_v16 = vsel %vm3495_vm9, %v10386_v27, 0.0 }
0x170d   : > { %v10365_v39 = vpop.xlane.xlu0 %10364  ;;  %v10511_v42 = vpop.permute.xlu1 %10510 }
0x170e   : > { %v10376_v23 = vmul.f32 0.0625, %v10365_v39  ;;  %v10389_v43 = vmul.f32 %v15944_v31, %v15944_v31  ;;  %v10387_v25 = vmul.f32 %v15941_v20, %v15941_v20 }
0x170f   : > { %10395 = vadd.xlane.f32.xlu0 %v10394_v16 }
0x1710   : > { %v15950_v19 = vsub.f32 %v15878_v35, %v10376_v23  ;;  %v10403_v9 = vsel %vm3495_vm9, %v10389_v43, 0.0  ;;  %v10397_v2 = vsel %vm3495_vm9, %v10387_v25, 0.0 }
0x1711   : > { %v10359_v21 = vpop.xlane.xlu0 %10358  ;;  %10404 = vadd.xlane.f32.xlu1 %v10403_v9 }
0x1712   : > { %v10374_v36 = vmul.f32 0.0625, %v10359_v21  ;;  %v10392_v26 = vmul.f32 %v15950_v19, %v15950_v19 }
0x1714   : > { %v15958_v22 = vsub.f32 %v15883_v49, %v10374_v36  ;;  %v10412_v44 = vsel %vm3495_vm9, %v10392_v26, 0.0 }
0x1715   : > { %10413 = vadd.xlane.f32.xlu0 %v10412_v44  ;;  %10398 = vadd.xlane.f32.xlu1 %v10397_v2  ;;  %v10570_v44 = vld [vmem:[%s16058_s12] sm:$0xff] }
0x1716   : > { %v10390_v37 = vmul.f32 %v15958_v22, %v15958_v22 }
0x1718   : > { %v10406_v11 = vsel %vm3495_vm9, %v10390_v37, 0.0 }
0x1719   : > { %10407 = vadd.xlane.f32.xlu0 %v10406_v11  ;;  %v10468_v30 = vpop.permute.xlu0 %10467 }
0x171d   : > { %v10473_v52 = vpop.permute.xlu0 %10472 }
0x1721   : > { %v15985_v56 = vpop.permute.xlu0 %10477 }
0x1725   : > { %v15987_v55 = vpop.permute.xlu0 %10482 }
0x172f   : > { %10487 = vperm.xlu0 %13292, %v10335_v46  }
0x1733   : > { %10535 = vperm.xlu0 %13292, %v12207_v40  }
0x173e   : > { %v10368_v34 = vpop.xlane.xlu1 %10367 }
0x173f   : > { %v10377_v13 = vmul.f32 0.0625, %v10368_v34 }
0x1741   : > { %v15971_v35 = vsub.f32 %v10327_v62, %v10377_v13 }
0x1742   : > { %v10362_v24 = vpop.xlane.xlu1 %10361 }
0x1743   : > { %v10375_v48 = vmul.f32 0.0625, %v10362_v24  ;;  %v10393_v45 = vmul.f32 %v15971_v35, %v15971_v35 }
0x1745   : > { %v15976_v41 = vsub.f32 %v15906_v4, %v10375_v48  ;;  %v10415_v49 = vsel %vm3495_vm9, %v10393_v45, 0.0  ;;  %v10571_v45 = vld [vmem:[%s16058_s12 + $0x8] sm:$0xff] }
0x1746   : > { %10416 = vadd.xlane.f32.xlu1 %v10415_v49  ;;  %v10516_v28 = vpop.permute.xlu1 %10515 }
0x1747   : > { %v10391_v50 = vmul.f32 %v15976_v41, %v15976_v41 }
0x1749   : > { %v10409_v14 = vsel %vm3495_vm9, %v10391_v50, 0.0 }
0x174a   : > { %10410 = vadd.xlane.f32.xlu1 %v10409_v14  ;;  %v10521_v10 = vpop.permute.xlu1 %10520 }
0x174e   : > { %v15989_v58 = vpop.permute.xlu1 %10525 }
0x175b   : > { %10530 = vperm.xlu1 %13293, %v12206_v51  }
0x1794   : > { %v10402_v62 = vpop.xlane.xlu0 %10401 }
0x1795   : > { %v10420_v32 = vmul.f32 0.0625, %v10402_v62 }
0x1797   : > { %v10428_v4 = vadd.f32 1e-05, %v10420_v32 }
0x1798   : > { %v10396_v60 = vpop.xlane.xlu0 %10395 }
0x1799   : > { %v10418_v54 = vmul.f32 0.0625, %v10396_v60  ;;  %13738 = vrsqrt.f32 %v10428_v4 }
0x179a   : > { %v10405_v0 = vpop.xlane.xlu1 %10404 }
0x179b   : > { %v10426_v12 = vadd.f32 1e-05, %v10418_v54  ;;  %v10421_v61 = vmul.f32 0.0625, %v10405_v0 }
0x179d   : > { %13740 = vrsqrt.f32 %v10426_v12  ;;  %v10429_v63 = vadd.f32 1e-05, %v10421_v61 }
0x179e   : > { %v10414_v57 = vpop.xlane.xlu0 %10413  ;;  %v10399_v7 = vpop.xlane.xlu1 %10398 }
0x179f   : > { %13742 = vrsqrt.f32 %v10429_v63  ;;  %v10419_v15 = vmul.f32 0.0625, %v10399_v7 }
0x17a1   : > { %v10427_v29 = vadd.f32 1e-05, %v10419_v15 }
0x17a2   : > { %v10408_v59 = vpop.xlane.xlu0 %10407 }
0x17a3   : > { %v10422_v33 = vmul.f32 0.0625, %v10408_v59  ;;  %13744 = vrsqrt.f32 %v10427_v29 }
0x17a5   : > { %v10430_v38 = vadd.f32 1e-05, %v10422_v33 }
0x17a6   : > { %v13739_v18 = vpop.eup %13738 }
0x17a7   : > { %13746 = vrsqrt.f32 %v10430_v38  ;;  %v10444_v27 = vmul.f32 %v13739_v18, %v15931_v53 }
0x17a9   : > { %v10492_v9 = vmul.f32 %v15924_v3, %v10444_v27  ;;  %v10573_v3 = vld [vmem:[%s16058_s12 + $0x18] sm:$0xff] }
0x17aa   : > { %v13741_v47 = vpop.eup %13740 }
0x17ab   : > { %v10442_v39 = vmul.f32 %v13741_v47, %v15934_v8  ;;  %v10540_v2 = vadd.f32 %v10511_v42, %v10492_v9  ;;  %v10576_v47 = vld [vmem:[%s16058_s12 + $0x30] sm:$0xff] }
0x17ac   : > { %v13743_v23 = vpop.eup %13742 }
0x17ad   : > { %v10490_v16 = vmul.f32 %v15922_v1, %v10442_v39  ;;  %v10445_v43 = vmul.f32 %v13743_v23, %v15944_v31  ;;  %v10556_v42 = vmul.f32 0.2, %v10540_v2  ;;  %vm10548_vm3 = vcmp.ge.f32.partialorder %v10540_v2, 0.0  ;;  %v10488_v23 = vpop.permute.xlu0 %10487 }
0x17af   : > { %v10538_v25 = vadd.f32 %v15926_v5, %v10490_v16  ;;  %v10493_v21 = vmul.f32 %v10468_v30, %v10445_v43  ;;  %v10564_v14 = vsel %vm10548_vm3, %v10540_v2, %v10556_v42  ;;  %v10575_v2 = vld [vmem:[%s16058_s12 + $0x28] sm:$0xff] }
0x17b0   : > { %v13745_v36 = vpop.eup %13744 }
0x17b1   : > { %vm10546_vm0 = vcmp.ge.f32.partialorder %v10538_v25, 0.0  ;;  %v10554_v26 = vmul.f32 0.2, %v10538_v25  ;;  %v10541_v53 = vadd.f32 %v10516_v28, %v10493_v21  ;;  %v10443_v8 = vmul.f32 %v13745_v36, %v15941_v20 }
0x17b3   : > { %v10562_v37 = vsel %vm10546_vm0, %v10538_v25, %v10554_v26  ;;  %vm10549_vm2 = vcmp.ge.f32.partialorder %v10541_v53, 0.0  ;;  %v10557_v1 = vmul.f32 0.2, %v10541_v53  ;;  %v10491_v11 = vmul.f32 %v15920_v17, %v10443_v8  ;;  %v10536_v25 = vpop.permute.xlu0 %10535 }
0x17b4   : > { %v13747_v5 = vpop.eup %13746  ;;  %v10578_v31 = vmul.f32 %v10570_v44, %v10562_v37  ;;  %v10424_v17 = vmul.f32 0.0625, %v10414_v57 }
0x17b5   : > { %v10565_v46 = vsel %vm10549_vm2, %v10541_v53, %v10557_v1  ;;  %v10446_v40 = vmul.f32 %v13747_v5, %v15958_v22  ;;  %v10539_v20 = vadd.f32 %v15928_v6, %v10491_v11  ;;  %v10572_v6 = vld [vmem:[%s16058_s12 + $0x10] sm:$0xff]  ;;  %v10577_v1 = vld [vmem:[%s16058_s12 + $0x38] sm:$0xff] }
0x17b6   : > { %v10586_v34 = vsel %vm3495_vm9, %v10578_v31, 0.0  ;;  %v10581_v13 = vmul.f32 %v10573_v3, %v10565_v46  ;;  %v10580_v28 = vmul.f32 %v10572_v6, %v10564_v14  ;;  %v10432_v62 = vadd.f32 1e-05, %v10424_v17 }
0x17b7   : > { %10587 = vadd.xlane.f32.xlu1 %v10586_v34  ;;  %v10494_v24 = vmul.f32 %v10473_v52, %v10446_v40  ;;  %vm10547_vm4 = vcmp.ge.f32.partialorder %v10539_v20, 0.0  ;;  %v10555_v48 = vmul.f32 0.2, %v10539_v20 }
0x17b8   : > { %v10595_v50 = vsel %vm3495_vm9, %v10581_v13, 0.0  ;;  %v10592_v4 = vsel %vm3495_vm9, %v10580_v28, 0.0  ;;  %13748 = vrsqrt.f32 %v10432_v62 }
0x17b9   : > { %v10542_v49 = vadd.f32 %v10521_v10, %v10494_v24  ;;  %v10563_v22 = vsel %vm10547_vm4, %v10539_v20, %v10555_v48  ;;  %v10574_v10 = vld [vmem:[%s16058_s12 + $0x20] sm:$0xff] }
0x17ba   : > { %v10579_v51 = vmul.f32 %v10571_v45, %v10563_v22 }
0x17bb   : > { %10596 = vadd.xlane.f32.xlu1 %v10595_v50  ;;  %vm10550_vm5 = vcmp.ge.f32.partialorder %v10542_v49, 0.0  ;;  %v10558_v30 = vmul.f32 0.2, %v10542_v49 }
0x17bc   : > { %v10589_v52 = vsel %vm3495_vm9, %v10579_v51, 0.0 }
0x17bd   : > { %10590 = vadd.xlane.f32.xlu0 %v10589_v52  ;;  %v10566_v32 = vsel %vm10550_vm5, %v10542_v49, %v10558_v30  ;;  %v10623_v52 = vld [vmem:[#allocation2] sm:$0x1] }
0x17be   : > { %v10582_v60 = vmul.f32 %v10574_v10, %v10566_v32 }
0x17c0   : > { %v10598_v54 = vsel %vm3495_vm9, %v10582_v60, 0.0 }
0x17c1   : > { %10593 = vadd.xlane.f32.xlu0 %v10592_v4 }
0x17c5   : > { %10599 = vadd.xlane.f32.xlu0 %v10598_v54  ;;  %v13749_v0 = vpop.eup %13748 }
0x17c6   : > { %v10448_v57 = vmul.f32 %v13749_v0, %v15950_v19 }
0x17c8   : > { %v10496_v59 = vmul.f32 %v15987_v55, %v10448_v57 }
0x17cf   : > { %v10417_v12 = vpop.xlane.xlu1 %10416 }
0x17d0   : > { %v10425_v61 = vmul.f32 0.0625, %v10417_v12 }
0x17d2   : > { %v10433_v63 = vadd.f32 1e-05, %v10425_v61 }
0x17d3   : > { %v10411_v7 = vpop.xlane.xlu1 %10410 }
0x17d4   : > { %13750 = vrsqrt.f32 %v10433_v63  ;;  %v10423_v15 = vmul.f32 0.0625, %v10411_v7 }
0x17d6   : > { %v10431_v29 = vadd.f32 1e-05, %v10423_v15 }
0x17d7   : > { %v10531_v33 = vpop.permute.xlu1 %10530 }
0x17d8   : > { %13752 = vrsqrt.f32 %v10431_v29  ;;  %v10544_v38 = vadd.f32 %v10531_v33, %v10496_v59 }
0x17da   : > { %vm10552_vm1 = vcmp.ge.f32.partialorder %v10544_v38, 0.0  ;;  %v10560_v18 = vmul.f32 0.2, %v10544_v38 }
0x17dc   : > { %v10568_v27 = vsel %vm10552_vm1, %v10544_v38, %v10560_v18 }
0x17dd   : > { %v10584_v39 = vmul.f32 %v10576_v47, %v10568_v27 }
0x17df   : > { %v10604_v19 = vsel %vm3495_vm9, %v10584_v39, 0.0 }
0x17e0   : > { %10605 = vadd.xlane.f32.xlu0 %v10604_v19 }
0x17e1   : > { %v13751_v16 = vpop.eup %13750 }
0x17e2   : > { %v10449_v43 = vmul.f32 %v13751_v16, %v15971_v35 }
0x17e4   : > { %v10497_v9 = vmul.f32 %v10488_v23, %v10449_v43 }
0x17e5   : > { %v13753_v55 = vpop.eup %13752 }
0x17e6   : > { %v10447_v21 = vmul.f32 %v13753_v55, %v15976_v41  ;;  %v10545_v36 = vadd.f32 %v10536_v25, %v10497_v9 }
0x17e8   : > { %v10495_v26 = vmul.f32 %v15985_v56, %v10447_v21  ;;  %v10561_v53 = vmul.f32 0.2, %v10545_v36  ;;  %vm10553_vm6 = vcmp.ge.f32.partialorder %v10545_v36, 0.0 }
0x17ea   : > { %v10543_v44 = vadd.f32 %v15989_v58, %v10495_v26  ;;  %v10569_v35 = vsel %vm10553_vm6, %v10545_v36, %v10561_v53 }
0x17eb   : > { %v10585_v56 = vmul.f32 %v10577_v1, %v10569_v35 }
0x17ec   : > { %vm10551_vm7 = vcmp.ge.f32.partialorder %v10543_v44, 0.0  ;;  %v10559_v8 = vmul.f32 0.2, %v10543_v44 }
0x17ed   : > { %v10607_v58 = vsel %vm3495_vm9, %v10585_v56, 0.0 }
0x17ee   : > { %v10567_v37 = vsel %vm10551_vm7, %v10543_v44, %v10559_v8 }
0x17ef   : > { %v10583_v41 = vmul.f32 %v10575_v2, %v10567_v37 }
0x17f1   : > { %v10601_v3 = vsel %vm3495_vm9, %v10583_v41, 0.0 }
0x17f2   : > { %10602 = vadd.xlane.f32.xlu1 %v10601_v3 }
0x17f6   : > { %10608 = vadd.xlane.f32.xlu1 %v10607_v58 }
0x1840   : > { %v10588_v31 = vpop.xlane.xlu1 %10587 }
0x1844   : > { %v10597_v34 = vpop.xlane.xlu1 %10596 }
0x1846   : > { %v10591_v5 = vpop.xlane.xlu0 %10590 }
0x1847   : > { %v10610_v46 = vadd.f32 %v10591_v5, %v10588_v31 }
0x184a   : > { %v10594_v11 = vpop.xlane.xlu0 %10593 }
0x184b   : > { %v10611_v40 = vadd.f32 %v10610_v46, %v10594_v11 }
0x184d   : > { %v10612_v13 = vadd.f32 %v10611_v40, %v10597_v34 }
0x184e   : > { %v10600_v20 = vpop.xlane.xlu0 %10599 }
0x184f   : > { %v10613_v42 = vadd.f32 %v10612_v13, %v10600_v20 }
0x1869   : > { %v10606_v45 = vpop.xlane.xlu0 %10605 }
0x187b   : > { %v10603_v24 = vpop.xlane.xlu1 %10602 }
0x187c   : > { %v10614_v48 = vadd.f32 %v10613_v42, %v10603_v24 }
0x187e   : > { %v10615_v49 = vadd.f32 %v10614_v48, %v10606_v45 }
0x187f   : > { %v10609_v17 = vpop.xlane.xlu1 %10608 }
0x1880   : > { %v10616_v50 = vadd.f32 %v10615_v49, %v10609_v17 }
0x1882   : > { %v10617_v22 = vrot.slane %v10616_v50, 4 }
0x1884   : > { %v10618_v14 = vadd.f32 %v10617_v22, %v10616_v50 }
0x1886   : > { %v10619_v6 = vrot.slane %v10618_v14, 2 }
0x1888   : > { %v10620_v51 = vadd.f32 %v10619_v6, %v10618_v14 }
0x188a   : > { %v10621_v30 = vrot.slane %v10620_v51, 1 }
0x188c   : > { %v10622_v28 = vadd.f32 %v10621_v30, %v10620_v51 }
0x188e   : > { %v10624_v62 = vadd.f32 %v10623_v52, %v10622_v28 }
0x1890   : > { %10626 = vst.msk [vmem:[%s465_s25] sm:$0x1] %vm10625_vm8, %v10624_v62 }
0x1891 PF: > { %s26_s15 = sadd.s32 1, %s13760_s15  }
0x1892   : > { %p23_p4 = scmp.ge.s32.totalorder %s26_s15, 4  }
0x1894   :  { %25 = sbr.rel (!%p23_p4) target bundleno = 3 (0x3), region = 184 }

</bundles_post_ra>
